<compile_context>
chip_gen: v5e
topology: v5e:2x2
jax: 0.10.0
libtpu: 0.0.40
codegen_flags: <defaults>
</compile_context>

<pallas_src>
import numpy as np
import jax
import jax.numpy as jnp
from jax.experimental import pallas as pl
from jax.experimental.pallas import tpu as pltpu

# ----------------------------- hyper-parameters (small, synthetic) -----------------
BATCH = 2
FEATURES_DIM = 64      # features_dim (per-region CNN feature size)
EMBED_DIM = 32         # embed_dim (GPT-2 hidden size)
CLIP_DIM = 48          # clip_dim
SEQ_LEN = 8            # max_len
FEATURE_NUM = 4        # feature_num (number of image region features)
CLIP_NUM = 1
VOCAB_DIM = 128        # vocab_dim
LAYER_NUM = 2          # layer_num (number of GPT-2 blocks)
NUM_HEADS = 2
HEAD_DIM = EMBED_DIM // NUM_HEADS
TOTAL_LEN = SEQ_LEN + FEATURE_NUM + CLIP_NUM   # = 13 real rows per batch element
PREFIX = CLIP_NUM + FEATURE_NUM                # = 5 prefix rows (clip + img)
PAD_LEN = 16                                   # padded per-batch block (sublane aligned)
LN_EPS = 1e-5


# ----------------------------- precomputed layout constants ------------------------
# Storage layout inside each 16-row batch block (permuted so word rows are aligned):
#   rows [0, SEQ_LEN)                 -> word tokens   (times PREFIX .. PREFIX+SEQ_LEN)
#   rows [SEQ_LEN, SEQ_LEN+PREFIX)    -> clip + img    (times 0 .. PREFIX)
#   rows [TOTAL_LEN, PAD_LEN)         -> zero padding  (never attended / never stored)
def _build_constants():
    def time_of(w):
        if w < SEQ_LEN:
            return PREFIX + w
        if w < TOTAL_LEN:
            return w - SEQ_LEN
        return 10_000  # pad query row: may attend to any real key in its block

    bias = np.full((BATCH * PAD_LEN, BATCH * PAD_LEN), -1e9, np.float32)
    for b in range(BATCH):
        for wi in range(PAD_LEN):
            for wj in range(TOTAL_LEN):            # only real rows are valid keys
                if time_of(wj) <= time_of(wi):
                    bias[b * PAD_LEN + wi, b * PAD_LEN + wj] = 0.0

    hmask = np.zeros((NUM_HEADS, EMBED_DIM), np.float32)
    for h in range(NUM_HEADS):
        hmask[h, h * HEAD_DIM:(h + 1) * HEAD_DIM] = 1.0

    umask = np.zeros((BATCH * PAD_LEN, 1), np.float32)
    for b in range(BATCH):
        umask[b * PAD_LEN:b * PAD_LEN + SEQ_LEN, 0] = 1.0   # only word rows get updated

    return bias, hmask, umask


ATTN_BIAS_NP, HEAD_MASK_NP, UPD_MASK_NP = _build_constants()


# ----------------------------- small helpers used inside the kernel ----------------
def _layer_norm(h, g, b):
    mu = jnp.mean(h, axis=-1, keepdims=True)
    var = jnp.mean((h - mu) ** 2, axis=-1, keepdims=True)
    return (h - mu) * jax.lax.rsqrt(var + LN_EPS) * g + b


def _gelu_new(x):
    # GPT-2 "gelu_new" (tanh approximation); fp32 tanh -> EUP
    return 0.5 * x * (1.0 + jnp.tanh(0.7978845608028654 * (x + 0.044715 * x ** 3)))


# ----------------------------- the single fused kernel -----------------------------
def _decoder_kernel(
    ids_ref, clipf_ref, feat_ref,
    w_clip_ref, b_clip_ref, w_img_ref, b_img_ref,
    content_ref, pos_ref,
    ln_ref,
    wq_ref, wk_ref, wv_ref, bq_ref, bk_ref, bv_ref,
    wo_ref, bo_ref,
    wfc_ref, bfc_ref, wpr_ref, bpr_ref,
    lnf_ref, w_out_ref, b_out_ref,
    bias_ref, hmask_ref, umask_ref,
    out_ref,
    h_ref,
):
    D, TP, S, F = EMBED_DIM, PAD_LEN, SEQ_LEN, FEATURE_NUM
    bf16 = jnp.bfloat16

    # ---- input embeddings (all dropouts are identity in eval mode) ----
    clip_e = jnp.dot(clipf_ref[...].astype(bf16), w_clip_ref[...],
                     preferred_element_type=jnp.float32) + b_clip_ref[...]      # (B, D)
    img_e = jnp.dot(feat_ref[...].astype(bf16), w_img_ref[...],
                    preferred_element_type=jnp.float32) + b_img_ref[...]        # (B*F, D)

    # token-embedding gather as an exact one-hot matmul on the MXU
    ids = ids_ref[...]                                                          # (B*S, 1) int32
    vocab_iota = jax.lax.broadcasted_iota(jnp.int32, (BATCH * S, VOCAB_DIM), 1)
    onehot = (ids == vocab_iota).astype(jnp.float32).astype(bf16)               # (B*S, V)
    words_e = jnp.dot(onehot, content_ref[...],
                      preferred_element_type=jnp.float32)                       # (B*S, D)

    # positional embeddings already permuted to storage order in the wrapper:
    #   rows [0:S)  -> word positions, rows [S:S+PREFIX) -> clip/img positions
    pos = pos_ref[...]                                                          # (TOTAL_LEN, D)

    # ---- assemble initial hidden state directly into the persistent VMEM scratch ----
    h_ref[...] = jnp.zeros((BATCH * TP, D), jnp.float32)                        # pad rows stay 0
    for b in range(BATCH):
        base = b * TP
        h_ref[pl.ds(base, S), :] = words_e[b * S:(b + 1) * S, :] + pos[0:S, :]
        h_ref[pl.ds(base + S, 1), :] = clip_e[b:b + 1, :] + pos[S:S + 1, :]
        h_ref[pl.ds(base + S + 1, F), :] = img_e[b * F:(b + 1) * F, :] + pos[S + 1:S + 1 + F, :]

    attn_bias = bias_ref[...]       # (B*TP, B*TP) additive causal/block/pad mask
    hmask = hmask_ref[...]          # (H, D) disjoint per-head lane masks
    umask = umask_ref[...]          # (B*TP, 1) 1.0 only on word rows
    scale = 1.0 / (HEAD_DIM ** 0.5)

    for li in range(LAYER_NUM):
        x = h_ref[...]                                                          # (B*TP, D) f32
        lnp = ln_ref[li]                                                        # (4, D)

        # --- self-attention (pre-LN), heads via full-width masked dots ---
        xn = _layer_norm(x, lnp[0:1, :], lnp[1:2, :]).astype(bf16)
        q = jnp.dot(xn, wq_ref[li], preferred_element_type=jnp.float32) + bq_ref[li]
        k = jnp.dot(xn, wk_ref[li], preferred_element_type=jnp.float32) + bk_ref[li]
        v = jnp.dot(xn, wv_ref[li], preferred_element_type=jnp.float32) + bv_ref[li]
        qs = q * scale
        k_b = k.astype(bf16)

        ctx = jnp.zeros((BATCH * TP, D), jnp.float32)
        for hh in range(NUM_HEADS):
            hm = hmask[hh:hh + 1, :]                                            # (1, D)
            qm = (qs * hm).astype(bf16)
            s = jax.lax.dot_general(qm, k_b, (((1,), (1,)), ((), ())),
                                    preferred_element_type=jnp.float32)         # (B*TP, B*TP)
            s = s + attn_bias
            s = s - jnp.max(s, axis=-1, keepdims=True)
            p = jnp.exp(s)
            p = p * pl.reciprocal(jnp.sum(p, axis=-1, keepdims=True), approx=True)
            vm = (v * hm).astype(bf16)
            ctx = ctx + jnp.dot(p.astype(bf16), vm,
                                preferred_element_type=jnp.float32)             # head-masked merge

        attn = jnp.dot(ctx.astype(bf16), wo_ref[li],
                       preferred_element_type=jnp.float32) + bo_ref[li]
        h1 = x + attn

        # --- MLP (pre-LN) ---
        h1n = _layer_norm(h1, lnp[2:3, :], lnp[3:4, :]).astype(bf16)
        m = jnp.dot(h1n, wfc_ref[li], preferred_element_type=jnp.float32) + bfc_ref[li]
        m = _gelu_new(m)
        m = jnp.dot(m.astype(bf16), wpr_ref[li],
                    preferred_element_type=jnp.float32) + bpr_ref[li]

        # residual update only on word rows; prefix rows keep their original
        # (clip/img + pos) values and pad rows stay zero -> the PyTorch
        # "h[:, :prefix, :] = ..." restore costs zero data movement.
        h_ref[...] = x + umask * (attn + m)

    # ---- final ln_f + fc over the word rows (block offset 0: sublane-aligned) ----
    lnf = lnf_ref[...]
    w_out = w_out_ref[...]
    b_out = b_out_ref[...]
    for b in range(BATCH):
        tail = h_ref[pl.ds(b * TP, S), :]                                       # (S, D)
        tn = _layer_norm(tail, lnf[0:1, :], lnf[1:2, :]).astype(bf16)
        out_ref[pl.ds(b * S, S), :] = jnp.dot(tn, w_out,
                                              preferred_element_type=jnp.float32) + b_out


# ----------------------------- wrapper ----------------------------------------------
@jax.jit
def decoder_forward(params, clip_features, features, input_ids):
    """clip_features: (B, clip_dim), features: (B, feature_num, features_dim),
    input_ids: (B, seq_len) int  ->  preds: (B, seq_len, vocab_dim)."""
    B = features.shape[0]
    feats2d = features.reshape(B * FEATURE_NUM, FEATURES_DIM)
    ids2d = input_ids.reshape(B * SEQ_LEN, 1).astype(jnp.int32)

    # wrapper-side layout plumbing: positional table in storage (word-first) order
    pos = params['position_embed']
    pos_perm = jnp.concatenate([pos[PREFIX:], pos[:PREFIX]], axis=0)            # (TOTAL_LEN, D)

    logits = pl.pallas_call(
        _decoder_kernel,
        out_shape=jax.ShapeDtypeStruct((B * SEQ_LEN, VOCAB_DIM), jnp.float32),
        scratch_shapes=[pltpu.VMEM((B * PAD_LEN, EMBED_DIM), jnp.float32)],
        # no grid: single invocation; every operand is a whole-array VMEM block
    )(
        ids2d, clip_features, feats2d,
        params['w_clip'], params['b_clip'],
        params['w_img'], params['b_img'],
        params['content_embed'], pos_perm,
        params['ln'],
        params['wq'], params['wk'], params['wv'],
        params['bq'], params['bk'], params['bv'],
        params['wo'], params['bo'],
        params['wfc'], params['bfc'],
        params['wpr'], params['bpr'],
        params['ln_f'], params['w_fc'], params['b_fc'],
        jnp.asarray(ATTN_BIAS_NP), jnp.asarray(HEAD_MASK_NP), jnp.asarray(UPD_MASK_NP),
    )
    return logits.reshape(B, SEQ_LEN, VOCAB_DIM)


# ----------------------------- parameter initialization -----------------------------
def init_params(key):
    D, FD, CD, V, L = EMBED_DIM, FEATURES_DIM, CLIP_DIM, VOCAB_DIM, LAYER_NUM
    ks = jax.random.split(key, 12)
    bf = jnp.bfloat16

    def xavier(k, shape):
        lim = (6.0 / (shape[0] + shape[1])) ** 0.5
        return jax.random.uniform(k, shape, jnp.float32, -lim, lim)

    ones_d = jnp.ones((D,), jnp.float32)
    zeros_d = jnp.zeros((D,), jnp.float32)
    ln_one_layer = jnp.stack([ones_d, zeros_d, ones_d, zeros_d])                 # (4, D)

    params = {
        # weight matrices stored in bf16 (halved DMA); biases / LN / pos in f32
        'w_clip': xavier(ks[0], (CD, D)).astype(bf),
        'b_clip': jnp.zeros((1, D), jnp.float32),
        'w_img': xavier(ks[1], (FD, D)).astype(bf),
        'b_img': jnp.zeros((1, D), jnp.float32),
        'content_embed': (0.02 * jax.random.normal(ks[2], (V, D), jnp.float32)).astype(bf),
        'position_embed': 0.01 * jax.random.normal(ks[3], (TOTAL_LEN, D), jnp.float32),
        # per-layer params stacked along a leading L axis
        'ln': jnp.tile(ln_one_layer[None], (L, 1, 1)),                           # (L, 4, D)
        'wq': (0.02 * jax.random.normal(ks[4], (L, D, D), jnp.float32)).astype(bf),
        'wk': (0.02 * jax.random.normal(ks[5], (L, D, D), jnp.float32)).astype(bf),
        'wv': (0.02 * jax.random.normal(ks[6], (L, D, D), jnp.float32)).astype(bf),
        'bq': jnp.zeros((L, 1, D), jnp.float32),
        'bk': jnp.zeros((L, 1, D), jnp.float32),
        'bv': jnp.zeros((L, 1, D), jnp.float32),
        'wo': (0.02 * jax.random.normal(ks[7], (L, D, D), jnp.float32)).astype(bf),
        'bo': jnp.zeros((L, 1, D), jnp.float32),
        'wfc': (0.02 * jax.random.normal(ks[8], (L, D, 4 * D), jnp.float32)).astype(bf),
        'bfc': jnp.zeros((L, 1, 4 * D), jnp.float32),
        'wpr': (0.02 * jax.random.normal(ks[9], (L, 4 * D, D), jnp.float32)).astype(bf),
        'bpr': jnp.zeros((L, 1, D), jnp.float32),
        'ln_f': jnp.stack([ones_d, zeros_d]),                                    # (2, D)
        'w_fc': xavier(ks[10], (D, V)).astype(bf),
        'b_fc': jnp.zeros((1, V), jnp.float32),
    }
    return params


# ----------------------------- main --------------------------------------------------
if __name__ == "__main__":
    key = jax.random.PRNGKey(0)
    k_param, k_clip, k_feat, k_ids = jax.random.split(key, 4)

    params = init_params(k_param)

    clip_features = jax.random.normal(k_clip, (BATCH, CLIP_DIM), jnp.float32)
    features = jax.random.normal(k_feat, (BATCH, FEATURE_NUM, FEATURES_DIM), jnp.float32)
    input_ids = jax.random.randint(k_ids, (BATCH, SEQ_LEN), 0, VOCAB_DIM, jnp.int32)

    preds = decoder_forward(params, clip_features, features, input_ids)
    preds = jax.block_until_ready(preds)

    assert preds.shape == (BATCH, SEQ_LEN, VOCAB_DIM)
    assert bool(jnp.all(jnp.isfinite(preds)))
    print("KERNEL_OK")
</pallas_src>

<mosaic_0001>
module attributes {stable_mosaic.version = 11 : i64} {
  func.func @_decoder_kernel(%arg0: memref<16x1xi32, #tpu.memory_space<vmem>>, %arg1: memref<2x48xf32, #tpu.memory_space<vmem>>, %arg2: memref<8x64xf32, #tpu.memory_space<vmem>>, %arg3: memref<48x32xbf16, #tpu.memory_space<vmem>>, %arg4: memref<1x32xf32, #tpu.memory_space<vmem>>, %arg5: memref<64x32xbf16, #tpu.memory_space<vmem>>, %arg6: memref<1x32xf32, #tpu.memory_space<vmem>>, %arg7: memref<128x32xbf16, #tpu.memory_space<vmem>>, %arg8: memref<13x32xf32, #tpu.memory_space<vmem>>, %arg9: memref<2x4x32xf32, #tpu.memory_space<vmem>>, %arg10: memref<2x32x32xbf16, #tpu.memory_space<vmem>>, %arg11: memref<2x32x32xbf16, #tpu.memory_space<vmem>>, %arg12: memref<2x32x32xbf16, #tpu.memory_space<vmem>>, %arg13: memref<2x1x32xf32, #tpu.memory_space<vmem>>, %arg14: memref<2x1x32xf32, #tpu.memory_space<vmem>>, %arg15: memref<2x1x32xf32, #tpu.memory_space<vmem>>, %arg16: memref<2x32x32xbf16, #tpu.memory_space<vmem>>, %arg17: memref<2x1x32xf32, #tpu.memory_space<vmem>>, %arg18: memref<2x32x128xbf16, #tpu.memory_space<vmem>>, %arg19: memref<2x1x128xf32, #tpu.memory_space<vmem>>, %arg20: memref<2x128x32xbf16, #tpu.memory_space<vmem>>, %arg21: memref<2x1x32xf32, #tpu.memory_space<vmem>>, %arg22: memref<2x32xf32, #tpu.memory_space<vmem>>, %arg23: memref<32x128xbf16, #tpu.memory_space<vmem>>, %arg24: memref<1x128xf32, #tpu.memory_space<vmem>>, %arg25: memref<32x32xf32, #tpu.memory_space<vmem>>, %arg26: memref<2x32xf32, #tpu.memory_space<vmem>>, %arg27: memref<32x1xf32, #tpu.memory_space<vmem>>, %arg28: memref<16x128xf32, #tpu.memory_space<vmem>>, %arg29: memref<32x32xf32, #tpu.memory_space<vmem>>) attributes {dimension_semantics = [], scalar_prefetch = 0 : i64, scratch_operands = 1 : i64, tpu.core_type = #tpu.core_type<tc>} {
    %c0 = arith.constant 0 : index
    %c0_0 = arith.constant 0 : index
    %0 = vector.load %arg1[%c0, %c0_0] : memref<2x48xf32, #tpu.memory_space<vmem>>, vector<2x48xf32>
    %1 = arith.truncf %0 : vector<2x48xf32> to vector<2x48xbf16>
    %c0_1 = arith.constant 0 : index
    %c0_2 = arith.constant 0 : index
    %2 = vector.load %arg3[%c0_1, %c0_2] : memref<48x32xbf16, #tpu.memory_space<vmem>>, vector<48x32xbf16>
    %cst = arith.constant dense<0.000000e+00> : vector<2x32xf32>
    %3 = tpu.matmul %1, %2, %cst {dimension_numbers = #tpu.dot_dimension_numbers<[1], [0], [0], [1], [0, 0, 1, 1], [], []>} : vector<2x48xbf16>, vector<48x32xbf16>, vector<2x32xf32> -> vector<2x32xf32>
    %c0_3 = arith.constant 0 : index
    %c0_4 = arith.constant 0 : index
    %4 = vector.load %arg4[%c0_3, %c0_4] : memref<1x32xf32, #tpu.memory_space<vmem>>, vector<1x32xf32>
    %5 = vector.broadcast %4 : vector<1x32xf32> to vector<2x32xf32>
    %6 = arith.addf %3, %5 : vector<2x32xf32>
    %c0_5 = arith.constant 0 : index
    %c0_6 = arith.constant 0 : index
    %7 = vector.load %arg2[%c0_5, %c0_6] : memref<8x64xf32, #tpu.memory_space<vmem>>, vector<8x64xf32>
    %8 = arith.truncf %7 : vector<8x64xf32> to vector<8x64xbf16>
    %c0_7 = arith.constant 0 : index
    %c0_8 = arith.constant 0 : index
    %9 = vector.load %arg5[%c0_7, %c0_8] : memref<64x32xbf16, #tpu.memory_space<vmem>>, vector<64x32xbf16>
    %cst_9 = arith.constant dense<0.000000e+00> : vector<8x32xf32>
    %10 = tpu.matmul %8, %9, %cst_9 {dimension_numbers = #tpu.dot_dimension_numbers<[1], [0], [0], [1], [0, 0, 1, 1], [], []>} : vector<8x64xbf16>, vector<64x32xbf16>, vector<8x32xf32> -> vector<8x32xf32>
    %c0_10 = arith.constant 0 : index
    %c0_11 = arith.constant 0 : index
    %11 = vector.load %arg6[%c0_10, %c0_11] : memref<1x32xf32, #tpu.memory_space<vmem>>, vector<1x32xf32>
    %12 = vector.broadcast %11 : vector<1x32xf32> to vector<8x32xf32>
    %13 = arith.addf %10, %12 : vector<8x32xf32>
    %c0_12 = arith.constant 0 : index
    %c0_13 = arith.constant 0 : index
    %14 = vector.load %arg0[%c0_12, %c0_13] : memref<16x1xi32, #tpu.memory_space<vmem>>, vector<16x1xi32>
    %15 = tpu.iota {dimensions = array<i32: 1>} : vector<16x128xi32>
    %16 = vector.broadcast %14 : vector<16x1xi32> to vector<16x128xi32>
    %17 = arith.cmpi eq, %16, %15 : vector<16x128xi32>
    %18 = arith.extui %17 : vector<16x128xi1> to vector<16x128xi32>
    %19 = arith.sitofp %18 : vector<16x128xi32> to vector<16x128xf32>
    %20 = arith.truncf %19 : vector<16x128xf32> to vector<16x128xbf16>
    %c0_14 = arith.constant 0 : index
    %c0_15 = arith.constant 0 : index
    %21 = vector.load %arg7[%c0_14, %c0_15] : memref<128x32xbf16, #tpu.memory_space<vmem>>, vector<128x32xbf16>
    %cst_16 = arith.constant dense<0.000000e+00> : vector<16x32xf32>
    %22 = tpu.matmul %20, %21, %cst_16 {dimension_numbers = #tpu.dot_dimension_numbers<[1], [0], [0], [1], [0, 0, 1, 1], [], []>} : vector<16x128xbf16>, vector<128x32xbf16>, vector<16x32xf32> -> vector<16x32xf32>
    %c0_17 = arith.constant 0 : index
    %c0_18 = arith.constant 0 : index
    %23 = vector.load %arg8[%c0_17, %c0_18] : memref<13x32xf32, #tpu.memory_space<vmem>>, vector<13x32xf32>
    %cst_19 = arith.constant 0.000000e+00 : f32
    %24 = vector.broadcast %cst_19 : f32 to vector<32x32xf32>
    %c0_20 = arith.constant 0 : index
    %c0_21 = arith.constant 0 : index
    %25 = vector.load %arg29[%c0_20, %c0_21] : memref<32x32xf32, #tpu.memory_space<vmem>>, vector<32x32xf32>
    tpu.vector_store %arg29[%c0_20, %c0_21], %24 {strides = array<i32>} : memref<32x32xf32, #tpu.memory_space<vmem>>, vector<32x32xf32>,
    %26 = vector.extract_strided_slice %22 {offsets = [0, 0], sizes = [8, 32], strides = [1, 1]} : vector<16x32xf32> to vector<8x32xf32>
    %27 = vector.extract_strided_slice %23 {offsets = [0, 0], sizes = [8, 32], strides = [1, 1]} : vector<13x32xf32> to vector<8x32xf32>
    %28 = arith.addf %26, %27 : vector<8x32xf32>
    %c0_22 = arith.constant 0 : index
    %c0_23 = arith.constant 0 : index
    %29 = vector.load %arg29[%c0_22, %c0_23] : memref<32x32xf32, #tpu.memory_space<vmem>>, vector<8x32xf32>
    tpu.vector_store %arg29[%c0_22, %c0_23], %28 {strides = array<i32>} : memref<32x32xf32, #tpu.memory_space<vmem>>, vector<8x32xf32>,
    %30 = vector.extract_strided_slice %6 {offsets = [0, 0], sizes = [1, 32], strides = [1, 1]} : vector<2x32xf32> to vector<1x32xf32>
    %31 = vector.extract_strided_slice %23 {offsets = [8, 0], sizes = [1, 32], strides = [1, 1]} : vector<13x32xf32> to vector<1x32xf32>
    %32 = arith.addf %30, %31 : vector<1x32xf32>
    %c8 = arith.constant 8 : index
    %c0_24 = arith.constant 0 : index
    %33 = vector.load %arg29[%c8, %c0_24] : memref<32x32xf32, #tpu.memory_space<vmem>>, vector<1x32xf32>
    tpu.vector_store %arg29[%c8, %c0_24], %32 {strides = array<i32>} : memref<32x32xf32, #tpu.memory_space<vmem>>, vector<1x32xf32>,
    %34 = vector.extract_strided_slice %13 {offsets = [0, 0], sizes = [4, 32], strides = [1, 1]} : vector<8x32xf32> to vector<4x32xf32>
    %35 = vector.extract_strided_slice %23 {offsets = [9, 0], sizes = [4, 32], strides = [1, 1]} : vector<13x32xf32> to vector<4x32xf32>
    %36 = arith.addf %34, %35 : vector<4x32xf32>
    %c9 = arith.constant 9 : index
    %c0_25 = arith.constant 0 : index
    %37 = vector.load %arg29[%c9, %c0_25] : memref<32x32xf32, #tpu.memory_space<vmem>>, vector<4x32xf32>
    tpu.vector_store %arg29[%c9, %c0_25], %36 {strides = array<i32>} : memref<32x32xf32, #tpu.memory_space<vmem>>, vector<4x32xf32>,
    %38 = vector.extract_strided_slice %22 {offsets = [8, 0], sizes = [8, 32], strides = [1, 1]} : vector<16x32xf32> to vector<8x32xf32>
    %39 = vector.extract_strided_slice %23 {offsets = [0, 0], sizes = [8, 32], strides = [1, 1]} : vector<13x32xf32> to vector<8x32xf32>
    %40 = arith.addf %38, %39 : vector<8x32xf32>
    %c16 = arith.constant 16 : index
    %c0_26 = arith.constant 0 : index
    %41 = vector.load %arg29[%c16, %c0_26] : memref<32x32xf32, #tpu.memory_space<vmem>>, vector<8x32xf32>
    tpu.vector_store %arg29[%c16, %c0_26], %40 {strides = array<i32>} : memref<32x32xf32, #tpu.memory_space<vmem>>, vector<8x32xf32>,
    %42 = vector.extract_strided_slice %6 {offsets = [1, 0], sizes = [1, 32], strides = [1, 1]} : vector<2x32xf32> to vector<1x32xf32>
    %43 = vector.extract_strided_slice %23 {offsets = [8, 0], sizes = [1, 32], strides = [1, 1]} : vector<13x32xf32> to vector<1x32xf32>
    %44 = arith.addf %42, %43 : vector<1x32xf32>
    %c24 = arith.constant 24 : index
    %c0_27 = arith.constant 0 : index
    %45 = vector.load %arg29[%c24, %c0_27] : memref<32x32xf32, #tpu.memory_space<vmem>>, vector<1x32xf32>
    tpu.vector_store %arg29[%c24, %c0_27], %44 {strides = array<i32>} : memref<32x32xf32, #tpu.memory_space<vmem>>, vector<1x32xf32>,
    %46 = vector.extract_strided_slice %13 {offsets = [4, 0], sizes = [4, 32], strides = [1, 1]} : vector<8x32xf32> to vector<4x32xf32>
    %47 = vector.extract_strided_slice %23 {offsets = [9, 0], sizes = [4, 32], strides = [1, 1]} : vector<13x32xf32> to vector<4x32xf32>
    %48 = arith.addf %46, %47 : vector<4x32xf32>
    %c25 = arith.constant 25 : index
    %c0_28 = arith.constant 0 : index
    %49 = vector.load %arg29[%c25, %c0_28] : memref<32x32xf32, #tpu.memory_space<vmem>>, vector<4x32xf32>
    tpu.vector_store %arg29[%c25, %c0_28], %48 {strides = array<i32>} : memref<32x32xf32, #tpu.memory_space<vmem>>, vector<4x32xf32>,
    %c0_29 = arith.constant 0 : index
    %c0_30 = arith.constant 0 : index
    %50 = vector.load %arg25[%c0_29, %c0_30] : memref<32x32xf32, #tpu.memory_space<vmem>>, vector<32x32xf32>
    %c0_31 = arith.constant 0 : index
    %c0_32 = arith.constant 0 : index
    %51 = vector.load %arg26[%c0_31, %c0_32] : memref<2x32xf32, #tpu.memory_space<vmem>>, vector<2x32xf32>
    %c0_33 = arith.constant 0 : index
    %c0_34 = arith.constant 0 : index
    %52 = vector.load %arg27[%c0_33, %c0_34] : memref<32x1xf32, #tpu.memory_space<vmem>>, vector<32x1xf32>
    %c0_35 = arith.constant 0 : index
    %c0_36 = arith.constant 0 : index
    %53 = vector.load %arg29[%c0_35, %c0_36] : memref<32x32xf32, #tpu.memory_space<vmem>>, vector<32x32xf32>
    %c0_37 = arith.constant 0 : index
    %c0_38 = arith.constant 0 : index
    %c0_39 = arith.constant 0 : index
    %54 = vector.load %arg9[%c0_37, %c0_38, %c0_39] : memref<2x4x32xf32, #tpu.memory_space<vmem>>, vector<1x4x32xf32>
    %55 = vector.shape_cast %54 : vector<1x4x32xf32> to vector<4x32xf32>
    %56 = vector.extract_strided_slice %55 {offsets = [0, 0], sizes = [1, 32], strides = [1, 1]} : vector<4x32xf32> to vector<1x32xf32>
    %57 = vector.extract_strided_slice %55 {offsets = [1, 0], sizes = [1, 32], strides = [1, 1]} : vector<4x32xf32> to vector<1x32xf32>
    %cst_40 = arith.constant dense<0.000000e+00> : vector<32xf32>
    %58 = vector.multi_reduction <add>, %53, %cst_40 [1] : vector<32x32xf32> to vector<32xf32>
    %59 = vector.shape_cast %58 : vector<32xf32> to vector<32x1xf32>
    %cst_41 = arith.constant 3.200000e+01 : f32
    %60 = vector.broadcast %cst_41 : f32 to vector<32x1xf32>
    %61 = arith.divf %59, %60 : vector<32x1xf32>
    %62 = vector.broadcast %61 : vector<32x1xf32> to vector<32x32xf32>
    %63 = arith.subf %53, %62 : vector<32x32xf32>
    %64 = arith.mulf %63, %63 : vector<32x32xf32>
    %cst_42 = arith.constant dense<0.000000e+00> : vector<32xf32>
    %65 = vector.multi_reduction <add>, %64, %cst_42 [1] : vector<32x32xf32> to vector<32xf32>
    %66 = vector.shape_cast %65 : vector<32xf32> to vector<32x1xf32>
    %cst_43 = arith.constant 3.200000e+01 : f32
    %67 = vector.broadcast %cst_43 : f32 to vector<32x1xf32>
    %68 = arith.divf %66, %67 : vector<32x1xf32>
    %69 = vector.broadcast %61 : vector<32x1xf32> to vector<32x32xf32>
    %70 = arith.subf %53, %69 : vector<32x32xf32>
    %cst_44 = arith.constant 9.99999974E-6 : f32
    %71 = vector.broadcast %cst_44 : f32 to vector<32x1xf32>
    %72 = arith.addf %68, %71 : vector<32x1xf32>
    %73 = math.rsqrt %72 : vector<32x1xf32>
    %74 = vector.broadcast %73 : vector<32x1xf32> to vector<32x32xf32>
    %75 = arith.mulf %70, %74 : vector<32x32xf32>
    %76 = vector.broadcast %56 : vector<1x32xf32> to vector<32x32xf32>
    %77 = arith.mulf %75, %76 : vector<32x32xf32>
    %78 = vector.broadcast %57 : vector<1x32xf32> to vector<32x32xf32>
    %79 = arith.addf %77, %78 : vector<32x32xf32>
    %80 = arith.truncf %79 : vector<32x32xf32> to vector<32x32xbf16>
    %c0_45 = arith.constant 0 : index
    %c0_46 = arith.constant 0 : index
    %c0_47 = arith.constant 0 : index
    %81 = vector.load %arg10[%c0_45, %c0_46, %c0_47] : memref<2x32x32xbf16, #tpu.memory_space<vmem>>, vector<1x32x32xbf16>
    %82 = vector.shape_cast %81 : vector<1x32x32xbf16> to vector<32x32xbf16>
    %cst_48 = arith.constant dense<0.000000e+00> : vector<32x32xf32>
    %83 = tpu.matmul %80, %82, %cst_48 {dimension_numbers = #tpu.dot_dimension_numbers<[1], [0], [0], [1], [0, 0, 1, 1], [], []>} : vector<32x32xbf16>, vector<32x32xbf16>, vector<32x32xf32> -> vector<32x32xf32>
    %c0_49 = arith.constant 0 : index
    %c0_50 = arith.constant 0 : index
    %c0_51 = arith.constant 0 : index
    %84 = vector.load %arg13[%c0_49, %c0_50, %c0_51] : memref<2x1x32xf32, #tpu.memory_space<vmem>>, vector<1x1x32xf32>
    %85 = vector.shape_cast %84 : vector<1x1x32xf32> to vector<1x32xf32>
    %86 = vector.broadcast %85 : vector<1x32xf32> to vector<32x32xf32>
    %87 = arith.addf %83, %86 : vector<32x32xf32>
    %c0_52 = arith.constant 0 : index
    %c0_53 = arith.constant 0 : index
    %c0_54 = arith.constant 0 : index
    %88 = vector.load %arg11[%c0_52, %c0_53, %c0_54] : memref<2x32x32xbf16, #tpu.memory_space<vmem>>, vector<1x32x32xbf16>
    %89 = vector.shape_cast %88 : vector<1x32x32xbf16> to vector<32x32xbf16>
    %cst_55 = arith.constant dense<0.000000e+00> : vector<32x32xf32>
    %90 = tpu.matmul %80, %89, %cst_55 {dimension_numbers = #tpu.dot_dimension_numbers<[1], [0], [0], [1], [0, 0, 1, 1], [], []>} : vector<32x32xbf16>, vector<32x32xbf16>, vector<32x32xf32> -> vector<32x32xf32>
    %c0_56 = arith.constant 0 : index
    %c0_57 = arith.constant 0 : index
    %c0_58 = arith.constant 0 : index
    %91 = vector.load %arg14[%c0_56, %c0_57, %c0_58] : memref<2x1x32xf32, #tpu.memory_space<vmem>>, vector<1x1x32xf32>
    %92 = vector.shape_cast %91 : vector<1x1x32xf32> to vector<1x32xf32>
    %93 = vector.broadcast %92 : vector<1x32xf32> to vector<32x32xf32>
    %94 = arith.addf %90, %93 : vector<32x32xf32>
    %c0_59 = arith.constant 0 : index
    %c0_60 = arith.constant 0 : index
    %c0_61 = arith.constant 0 : index
    %95 = vector.load %arg12[%c0_59, %c0_60, %c0_61] : memref<2x32x32xbf16, #tpu.memory_space<vmem>>, vector<1x32x32xbf16>
    %96 = vector.shape_cast %95 : vector<1x32x32xbf16> to vector<32x32xbf16>
    %cst_62 = arith.constant dense<0.000000e+00> : vector<32x32xf32>
    %97 = tpu.matmul %80, %96, %cst_62 {dimension_numbers = #tpu.dot_dimension_numbers<[1], [0], [0], [1], [0, 0, 1, 1], [], []>} : vector<32x32xbf16>, vector<32x32xbf16>, vector<32x32xf32> -> vector<32x32xf32>
    %c0_63 = arith.constant 0 : index
    %c0_64 = arith.constant 0 : index
    %c0_65 = arith.constant 0 : index
    %98 = vector.load %arg15[%c0_63, %c0_64, %c0_65] : memref<2x1x32xf32, #tpu.memory_space<vmem>>, vector<1x1x32xf32>
    %99 = vector.shape_cast %98 : vector<1x1x32xf32> to vector<1x32xf32>
    %100 = vector.broadcast %99 : vector<1x32xf32> to vector<32x32xf32>
    %101 = arith.addf %97, %100 : vector<32x32xf32>
    %cst_66 = arith.constant 2.500000e-01 : f32
    %102 = vector.broadcast %cst_66 : f32 to vector<32x32xf32>
    %103 = arith.mulf %87, %102 : vector<32x32xf32>
    %104 = arith.truncf %94 : vector<32x32xf32> to vector<32x32xbf16>
    %cst_67 = arith.constant 0.000000e+00 : f32
    %105 = vector.broadcast %cst_67 : f32 to vector<32x32xf32>
    %106 = vector.extract_strided_slice %51 {offsets = [0, 0], sizes = [1, 32], strides = [1, 1]} : vector<2x32xf32> to vector<1x32xf32>
    %107 = vector.broadcast %106 : vector<1x32xf32> to vector<32x32xf32>
    %108 = arith.mulf %103, %107 : vector<32x32xf32>
    %109 = arith.truncf %108 : vector<32x32xf32> to vector<32x32xbf16>
    %cst_68 = arith.constant dense<0.000000e+00> : vector<32x32xf32>
    %110 = tpu.matmul %109, %104, %cst_68 {dimension_numbers = #tpu.dot_dimension_numbers<[1], [1], [0], [0], [0, 0, 1, 0], [], []>} : vector<32x32xbf16>, vector<32x32xbf16>, vector<32x32xf32> -> vector<32x32xf32>
    %111 = arith.addf %110, %50 : vector<32x32xf32>
    %cst_69 = arith.constant dense<0xFF800000> : vector<32xf32>
    %112 = vector.multi_reduction <maximumf>, %111, %cst_69 [1] : vector<32x32xf32> to vector<32xf32>
    %113 = vector.shape_cast %112 : vector<32xf32> to vector<32x1xf32>
    %114 = vector.broadcast %113 : vector<32x1xf32> to vector<32x32xf32>
    %115 = arith.subf %111, %114 : vector<32x32xf32>
    %116 = math.exp %115 : vector<32x32xf32>
    %cst_70 = arith.constant dense<0.000000e+00> : vector<32xf32>
    %117 = vector.multi_reduction <add>, %116, %cst_70 [1] : vector<32x32xf32> to vector<32xf32>
    %118 = vector.shape_cast %117 : vector<32xf32> to vector<32x1xf32>
    %119 = tpu.reciprocal %118 {approx = true} : vector<32x1xf32> -> vector<32x1xf32>
    %120 = vector.broadcast %119 : vector<32x1xf32> to vector<32x32xf32>
    %121 = arith.mulf %116, %120 : vector<32x32xf32>
    %122 = vector.broadcast %106 : vector<1x32xf32> to vector<32x32xf32>
    %123 = arith.mulf %101, %122 : vector<32x32xf32>
    %124 = arith.truncf %123 : vector<32x32xf32> to vector<32x32xbf16>
    %125 = arith.truncf %121 : vector<32x32xf32> to vector<32x32xbf16>
    %cst_71 = arith.constant dense<0.000000e+00> : vector<32x32xf32>
    %126 = tpu.matmul %125, %124, %cst_71 {dimension_numbers = #tpu.dot_dimension_numbers<[1], [0], [0], [1], [0, 0, 1, 1], [], []>} : vector<32x32xbf16>, vector<32x32xbf16>, vector<32x32xf32> -> vector<32x32xf32>
    %127 = arith.addf %105, %126 : vector<32x32xf32>
    %128 = vector.extract_strided_slice %51 {offsets = [1, 0], sizes = [1, 32], strides = [1, 1]} : vector<2x32xf32> to vector<1x32xf32>
    %129 = vector.broadcast %128 : vector<1x32xf32> to vector<32x32xf32>
    %130 = arith.mulf %103, %129 : vector<32x32xf32>
    %131 = arith.truncf %130 : vector<32x32xf32> to vector<32x32xbf16>
    %cst_72 = arith.constant dense<0.000000e+00> : vector<32x32xf32>
    %132 = tpu.matmul %131, %104, %cst_72 {dimension_numbers = #tpu.dot_dimension_numbers<[1], [1], [0], [0], [0, 0, 1, 0], [], []>} : vector<32x32xbf16>, vector<32x32xbf16>, vector<32x32xf32> -> vector<32x32xf32>
    %133 = arith.addf %132, %50 : vector<32x32xf32>
    %cst_73 = arith.constant dense<0xFF800000> : vector<32xf32>
    %134 = vector.multi_reduction <maximumf>, %133, %cst_73 [1] : vector<32x32xf32> to vector<32xf32>
    %135 = vector.shape_cast %134 : vector<32xf32> to vector<32x1xf32>
    %136 = vector.broadcast %135 : vector<32x1xf32> to vector<32x32xf32>
    %137 = arith.subf %133, %136 : vector<32x32xf32>
    %138 = math.exp %137 : vector<32x32xf32>
    %cst_74 = arith.constant dense<0.000000e+00> : vector<32xf32>
    %139 = vector.multi_reduction <add>, %138, %cst_74 [1] : vector<32x32xf32> to vector<32xf32>
    %140 = vector.shape_cast %139 : vector<32xf32> to vector<32x1xf32>
    %141 = tpu.reciprocal %140 {approx = true} : vector<32x1xf32> -> vector<32x1xf32>
    %142 = vector.broadcast %141 : vector<32x1xf32> to vector<32x32xf32>
    %143 = arith.mulf %138, %142 : vector<32x32xf32>
    %144 = vector.broadcast %128 : vector<1x32xf32> to vector<32x32xf32>
    %145 = arith.mulf %101, %144 : vector<32x32xf32>
    %146 = arith.truncf %145 : vector<32x32xf32> to vector<32x32xbf16>
    %147 = arith.truncf %143 : vector<32x32xf32> to vector<32x32xbf16>
    %cst_75 = arith.constant dense<0.000000e+00> : vector<32x32xf32>
    %148 = tpu.matmul %147, %146, %cst_75 {dimension_numbers = #tpu.dot_dimension_numbers<[1], [0], [0], [1], [0, 0, 1, 1], [], []>} : vector<32x32xbf16>, vector<32x32xbf16>, vector<32x32xf32> -> vector<32x32xf32>
    %149 = arith.addf %127, %148 : vector<32x32xf32>
    %150 = arith.truncf %149 : vector<32x32xf32> to vector<32x32xbf16>
    %c0_76 = arith.constant 0 : index
    %c0_77 = arith.constant 0 : index
    %c0_78 = arith.constant 0 : index
    %151 = vector.load %arg16[%c0_76, %c0_77, %c0_78] : memref<2x32x32xbf16, #tpu.memory_space<vmem>>, vector<1x32x32xbf16>
    %152 = vector.shape_cast %151 : vector<1x32x32xbf16> to vector<32x32xbf16>
    %cst_79 = arith.constant dense<0.000000e+00> : vector<32x32xf32>
    %153 = tpu.matmul %150, %152, %cst_79 {dimension_numbers = #tpu.dot_dimension_numbers<[1], [0], [0], [1], [0, 0, 1, 1], [], []>} : vector<32x32xbf16>, vector<32x32xbf16>, vector<32x32xf32> -> vector<32x32xf32>
    %c0_80 = arith.constant 0 : index
    %c0_81 = arith.constant 0 : index
    %c0_82 = arith.constant 0 : index
    %154 = vector.load %arg17[%c0_80, %c0_81, %c0_82] : memref<2x1x32xf32, #tpu.memory_space<vmem>>, vector<1x1x32xf32>
    %155 = vector.shape_cast %154 : vector<1x1x32xf32> to vector<1x32xf32>
    %156 = vector.broadcast %155 : vector<1x32xf32> to vector<32x32xf32>
    %157 = arith.addf %153, %156 : vector<32x32xf32>
    %158 = arith.addf %53, %157 : vector<32x32xf32>
    %159 = vector.extract_strided_slice %55 {offsets = [2, 0], sizes = [1, 32], strides = [1, 1]} : vector<4x32xf32> to vector<1x32xf32>
    %160 = vector.extract_strided_slice %55 {offsets = [3, 0], sizes = [1, 32], strides = [1, 1]} : vector<4x32xf32> to vector<1x32xf32>
    %cst_83 = arith.constant dense<0.000000e+00> : vector<32xf32>
    %161 = vector.multi_reduction <add>, %158, %cst_83 [1] : vector<32x32xf32> to vector<32xf32>
    %162 = vector.shape_cast %161 : vector<32xf32> to vector<32x1xf32>
    %cst_84 = arith.constant 3.200000e+01 : f32
    %163 = vector.broadcast %cst_84 : f32 to vector<32x1xf32>
    %164 = arith.divf %162, %163 : vector<32x1xf32>
    %165 = vector.broadcast %164 : vector<32x1xf32> to vector<32x32xf32>
    %166 = arith.subf %158, %165 : vector<32x32xf32>
    %167 = arith.mulf %166, %166 : vector<32x32xf32>
    %cst_85 = arith.constant dense<0.000000e+00> : vector<32xf32>
    %168 = vector.multi_reduction <add>, %167, %cst_85 [1] : vector<32x32xf32> to vector<32xf32>
    %169 = vector.shape_cast %168 : vector<32xf32> to vector<32x1xf32>
    %cst_86 = arith.constant 3.200000e+01 : f32
    %170 = vector.broadcast %cst_86 : f32 to vector<32x1xf32>
    %171 = arith.divf %169, %170 : vector<32x1xf32>
    %172 = vector.broadcast %164 : vector<32x1xf32> to vector<32x32xf32>
    %173 = arith.subf %158, %172 : vector<32x32xf32>
    %cst_87 = arith.constant 9.99999974E-6 : f32
    %174 = vector.broadcast %cst_87 : f32 to vector<32x1xf32>
    %175 = arith.addf %171, %174 : vector<32x1xf32>
    %176 = math.rsqrt %175 : vector<32x1xf32>
    %177 = vector.broadcast %176 : vector<32x1xf32> to vector<32x32xf32>
    %178 = arith.mulf %173, %177 : vector<32x32xf32>
    %179 = vector.broadcast %159 : vector<1x32xf32> to vector<32x32xf32>
    %180 = arith.mulf %178, %179 : vector<32x32xf32>
    %181 = vector.broadcast %160 : vector<1x32xf32> to vector<32x32xf32>
    %182 = arith.addf %180, %181 : vector<32x32xf32>
    %183 = arith.truncf %182 : vector<32x32xf32> to vector<32x32xbf16>
    %c0_88 = arith.constant 0 : index
    %c0_89 = arith.constant 0 : index
    %c0_90 = arith.constant 0 : index
    %184 = vector.load %arg18[%c0_88, %c0_89, %c0_90] : memref<2x32x128xbf16, #tpu.memory_space<vmem>>, vector<1x32x128xbf16>
    %185 = vector.shape_cast %184 : vector<1x32x128xbf16> to vector<32x128xbf16>
    %cst_91 = arith.constant dense<0.000000e+00> : vector<32x128xf32>
    %186 = tpu.matmul %183, %185, %cst_91 {dimension_numbers = #tpu.dot_dimension_numbers<[1], [0], [0], [1], [0, 0, 1, 1], [], []>} : vector<32x32xbf16>, vector<32x128xbf16>, vector<32x128xf32> -> vector<32x128xf32>
    %c0_92 = arith.constant 0 : index
    %c0_93 = arith.constant 0 : index
    %c0_94 = arith.constant 0 : index
    %187 = vector.load %arg19[%c0_92, %c0_93, %c0_94] : memref<2x1x128xf32, #tpu.memory_space<vmem>>, vector<1x1x128xf32>
    %188 = vector.shape_cast %187 : vector<1x1x128xf32> to vector<1x128xf32>
    %189 = vector.broadcast %188 : vector<1x128xf32> to vector<32x128xf32>
    %190 = arith.addf %186, %189 : vector<32x128xf32>
    %cst_95 = arith.constant 5.000000e-01 : f32
    %191 = vector.broadcast %cst_95 : f32 to vector<32x128xf32>
    %192 = arith.mulf %191, %190 : vector<32x128xf32>
    %193 = arith.mulf %190, %190 : vector<32x128xf32>
    %194 = arith.mulf %190, %193 : vector<32x128xf32>
    %cst_96 = arith.constant 4.471500e-02 : f32
    %195 = vector.broadcast %cst_96 : f32 to vector<32x128xf32>
    %196 = arith.mulf %195, %194 : vector<32x128xf32>
    %197 = arith.addf %190, %196 : vector<32x128xf32>
    %cst_97 = arith.constant 0.797884583 : f32
    %198 = vector.broadcast %cst_97 : f32 to vector<32x128xf32>
    %199 = arith.mulf %198, %197 : vector<32x128xf32>
    %200 = math.tanh %199 : vector<32x128xf32>
    %cst_98 = arith.constant 1.000000e+00 : f32
    %201 = vector.broadcast %cst_98 : f32 to vector<32x128xf32>
    %202 = arith.addf %201, %200 : vector<32x128xf32>
    %203 = arith.mulf %192, %202 : vector<32x128xf32>
    %204 = arith.truncf %203 : vector<32x128xf32> to vector<32x128xbf16>
    %c0_99 = arith.constant 0 : index
    %c0_100 = arith.constant 0 : index
    %c0_101 = arith.constant 0 : index
    %205 = vector.load %arg20[%c0_99, %c0_100, %c0_101] : memref<2x128x32xbf16, #tpu.memory_space<vmem>>, vector<1x128x32xbf16>
    %206 = vector.shape_cast %205 : vector<1x128x32xbf16> to vector<128x32xbf16>
    %cst_102 = arith.constant dense<0.000000e+00> : vector<32x32xf32>
    %207 = tpu.matmul %204, %206, %cst_102 {dimension_numbers = #tpu.dot_dimension_numbers<[1], [0], [0], [1], [0, 0, 1, 1], [], []>} : vector<32x128xbf16>, vector<128x32xbf16>, vector<32x32xf32> -> vector<32x32xf32>
    %c0_103 = arith.constant 0 : index
    %c0_104 = arith.constant 0 : index
    %c0_105 = arith.constant 0 : index
    %208 = vector.load %arg21[%c0_103, %c0_104, %c0_105] : memref<2x1x32xf32, #tpu.memory_space<vmem>>, vector<1x1x32xf32>
    %209 = vector.shape_cast %208 : vector<1x1x32xf32> to vector<1x32xf32>
    %210 = vector.broadcast %209 : vector<1x32xf32> to vector<32x32xf32>
    %211 = arith.addf %207, %210 : vector<32x32xf32>
    %212 = arith.addf %157, %211 : vector<32x32xf32>
    %213 = vector.broadcast %52 : vector<32x1xf32> to vector<32x32xf32>
    %214 = arith.mulf %213, %212 : vector<32x32xf32>
    %215 = arith.addf %53, %214 : vector<32x32xf32>
    %c0_106 = arith.constant 0 : index
    %c0_107 = arith.constant 0 : index
    %216 = vector.load %arg29[%c0_106, %c0_107] : memref<32x32xf32, #tpu.memory_space<vmem>>, vector<32x32xf32>
    tpu.vector_store %arg29[%c0_106, %c0_107], %215 {strides = array<i32>} : memref<32x32xf32, #tpu.memory_space<vmem>>, vector<32x32xf32>,
    %c0_108 = arith.constant 0 : index
    %c0_109 = arith.constant 0 : index
    %217 = vector.load %arg29[%c0_108, %c0_109] : memref<32x32xf32, #tpu.memory_space<vmem>>, vector<32x32xf32>
    %c1 = arith.constant 1 : index
    %c0_110 = arith.constant 0 : index
    %c0_111 = arith.constant 0 : index
    %218 = vector.load %arg9[%c1, %c0_110, %c0_111] : memref<2x4x32xf32, #tpu.memory_space<vmem>>, vector<1x4x32xf32>
    %219 = vector.shape_cast %218 : vector<1x4x32xf32> to vector<4x32xf32>
    %220 = vector.extract_strided_slice %219 {offsets = [0, 0], sizes = [1, 32], strides = [1, 1]} : vector<4x32xf32> to vector<1x32xf32>
    %221 = vector.extract_strided_slice %219 {offsets = [1, 0], sizes = [1, 32], strides = [1, 1]} : vector<4x32xf32> to vector<1x32xf32>
    %cst_112 = arith.constant dense<0.000000e+00> : vector<32xf32>
    %222 = vector.multi_reduction <add>, %217, %cst_112 [1] : vector<32x32xf32> to vector<32xf32>
    %223 = vector.shape_cast %222 : vector<32xf32> to vector<32x1xf32>
    %cst_113 = arith.constant 3.200000e+01 : f32
    %224 = vector.broadcast %cst_113 : f32 to vector<32x1xf32>
    %225 = arith.divf %223, %224 : vector<32x1xf32>
    %226 = vector.broadcast %225 : vector<32x1xf32> to vector<32x32xf32>
    %227 = arith.subf %217, %226 : vector<32x32xf32>
    %228 = arith.mulf %227, %227 : vector<32x32xf32>
    %cst_114 = arith.constant dense<0.000000e+00> : vector<32xf32>
    %229 = vector.multi_reduction <add>, %228, %cst_114 [1] : vector<32x32xf32> to vector<32xf32>
    %230 = vector.shape_cast %229 : vector<32xf32> to vector<32x1xf32>
    %cst_115 = arith.constant 3.200000e+01 : f32
    %231 = vector.broadcast %cst_115 : f32 to vector<32x1xf32>
    %232 = arith.divf %230, %231 : vector<32x1xf32>
    %233 = vector.broadcast %225 : vector<32x1xf32> to vector<32x32xf32>
    %234 = arith.subf %217, %233 : vector<32x32xf32>
    %cst_116 = arith.constant 9.99999974E-6 : f32
    %235 = vector.broadcast %cst_116 : f32 to vector<32x1xf32>
    %236 = arith.addf %232, %235 : vector<32x1xf32>
    %237 = math.rsqrt %236 : vector<32x1xf32>
    %238 = vector.broadcast %237 : vector<32x1xf32> to vector<32x32xf32>
    %239 = arith.mulf %234, %238 : vector<32x32xf32>
    %240 = vector.broadcast %220 : vector<1x32xf32> to vector<32x32xf32>
    %241 = arith.mulf %239, %240 : vector<32x32xf32>
    %242 = vector.broadcast %221 : vector<1x32xf32> to vector<32x32xf32>
    %243 = arith.addf %241, %242 : vector<32x32xf32>
    %244 = arith.truncf %243 : vector<32x32xf32> to vector<32x32xbf16>
    %c1_117 = arith.constant 1 : index
    %c0_118 = arith.constant 0 : index
    %c0_119 = arith.constant 0 : index
    %245 = vector.load %arg10[%c1_117, %c0_118, %c0_119] : memref<2x32x32xbf16, #tpu.memory_space<vmem>>, vector<1x32x32xbf16>
    %246 = vector.shape_cast %245 : vector<1x32x32xbf16> to vector<32x32xbf16>
    %cst_120 = arith.constant dense<0.000000e+00> : vector<32x32xf32>
    %247 = tpu.matmul %244, %246, %cst_120 {dimension_numbers = #tpu.dot_dimension_numbers<[1], [0], [0], [1], [0, 0, 1, 1], [], []>} : vector<32x32xbf16>, vector<32x32xbf16>, vector<32x32xf32> -> vector<32x32xf32>
    %c1_121 = arith.constant 1 : index
    %c0_122 = arith.constant 0 : index
    %c0_123 = arith.constant 0 : index
    %248 = vector.load %arg13[%c1_121, %c0_122, %c0_123] : memref<2x1x32xf32, #tpu.memory_space<vmem>>, vector<1x1x32xf32>
    %249 = vector.shape_cast %248 : vector<1x1x32xf32> to vector<1x32xf32>
    %250 = vector.broadcast %249 : vector<1x32xf32> to vector<32x32xf32>
    %251 = arith.addf %247, %250 : vector<32x32xf32>
    %c1_124 = arith.constant 1 : index
    %c0_125 = arith.constant 0 : index
    %c0_126 = arith.constant 0 : index
    %252 = vector.load %arg11[%c1_124, %c0_125, %c0_126] : memref<2x32x32xbf16, #tpu.memory_space<vmem>>, vector<1x32x32xbf16>
    %253 = vector.shape_cast %252 : vector<1x32x32xbf16> to vector<32x32xbf16>
    %cst_127 = arith.constant dense<0.000000e+00> : vector<32x32xf32>
    %254 = tpu.matmul %244, %253, %cst_127 {dimension_numbers = #tpu.dot_dimension_numbers<[1], [0], [0], [1], [0, 0, 1, 1], [], []>} : vector<32x32xbf16>, vector<32x32xbf16>, vector<32x32xf32> -> vector<32x32xf32>
    %c1_128 = arith.constant 1 : index
    %c0_129 = arith.constant 0 : index
    %c0_130 = arith.constant 0 : index
    %255 = vector.load %arg14[%c1_128, %c0_129, %c0_130] : memref<2x1x32xf32, #tpu.memory_space<vmem>>, vector<1x1x32xf32>
    %256 = vector.shape_cast %255 : vector<1x1x32xf32> to vector<1x32xf32>
    %257 = vector.broadcast %256 : vector<1x32xf32> to vector<32x32xf32>
    %258 = arith.addf %254, %257 : vector<32x32xf32>
    %c1_131 = arith.constant 1 : index
    %c0_132 = arith.constant 0 : index
    %c0_133 = arith.constant 0 : index
    %259 = vector.load %arg12[%c1_131, %c0_132, %c0_133] : memref<2x32x32xbf16, #tpu.memory_space<vmem>>, vector<1x32x32xbf16>
    %260 = vector.shape_cast %259 : vector<1x32x32xbf16> to vector<32x32xbf16>
    %cst_134 = arith.constant dense<0.000000e+00> : vector<32x32xf32>
    %261 = tpu.matmul %244, %260, %cst_134 {dimension_numbers = #tpu.dot_dimension_numbers<[1], [0], [0], [1], [0, 0, 1, 1], [], []>} : vector<32x32xbf16>, vector<32x32xbf16>, vector<32x32xf32> -> vector<32x32xf32>
    %c1_135 = arith.constant 1 : index
    %c0_136 = arith.constant 0 : index
    %c0_137 = arith.constant 0 : index
    %262 = vector.load %arg15[%c1_135, %c0_136, %c0_137] : memref<2x1x32xf32, #tpu.memory_space<vmem>>, vector<1x1x32xf32>
    %263 = vector.shape_cast %262 : vector<1x1x32xf32> to vector<1x32xf32>
    %264 = vector.broadcast %263 : vector<1x32xf32> to vector<32x32xf32>
    %265 = arith.addf %261, %264 : vector<32x32xf32>
    %cst_138 = arith.constant 2.500000e-01 : f32
    %266 = vector.broadcast %cst_138 : f32 to vector<32x32xf32>
    %267 = arith.mulf %251, %266 : vector<32x32xf32>
    %268 = arith.truncf %258 : vector<32x32xf32> to vector<32x32xbf16>
    %cst_139 = arith.constant 0.000000e+00 : f32
    %269 = vector.broadcast %cst_139 : f32 to vector<32x32xf32>
    %270 = vector.extract_strided_slice %51 {offsets = [0, 0], sizes = [1, 32], strides = [1, 1]} : vector<2x32xf32> to vector<1x32xf32>
    %271 = vector.broadcast %270 : vector<1x32xf32> to vector<32x32xf32>
    %272 = arith.mulf %267, %271 : vector<32x32xf32>
    %273 = arith.truncf %272 : vector<32x32xf32> to vector<32x32xbf16>
    %cst_140 = arith.constant dense<0.000000e+00> : vector<32x32xf32>
    %274 = tpu.matmul %273, %268, %cst_140 {dimension_numbers = #tpu.dot_dimension_numbers<[1], [1], [0], [0], [0, 0, 1, 0], [], []>} : vector<32x32xbf16>, vector<32x32xbf16>, vector<32x32xf32> -> vector<32x32xf32>
    %275 = arith.addf %274, %50 : vector<32x32xf32>
    %cst_141 = arith.constant dense<0xFF800000> : vector<32xf32>
    %276 = vector.multi_reduction <maximumf>, %275, %cst_141 [1] : vector<32x32xf32> to vector<32xf32>
    %277 = vector.shape_cast %276 : vector<32xf32> to vector<32x1xf32>
    %278 = vector.broadcast %277 : vector<32x1xf32> to vector<32x32xf32>
    %279 = arith.subf %275, %278 : vector<32x32xf32>
    %280 = math.exp %279 : vector<32x32xf32>
    %cst_142 = arith.constant dense<0.000000e+00> : vector<32xf32>
    %281 = vector.multi_reduction <add>, %280, %cst_142 [1] : vector<32x32xf32> to vector<32xf32>
    %282 = vector.shape_cast %281 : vector<32xf32> to vector<32x1xf32>
    %283 = tpu.reciprocal %282 {approx = true} : vector<32x1xf32> -> vector<32x1xf32>
    %284 = vector.broadcast %283 : vector<32x1xf32> to vector<32x32xf32>
    %285 = arith.mulf %280, %284 : vector<32x32xf32>
    %286 = vector.broadcast %270 : vector<1x32xf32> to vector<32x32xf32>
    %287 = arith.mulf %265, %286 : vector<32x32xf32>
    %288 = arith.truncf %287 : vector<32x32xf32> to vector<32x32xbf16>
    %289 = arith.truncf %285 : vector<32x32xf32> to vector<32x32xbf16>
    %cst_143 = arith.constant dense<0.000000e+00> : vector<32x32xf32>
    %290 = tpu.matmul %289, %288, %cst_143 {dimension_numbers = #tpu.dot_dimension_numbers<[1], [0], [0], [1], [0, 0, 1, 1], [], []>} : vector<32x32xbf16>, vector<32x32xbf16>, vector<32x32xf32> -> vector<32x32xf32>
    %291 = arith.addf %269, %290 : vector<32x32xf32>
    %292 = vector.extract_strided_slice %51 {offsets = [1, 0], sizes = [1, 32], strides = [1, 1]} : vector<2x32xf32> to vector<1x32xf32>
    %293 = vector.broadcast %292 : vector<1x32xf32> to vector<32x32xf32>
    %294 = arith.mulf %267, %293 : vector<32x32xf32>
    %295 = arith.truncf %294 : vector<32x32xf32> to vector<32x32xbf16>
    %cst_144 = arith.constant dense<0.000000e+00> : vector<32x32xf32>
    %296 = tpu.matmul %295, %268, %cst_144 {dimension_numbers = #tpu.dot_dimension_numbers<[1], [1], [0], [0], [0, 0, 1, 0], [], []>} : vector<32x32xbf16>, vector<32x32xbf16>, vector<32x32xf32> -> vector<32x32xf32>
    %297 = arith.addf %296, %50 : vector<32x32xf32>
    %cst_145 = arith.constant dense<0xFF800000> : vector<32xf32>
    %298 = vector.multi_reduction <maximumf>, %297, %cst_145 [1] : vector<32x32xf32> to vector<32xf32>
    %299 = vector.shape_cast %298 : vector<32xf32> to vector<32x1xf32>
    %300 = vector.broadcast %299 : vector<32x1xf32> to vector<32x32xf32>
    %301 = arith.subf %297, %300 : vector<32x32xf32>
    %302 = math.exp %301 : vector<32x32xf32>
    %cst_146 = arith.constant dense<0.000000e+00> : vector<32xf32>
    %303 = vector.multi_reduction <add>, %302, %cst_146 [1] : vector<32x32xf32> to vector<32xf32>
    %304 = vector.shape_cast %303 : vector<32xf32> to vector<32x1xf32>
    %305 = tpu.reciprocal %304 {approx = true} : vector<32x1xf32> -> vector<32x1xf32>
    %306 = vector.broadcast %305 : vector<32x1xf32> to vector<32x32xf32>
    %307 = arith.mulf %302, %306 : vector<32x32xf32>
    %308 = vector.broadcast %292 : vector<1x32xf32> to vector<32x32xf32>
    %309 = arith.mulf %265, %308 : vector<32x32xf32>
    %310 = arith.truncf %309 : vector<32x32xf32> to vector<32x32xbf16>
    %311 = arith.truncf %307 : vector<32x32xf32> to vector<32x32xbf16>
    %cst_147 = arith.constant dense<0.000000e+00> : vector<32x32xf32>
    %312 = tpu.matmul %311, %310, %cst_147 {dimension_numbers = #tpu.dot_dimension_numbers<[1], [0], [0], [1], [0, 0, 1, 1], [], []>} : vector<32x32xbf16>, vector<32x32xbf16>, vector<32x32xf32> -> vector<32x32xf32>
    %313 = arith.addf %291, %312 : vector<32x32xf32>
    %314 = arith.truncf %313 : vector<32x32xf32> to vector<32x32xbf16>
    %c1_148 = arith.constant 1 : index
    %c0_149 = arith.constant 0 : index
    %c0_150 = arith.constant 0 : index
    %315 = vector.load %arg16[%c1_148, %c0_149, %c0_150] : memref<2x32x32xbf16, #tpu.memory_space<vmem>>, vector<1x32x32xbf16>
    %316 = vector.shape_cast %315 : vector<1x32x32xbf16> to vector<32x32xbf16>
    %cst_151 = arith.constant dense<0.000000e+00> : vector<32x32xf32>
    %317 = tpu.matmul %314, %316, %cst_151 {dimension_numbers = #tpu.dot_dimension_numbers<[1], [0], [0], [1], [0, 0, 1, 1], [], []>} : vector<32x32xbf16>, vector<32x32xbf16>, vector<32x32xf32> -> vector<32x32xf32>
    %c1_152 = arith.constant 1 : index
    %c0_153 = arith.constant 0 : index
    %c0_154 = arith.constant 0 : index
    %318 = vector.load %arg17[%c1_152, %c0_153, %c0_154] : memref<2x1x32xf32, #tpu.memory_space<vmem>>, vector<1x1x32xf32>
    %319 = vector.shape_cast %318 : vector<1x1x32xf32> to vector<1x32xf32>
    %320 = vector.broadcast %319 : vector<1x32xf32> to vector<32x32xf32>
    %321 = arith.addf %317, %320 : vector<32x32xf32>
    %322 = arith.addf %217, %321 : vector<32x32xf32>
    %323 = vector.extract_strided_slice %219 {offsets = [2, 0], sizes = [1, 32], strides = [1, 1]} : vector<4x32xf32> to vector<1x32xf32>
    %324 = vector.extract_strided_slice %219 {offsets = [3, 0], sizes = [1, 32], strides = [1, 1]} : vector<4x32xf32> to vector<1x32xf32>
    %cst_155 = arith.constant dense<0.000000e+00> : vector<32xf32>
    %325 = vector.multi_reduction <add>, %322, %cst_155 [1] : vector<32x32xf32> to vector<32xf32>
    %326 = vector.shape_cast %325 : vector<32xf32> to vector<32x1xf32>
    %cst_156 = arith.constant 3.200000e+01 : f32
    %327 = vector.broadcast %cst_156 : f32 to vector<32x1xf32>
    %328 = arith.divf %326, %327 : vector<32x1xf32>
    %329 = vector.broadcast %328 : vector<32x1xf32> to vector<32x32xf32>
    %330 = arith.subf %322, %329 : vector<32x32xf32>
    %331 = arith.mulf %330, %330 : vector<32x32xf32>
    %cst_157 = arith.constant dense<0.000000e+00> : vector<32xf32>
    %332 = vector.multi_reduction <add>, %331, %cst_157 [1] : vector<32x32xf32> to vector<32xf32>
    %333 = vector.shape_cast %332 : vector<32xf32> to vector<32x1xf32>
    %cst_158 = arith.constant 3.200000e+01 : f32
    %334 = vector.broadcast %cst_158 : f32 to vector<32x1xf32>
    %335 = arith.divf %333, %334 : vector<32x1xf32>
    %336 = vector.broadcast %328 : vector<32x1xf32> to vector<32x32xf32>
    %337 = arith.subf %322, %336 : vector<32x32xf32>
    %cst_159 = arith.constant 9.99999974E-6 : f32
    %338 = vector.broadcast %cst_159 : f32 to vector<32x1xf32>
    %339 = arith.addf %335, %338 : vector<32x1xf32>
    %340 = math.rsqrt %339 : vector<32x1xf32>
    %341 = vector.broadcast %340 : vector<32x1xf32> to vector<32x32xf32>
    %342 = arith.mulf %337, %341 : vector<32x32xf32>
    %343 = vector.broadcast %323 : vector<1x32xf32> to vector<32x32xf32>
    %344 = arith.mulf %342, %343 : vector<32x32xf32>
    %345 = vector.broadcast %324 : vector<1x32xf32> to vector<32x32xf32>
    %346 = arith.addf %344, %345 : vector<32x32xf32>
    %347 = arith.truncf %346 : vector<32x32xf32> to vector<32x32xbf16>
    %c1_160 = arith.constant 1 : index
    %c0_161 = arith.constant 0 : index
    %c0_162 = arith.constant 0 : index
    %348 = vector.load %arg18[%c1_160, %c0_161, %c0_162] : memref<2x32x128xbf16, #tpu.memory_space<vmem>>, vector<1x32x128xbf16>
    %349 = vector.shape_cast %348 : vector<1x32x128xbf16> to vector<32x128xbf16>
    %cst_163 = arith.constant dense<0.000000e+00> : vector<32x128xf32>
    %350 = tpu.matmul %347, %349, %cst_163 {dimension_numbers = #tpu.dot_dimension_numbers<[1], [0], [0], [1], [0, 0, 1, 1], [], []>} : vector<32x32xbf16>, vector<32x128xbf16>, vector<32x128xf32> -> vector<32x128xf32>
    %c1_164 = arith.constant 1 : index
    %c0_165 = arith.constant 0 : index
    %c0_166 = arith.constant 0 : index
    %351 = vector.load %arg19[%c1_164, %c0_165, %c0_166] : memref<2x1x128xf32, #tpu.memory_space<vmem>>, vector<1x1x128xf32>
    %352 = vector.shape_cast %351 : vector<1x1x128xf32> to vector<1x128xf32>
    %353 = vector.broadcast %352 : vector<1x128xf32> to vector<32x128xf32>
    %354 = arith.addf %350, %353 : vector<32x128xf32>
    %cst_167 = arith.constant 5.000000e-01 : f32
    %355 = vector.broadcast %cst_167 : f32 to vector<32x128xf32>
    %356 = arith.mulf %355, %354 : vector<32x128xf32>
    %357 = arith.mulf %354, %354 : vector<32x128xf32>
    %358 = arith.mulf %354, %357 : vector<32x128xf32>
    %cst_168 = arith.constant 4.471500e-02 : f32
    %359 = vector.broadcast %cst_168 : f32 to vector<32x128xf32>
    %360 = arith.mulf %359, %358 : vector<32x128xf32>
    %361 = arith.addf %354, %360 : vector<32x128xf32>
    %cst_169 = arith.constant 0.797884583 : f32
    %362 = vector.broadcast %cst_169 : f32 to vector<32x128xf32>
    %363 = arith.mulf %362, %361 : vector<32x128xf32>
    %364 = math.tanh %363 : vector<32x128xf32>
    %cst_170 = arith.constant 1.000000e+00 : f32
    %365 = vector.broadcast %cst_170 : f32 to vector<32x128xf32>
    %366 = arith.addf %365, %364 : vector<32x128xf32>
    %367 = arith.mulf %356, %366 : vector<32x128xf32>
    %368 = arith.truncf %367 : vector<32x128xf32> to vector<32x128xbf16>
    %c1_171 = arith.constant 1 : index
    %c0_172 = arith.constant 0 : index
    %c0_173 = arith.constant 0 : index
    %369 = vector.load %arg20[%c1_171, %c0_172, %c0_173] : memref<2x128x32xbf16, #tpu.memory_space<vmem>>, vector<1x128x32xbf16>
    %370 = vector.shape_cast %369 : vector<1x128x32xbf16> to vector<128x32xbf16>
    %cst_174 = arith.constant dense<0.000000e+00> : vector<32x32xf32>
    %371 = tpu.matmul %368, %370, %cst_174 {dimension_numbers = #tpu.dot_dimension_numbers<[1], [0], [0], [1], [0, 0, 1, 1], [], []>} : vector<32x128xbf16>, vector<128x32xbf16>, vector<32x32xf32> -> vector<32x32xf32>
    %c1_175 = arith.constant 1 : index
    %c0_176 = arith.constant 0 : index
    %c0_177 = arith.constant 0 : index
    %372 = vector.load %arg21[%c1_175, %c0_176, %c0_177] : memref<2x1x32xf32, #tpu.memory_space<vmem>>, vector<1x1x32xf32>
    %373 = vector.shape_cast %372 : vector<1x1x32xf32> to vector<1x32xf32>
    %374 = vector.broadcast %373 : vector<1x32xf32> to vector<32x32xf32>
    %375 = arith.addf %371, %374 : vector<32x32xf32>
    %376 = arith.addf %321, %375 : vector<32x32xf32>
    %377 = vector.broadcast %52 : vector<32x1xf32> to vector<32x32xf32>
    %378 = arith.mulf %377, %376 : vector<32x32xf32>
    %379 = arith.addf %217, %378 : vector<32x32xf32>
    %c0_178 = arith.constant 0 : index
    %c0_179 = arith.constant 0 : index
    %380 = vector.load %arg29[%c0_178, %c0_179] : memref<32x32xf32, #tpu.memory_space<vmem>>, vector<32x32xf32>
    tpu.vector_store %arg29[%c0_178, %c0_179], %379 {strides = array<i32>} : memref<32x32xf32, #tpu.memory_space<vmem>>, vector<32x32xf32>,
    %c0_180 = arith.constant 0 : index
    %c0_181 = arith.constant 0 : index
    %381 = vector.load %arg22[%c0_180, %c0_181] : memref<2x32xf32, #tpu.memory_space<vmem>>, vector<2x32xf32>
    %c0_182 = arith.constant 0 : index
    %c0_183 = arith.constant 0 : index
    %382 = vector.load %arg23[%c0_182, %c0_183] : memref<32x128xbf16, #tpu.memory_space<vmem>>, vector<32x128xbf16>
    %c0_184 = arith.constant 0 : index
    %c0_185 = arith.constant 0 : index
    %383 = vector.load %arg24[%c0_184, %c0_185] : memref<1x128xf32, #tpu.memory_space<vmem>>, vector<1x128xf32>
    %c0_186 = arith.constant 0 : index
    %c0_187 = arith.constant 0 : index
    %384 = vector.load %arg29[%c0_186, %c0_187] : memref<32x32xf32, #tpu.memory_space<vmem>>, vector<8x32xf32>
    %385 = vector.extract_strided_slice %381 {offsets = [0, 0], sizes = [1, 32], strides = [1, 1]} : vector<2x32xf32> to vector<1x32xf32>
    %386 = vector.extract_strided_slice %381 {offsets = [1, 0], sizes = [1, 32], strides = [1, 1]} : vector<2x32xf32> to vector<1x32xf32>
    %cst_188 = arith.constant dense<0.000000e+00> : vector<8xf32>
    %387 = vector.multi_reduction <add>, %384, %cst_188 [1] : vector<8x32xf32> to vector<8xf32>
    %388 = vector.shape_cast %387 : vector<8xf32> to vector<8x1xf32>
    %cst_189 = arith.constant 3.200000e+01 : f32
    %389 = vector.broadcast %cst_189 : f32 to vector<8x1xf32>
    %390 = arith.divf %388, %389 : vector<8x1xf32>
    %391 = vector.broadcast %390 : vector<8x1xf32> to vector<8x32xf32>
    %392 = arith.subf %384, %391 : vector<8x32xf32>
    %393 = arith.mulf %392, %392 : vector<8x32xf32>
    %cst_190 = arith.constant dense<0.000000e+00> : vector<8xf32>
    %394 = vector.multi_reduction <add>, %393, %cst_190 [1] : vector<8x32xf32> to vector<8xf32>
    %395 = vector.shape_cast %394 : vector<8xf32> to vector<8x1xf32>
    %cst_191 = arith.constant 3.200000e+01 : f32
    %396 = vector.broadcast %cst_191 : f32 to vector<8x1xf32>
    %397 = arith.divf %395, %396 : vector<8x1xf32>
    %398 = vector.broadcast %390 : vector<8x1xf32> to vector<8x32xf32>
    %399 = arith.subf %384, %398 : vector<8x32xf32>
    %cst_192 = arith.constant 9.99999974E-6 : f32
    %400 = vector.broadcast %cst_192 : f32 to vector<8x1xf32>
    %401 = arith.addf %397, %400 : vector<8x1xf32>
    %402 = math.rsqrt %401 : vector<8x1xf32>
    %403 = vector.broadcast %402 : vector<8x1xf32> to vector<8x32xf32>
    %404 = arith.mulf %399, %403 : vector<8x32xf32>
    %405 = vector.broadcast %385 : vector<1x32xf32> to vector<8x32xf32>
    %406 = arith.mulf %404, %405 : vector<8x32xf32>
    %407 = vector.broadcast %386 : vector<1x32xf32> to vector<8x32xf32>
    %408 = arith.addf %406, %407 : vector<8x32xf32>
    %409 = arith.truncf %408 : vector<8x32xf32> to vector<8x32xbf16>
    %cst_193 = arith.constant dense<0.000000e+00> : vector<8x128xf32>
    %410 = tpu.matmul %409, %382, %cst_193 {dimension_numbers = #tpu.dot_dimension_numbers<[1], [0], [0], [1], [0, 0, 1, 1], [], []>} : vector<8x32xbf16>, vector<32x128xbf16>, vector<8x128xf32> -> vector<8x128xf32>
    %411 = vector.broadcast %383 : vector<1x128xf32> to vector<8x128xf32>
    %412 = arith.addf %410, %411 : vector<8x128xf32>
    %c0_194 = arith.constant 0 : index
    %c0_195 = arith.constant 0 : index
    %413 = vector.load %arg28[%c0_194, %c0_195] : memref<16x128xf32, #tpu.memory_space<vmem>>, vector<8x128xf32>
    tpu.vector_store %arg28[%c0_194, %c0_195], %412 {strides = array<i32>} : memref<16x128xf32, #tpu.memory_space<vmem>>, vector<8x128xf32>,
    %c16_196 = arith.constant 16 : index
    %c0_197 = arith.constant 0 : index
    %414 = vector.load %arg29[%c16_196, %c0_197] : memref<32x32xf32, #tpu.memory_space<vmem>>, vector<8x32xf32>
    %415 = vector.extract_strided_slice %381 {offsets = [0, 0], sizes = [1, 32], strides = [1, 1]} : vector<2x32xf32> to vector<1x32xf32>
    %416 = vector.extract_strided_slice %381 {offsets = [1, 0], sizes = [1, 32], strides = [1, 1]} : vector<2x32xf32> to vector<1x32xf32>
    %cst_198 = arith.constant dense<0.000000e+00> : vector<8xf32>
    %417 = vector.multi_reduction <add>, %414, %cst_198 [1] : vector<8x32xf32> to vector<8xf32>
    %418 = vector.shape_cast %417 : vector<8xf32> to vector<8x1xf32>
    %cst_199 = arith.constant 3.200000e+01 : f32
    %419 = vector.broadcast %cst_199 : f32 to vector<8x1xf32>
    %420 = arith.divf %418, %419 : vector<8x1xf32>
    %421 = vector.broadcast %420 : vector<8x1xf32> to vector<8x32xf32>
    %422 = arith.subf %414, %421 : vector<8x32xf32>
    %423 = arith.mulf %422, %422 : vector<8x32xf32>
    %cst_200 = arith.constant dense<0.000000e+00> : vector<8xf32>
    %424 = vector.multi_reduction <add>, %423, %cst_200 [1] : vector<8x32xf32> to vector<8xf32>
    %425 = vector.shape_cast %424 : vector<8xf32> to vector<8x1xf32>
    %cst_201 = arith.constant 3.200000e+01 : f32
    %426 = vector.broadcast %cst_201 : f32 to vector<8x1xf32>
    %427 = arith.divf %425, %426 : vector<8x1xf32>
    %428 = vector.broadcast %420 : vector<8x1xf32> to vector<8x32xf32>
    %429 = arith.subf %414, %428 : vector<8x32xf32>
    %cst_202 = arith.constant 9.99999974E-6 : f32
    %430 = vector.broadcast %cst_202 : f32 to vector<8x1xf32>
    %431 = arith.addf %427, %430 : vector<8x1xf32>
    %432 = math.rsqrt %431 : vector<8x1xf32>
    %433 = vector.broadcast %432 : vector<8x1xf32> to vector<8x32xf32>
    %434 = arith.mulf %429, %433 : vector<8x32xf32>
    %435 = vector.broadcast %415 : vector<1x32xf32> to vector<8x32xf32>
    %436 = arith.mulf %434, %435 : vector<8x32xf32>
    %437 = vector.broadcast %416 : vector<1x32xf32> to vector<8x32xf32>
    %438 = arith.addf %436, %437 : vector<8x32xf32>
    %439 = arith.truncf %438 : vector<8x32xf32> to vector<8x32xbf16>
    %cst_203 = arith.constant dense<0.000000e+00> : vector<8x128xf32>
    %440 = tpu.matmul %439, %382, %cst_203 {dimension_numbers = #tpu.dot_dimension_numbers<[1], [0], [0], [1], [0, 0, 1, 1], [], []>} : vector<8x32xbf16>, vector<32x128xbf16>, vector<8x128xf32> -> vector<8x128xf32>
    %441 = vector.broadcast %383 : vector<1x128xf32> to vector<8x128xf32>
    %442 = arith.addf %440, %441 : vector<8x128xf32>
    %c8_204 = arith.constant 8 : index
    %c0_205 = arith.constant 0 : index
    %443 = vector.load %arg28[%c8_204, %c0_205] : memref<16x128xf32, #tpu.memory_space<vmem>>, vector<8x128xf32>
    tpu.vector_store %arg28[%c8_204, %c0_205], %442 {strides = array<i32>} : memref<16x128xf32, #tpu.memory_space<vmem>>, vector<8x128xf32>,
    return
  }
}

</mosaic_0001>

<bundles_post_ra>
// kernel: decoder_forward.1
= control target key start
LH: loop header
LB: loop body
LE: loop exit
PB: predicated region body
PF: predicated region fallthrough
CT: control target
= control target key end

     0   :  { %s3408_s0 = inlined_call_operand.vmem [shape: s32[16,1], index: 0, kind: input, shape index: {}]   ;;  %s3409_s1 = inlined_call_operand.vmem [shape: f32[2,48], index: 1, kind: input, shape index: {}]   ;;  %s3410_s2 = inlined_call_operand.vmem [shape: f32[8,64], index: 2, kind: input, shape index: {}]   ;;  %s3411_s3 = inlined_call_operand.vmem [shape: bf16[48,32], index: 3, kind: input, shape index: {}]   ;;  %s3412_s4 = inlined_call_operand.vmem [shape: f32[1,32], index: 4, kind: input, shape index: {}]   ;;  %s3413_s5 = inlined_call_operand.vmem [shape: bf16[64,32], index: 5, kind: input, shape index: {}]   ;;  %s3414_s6 = inlined_call_operand.vmem [shape: f32[1,32], index: 6, kind: input, shape index: {}]   ;;  %s3415_s7 = inlined_call_operand.vmem [shape: bf16[128,32], index: 7, kind: input, shape index: {}]   ;;  %s3416_s8 = inlined_call_operand.vmem [shape: f32[13,32], index: 8, kind: input, shape index: {}]   ;;  %s3417_s9 = inlined_call_operand.vmem [shape: f32[2,4,32], index: 9, kind: input, shape index: {}]   ;;  %s3418_s10 = inlined_call_operand.vmem [shape: bf16[2,32,32], index: 10, kind: input, shape index: {}]   ;;  %s3419_s11 = inlined_call_operand.vmem [shape: bf16[2,32,32], index: 11, kind: input, shape index: {}]   ;;  %s3420_s12 = inlined_call_operand.vmem [shape: bf16[2,32,32], index: 12, kind: input, shape index: {}]   ;;  %s3421_s13 = inlined_call_operand.vmem [shape: f32[2,1,32], index: 13, kind: input, shape index: {}]   ;;  %s3422_s14 = inlined_call_operand.vmem [shape: f32[2,1,32], index: 14, kind: input, shape index: {}]   ;;  %s3423_s15 = inlined_call_operand.vmem [shape: f32[2,1,32], index: 15, kind: input, shape index: {}]   ;;  %s3424_s16 = inlined_call_operand.vmem [shape: bf16[2,32,32], index: 16, kind: input, shape index: {}]   ;;  %s3425_s17 = inlined_call_operand.vmem [shape: f32[2,1,32], index: 17, kind: input, shape index: {}]   ;;  %s3426_s18 = inlined_call_operand.vmem [shape: bf16[2,32,128], index: 18, kind: input, shape index: {}]   ;;  %s3427_s19 = inlined_call_operand.vmem [shape: f32[2,1,128], index: 19, kind: input, shape index: {}]   ;;  %s3428_s20 = inlined_call_operand.vmem [shape: bf16[2,128,32], index: 20, kind: input, shape index: {}]   ;;  %s3429_s21 = inlined_call_operand.vmem [shape: f32[2,1,32], index: 21, kind: input, shape index: {}]   ;;  %s3430_s22 = inlined_call_operand.vmem [shape: f32[2,32], index: 22, kind: input, shape index: {}]   ;;  %s3431_s23 = inlined_call_operand.vmem [shape: bf16[32,128], index: 23, kind: input, shape index: {}]   ;;  %s3432_s24 = inlined_call_operand.vmem [shape: f32[1,128], index: 24, kind: input, shape index: {}]   ;;  %s3433_s25 = inlined_call_operand.vmem [shape: f32[32,32], index: 25, kind: input, shape index: {}]   ;;  %s3434_s26 = inlined_call_operand.vmem [shape: f32[2,32], index: 26, kind: input, shape index: {}]   ;;  %s3435_s27 = inlined_call_operand.vmem [shape: f32[32,1], index: 27, kind: input, shape index: {}]   ;;  %s3436_s28 = inlined_call_operand.hbm [shape: f32[16,128], index: 28, kind: output, shape index: {}]  }
   0x1   :  { %3446 = sst [smem:[#allocation6_spill]] %s3408_s0 }
   0x2   :  { %3447 = sst [smem:[#allocation7_spill]] %s3409_s1 }
   0x3   :  { %3448 = sst [smem:[#allocation8_spill]] %s3410_s2 }
   0x4   :  { %3449 = sst [smem:[#allocation9_spill]] %s3411_s3 }
   0x5   :  { %3450 = sst [smem:[#allocation10_spill]] %s3412_s4 }
   0x6   :  { %3451 = sst [smem:[#allocation11_spill]] %s3413_s5 }
   0x7   :  { %3452 = sst [smem:[#allocation12_spill]] %s3414_s6 }
   0x8   :  { %3453 = sst [smem:[#allocation13_spill]] %s3415_s7 }
   0x9   :  { %3454 = sst [smem:[#allocation14_spill]] %s3416_s8 }
   0xa   :  { %3455 = sst [smem:[#allocation15_spill]] %s3417_s9 }
   0xb   :  { %3456 = sst [smem:[#allocation16_spill]] %s3418_s10 }
   0xc   :  { %3457 = sst [smem:[#allocation17_spill]] %s3419_s11 }
   0xd   :  { %3458 = sst [smem:[#allocation18_spill]] %s3420_s12 }
   0xe   :  { %3459 = sst [smem:[#allocation19_spill]] %s3430_s22 }
   0xf   :  { %s3460_s9 = sld [smem:[#allocation6_spill]]  ;;  %v2615_v2 = vmov 0  }
  0x10   :  { %s3461_s22 = sld [smem:[#allocation13_spill]]  ;;  %2441 = vset.pattern.permute.xlu0 %v2615_v2  ;;  %2442 = vset.pattern.permute.xlu1 %v2615_v2 }
  0x11   :  { %2443 = vset.pattern.permute.xlu2 %v2615_v2 }
  0x15   :  { %v193_v0 = vld [vmem:[%s3460_s9] sm:$0xff]  ;;  %v194_v5 = vld [vmem:[%s3460_s9 + $0x8] sm:$0xff] }
  0x16   :  { %v2395_v1 = vld [vmem:[%s3461_s22 + $0x38] sm:$0xff]  ;;  %198 = vperm.xlu0 %2441, %v193_v0   ;;  %v2394_v3 = vld [vmem:[%s3461_s22 + $0x30] sm:$0xff]  ;;  %v2393_v4 = vld [vmem:[%s3461_s22 + $0x28] sm:$0xff] }
  0x17   :  { %274 = vmatpush.bf16.msra.mxu2 %v2395_v1 }
  0x1b   :  { %275 = vmatpush.bf16.msra.mxu2 %v2394_v3 }
  0x1c   :  { %33 = vsyncpa [#allocation4], 0  ;;  %v2392_v6 = vld [vmem:[%s3461_s22 + $0x20] sm:$0xff]  ;;  %v2391_v7 = vld [vmem:[%s3461_s22 + $0x18] sm:$0xff]  ;;  %s3462_s3 = sld [smem:[#allocation11_spill]]  ;;  %vm121_vm0 = vcmask 392192   ;;  %v195_v23 = vlaneseq }
  0x1d   :  { %v2390_v8 = vld [vmem:[%s3461_s22 + $0x10] sm:$0xff]  ;;  %s3463_s0 = sld [smem:[#allocation9_spill]]  ;;  %v2389_v12 = vld [vmem:[%s3461_s22 + $0x8] sm:$0xff]  ;;  %v2388_v13 = vld [vmem:[%s3461_s22] sm:$0xff]  ;;  %vm176_vm1 = vcmask 523264   ;;  %vm290_vm5 = vcmask 261120  }
  0x1e   :  { %201 = vperm.xlu0 %2441, %v194_v5   ;;  %s3464_s2 = sld [smem:[#allocation7_spill]]  ;;  %v196_v24 = vand.u32 127, %v195_v23  ;;  %v2616_v26 = vmov 1.0|1.0   ;;  %v2617_v27 = vmov 0.0   ;;  %vm298_vm6 = vcmask 253952  }
  0x1f   :  { %276 = vmatpush.bf16.msra.mxu2 %v2393_v4  ;;  %s3465_s1 = sld [smem:[#allocation8_spill]]  ;;  %292 = vst.msk [vmem:[#allocation2 + $0x8] sm:$0xff] %vm290_vm5, %v2617_v27  ;;  %vm311_vm7 = vcmask 254977   ;;  %vm304_vm8 = vcmask 257024   ;;  %vm316_vm9 = vcmask 261124   ;;  %v2618_v57 = vmov 32.0  }
  0x20   :  { %294 = vst.msk [vmem:[#allocation2 + $0x18] sm:$0xff] %vm290_vm5, %v2617_v27  ;;  %s3466_s4 = sld [smem:[#allocation14_spill]]  ;;  %2459 = vrcp.f32 %v2618_v57  ;;  %s2070_s12 = sshll.u32 %s3436_s28, 4  ;;  %s2071_s12 = int_to_ptr.hbm [resolvable:$true] %s2070_s12 }
  0x21   :  { %291 = vst.msk [vmem:[#allocation2] sm:$0xff] %vm290_vm5, %v2617_v27  ;;  %s3467_s9 = sld [smem:[#allocation10_spill]] }
  0x22   :  { %v2387_v9 = vld [vmem:[%s3462_s3 + $0x18] sm:$0xff]  ;;  %v2386_v11 = vld [vmem:[%s3462_s3 + $0x10] sm:$0xff]  ;;  %v2385_v15 = vld [vmem:[%s3462_s3 + $0x8] sm:$0xff]  ;;  %293 = vst.msk [vmem:[#allocation2 + $0x10] sm:$0xff] %vm290_vm5, %v2617_v27  ;;  %s3468_s10 = sld [smem:[#allocation12_spill]] }
  0x23   :  { %277 = vmatpush.bf16.msra.mxu2 %v2392_v6  ;;  %184 = vmatpush.bf16.msra.mxu1 %v2387_v9  ;;  %v2383_v10 = vld [vmem:[%s3463_s0 + $0x10] sm:$0xff]  ;;  %v2382_v14 = vld [vmem:[%s3463_s0 + $0x8] sm:$0xff]  ;;  %v2381_v16 = vld [vmem:[%s3463_s0] sm:$0xff]  ;;  %s3469_s7 = sld [smem:[#allocation16_spill]] }
  0x24   :  { %130 = vmatpush.bf16.msra.mxu0 %v2383_v10  ;;  %v2384_v17 = vld [vmem:[%s3462_s3] sm:$0xff]  ;;  %s3470_s3 = sld [smem:[#allocation17_spill]] }
  0x25   :  { %v91_v18 = vld [vmem:[%s3464_s2] sm:$0x3]  ;;  %s3471_s8 = sld [smem:[#allocation18_spill]] }
  0x26   :  { %v138_v19 = vld [vmem:[%s3465_s1] sm:$0xff]  ;;  %v92_v20 = vpack.c.bf16 %v91_v18, %v91_v18  ;;  %v289_v28 = vld [vmem:[%s3466_s4 + $0x8] sm:$0x1f]  ;;  %v2460_v58 = vpop.eup %2459  ;;  %s3472_s2 = sld [smem:[#allocation15_spill]] }
  0x27   :  { %278 = vmatpush.bf16.msra.mxu2 %v2391_v7  ;;  %185 = vmatpush.bf16.msra.mxu1 %v2386_v11  ;;  %v139_v21 = vpack.c.bf16 %v138_v19, %v138_v19  ;;  %v2444_v29 = vld [vmem:[%s3467_s9] ss:$0 sm:$0xff]  ;;  %v308_v31 = vrot.slane %v289_v28, 7  ;;  %v301_v32 = vrot.slane %v289_v28, 1  ;;  %v313_v35 = vrot.slane %v289_v28, 5 }
  0x28   :  { %131 = vmatpush.bf16.msra.mxu0 %v2382_v14  ;;  %v2445_v30 = vld [vmem:[%s3468_s10] ss:$0 sm:$0xff]  ;;  %v345_v59 = vmul.f32 32.0, %v2460_v58  ;;  %vm349_vm10 = vweird.f32 %v2460_v58 }
  0x29   :  { %v288_v44 = vld [vmem:[%s3466_s4] sm:$0xff] }
  0x2a   :  { %v346_v60 = vsub.f32 1.0, %v345_v59  ;;  %v2398_v27 = vld [vmem:[%s3470_s3] sm:$0xff] }
  0x2b   :  { %279 = vmatpush.bf16.msra.mxu2 %v2390_v8  ;;  %186 = vmatpush.bf16.msra.mxu1 %v2385_v15 }
  0x2c   :  { %132 = vmatpush.bf16.msra.mxu0 %v2381_v16  ;;  %v347_v61 = vmul.f32 %v2460_v58, %v346_v60 }
  0x2e   :  { %v348_v62 = vadd.f32 %v2460_v58, %v347_v61 }
  0x2f   :  { %280 = vmatpush.bf16.msra.mxu2 %v2389_v12  ;;  %187 = vmatpush.bf16.msra.mxu1 %v2384_v17 }
  0x30   :  { %2094 = vmatmul.msk.bf16.vlgmr.msra.gmra.mxu0 %vm121_vm0, %v92_v20  ;;  %v2858_v63 = vsel %vm349_vm10, %v2460_v58, %v348_v62  ;;  %v2397_v20 = vld [vmem:[%s3469_s7 + $0x8] sm:$0xff] }
  0x31   :  { %471 = vmatpush.bf16.msra.mxu3 %v2397_v20 }
  0x32   :  { %2111 = vmatmul.msk.bf16.vlgmr.msra.gmra.mxu1 %vm176_vm1, %v139_v21  ;;  %v2399_v21 = vld [vmem:[%s3470_s3 + $0x8] sm:$0xff] }
  0x33   :  { %281 = vmatpush.bf16.msra.mxu2 %v2388_v13  ;;  %510 = vmatpush.bf16.msrb.mxu0 %v2399_v21 }
  0x37   :  { %511 = vmatpush.bf16.msrb.mxu0 %v2398_v27 }
  0x88   :  { %v199_v22 = vpop.permute.xlu0 %198 }
  0x89   :  { %vm203_vm2 = vcmp.eq.s32.totalorder %v199_v22, %v196_v24  ;;  %v2401_v22 = vld [vmem:[%s3471_s8 + $0x8] sm:$0xff] }
  0x8a   :  { %549 = vmatpush.bf16.msrb.mxu1 %v2401_v22 }
  0x90   :  { %v202_v25 = vpop.permute.xlu0 %201 }
  0x91   :  { %vm204_vm3 = vcmp.eq.s32.totalorder %v202_v25, %v196_v24 }
  0x92   :  { %vm2146_vm4 = vmpackc.low %vm204_vm3, %vm203_vm2 }
  0x93   :  { %2147 = vmatmul.msk.bf16.vlgmr.msra.gmra.mxu2 %vm2146_vm4, %v2616_v26  ;;  %v2396_v26 = vld [vmem:[%s3469_s7] sm:$0xff] }
  0x94   :  { %472 = vmatpush.bf16.msra.mxu3 %v2396_v26 }
  0xad   :  { %v134_v33 = vpop.f32.mrf.mxu0 }
  0xae   :  { %v135_v36 = vadd.f32 %v2444_v29, %v134_v33 }
  0xaf   :  { %v189_v34 = vpop.f32.mrf.mxu1 }
  0xb0   :  { %v190_v37 = vadd.f32 %v2445_v30, %v189_v34  ;;  %v297_v38 = vadd.f32 %v289_v28, %v135_v36  ;;  %v310_v39 = vadd.f32 %v308_v31, %v135_v36  ;;  %v2400_v28 = vld [vmem:[%s3471_s8] sm:$0xff] }
  0xb1   :  { %550 = vmatpush.bf16.msrb.mxu1 %v2400_v28 }
  0xb2   :  { %v303_v40 = vadd.f32 %v301_v32, %v190_v37  ;;  %v315_v41 = vadd.f32 %v313_v35, %v190_v37  ;;  %299 = vst.msk [vmem:[#allocation2 + $0x8] sm:$0x1] %vm298_vm6, %v297_v38 }
  0xb3   :  { %312 = vst.msk [vmem:[#allocation2 + $0x17] sm:$0x2] %vm311_vm7, %v310_v39 }
  0xb4   :  { %305 = vst.msk [vmem:[#allocation2 + $0x9] sm:$0xf] %vm304_vm8, %v303_v40 }
  0xb5   :  { %317 = vst.msk [vmem:[#allocation2 + $0x15] sm:$0xf0] %vm316_vm9, %v315_v41  ;;  %v136_v42 = vpop.f32.mrf.mxu0 }
  0xb7   :  { %v191_v43 = vpop.f32.mrf.mxu1 }
  0xbb   :  { %v2846_v51 = vld [vmem:[#allocation2 + $0x8] sm:$0xff] }
  0xbc   :  { %v335_v52 = vsel %vm290_vm5, %v2846_v51, 0.0  ;;  %v2854_v55 = vld [vmem:[#allocation2 + $0x18] sm:$0xff] }
  0xbd   :  { %v341_v56 = vsel %vm290_vm5, %v2854_v55, 0.0 }
 0x116   :  { %v283_v45 = vpop.f32.mrf.mxu2 }
 0x117   :  { %v295_v46 = vadd.f32 %v288_v44, %v283_v45 }
 0x119   :  { %296 = vst.msk [vmem:[#allocation2] sm:$0xff] %vm290_vm5, %v295_v46 }
 0x11e   :  { %v285_v47 = vpop.f32.mrf.mxu2 }
 0x11f   :  { %v306_v48 = vadd.f32 %v288_v44, %v285_v47 }
 0x120   :  { %v2841_v49 = vld [vmem:[#allocation2] sm:$0xff] }
 0x121   :  { %307 = vst.msk [vmem:[#allocation2 + $0x10] sm:$0xff] %vm290_vm5, %v306_v48  ;;  %v332_v50 = vsel %vm290_vm5, %v2841_v49, 0.0 }
 0x122   :  { %333 = vadd.xlane.f32.xlu1 %v332_v50 }
 0x128   :  { %v2850_v53 = vld [vmem:[#allocation2 + $0x10] sm:$0xff] }
 0x129   :  { %v338_v54 = vsel %vm290_vm5, %v2850_v53, 0.0 }
 0x12a   :  { %339 = vadd.xlane.f32.xlu2 %v338_v54  ;;  %336 = vadd.xlane.f32.xlu1 %v335_v52 }
 0x132   :  { %342 = vadd.xlane.f32.xlu2 %v341_v56  ;;  %v2913_v56 = vld [vmem:[%s3472_s2] sm:$0xf] }
 0x133   :  { %v427_v61 = vperm.slane %v2913_v56, 0 }
 0x195   :  { %v334_v0 = vpop.xlane.xlu1 %333 }
 0x196   :  { %v351_v1 = vmul.f32 %v2858_v63, %v334_v0 }
 0x198   :  { %v2862_v2 = vsub.f32 %v2841_v49, %v351_v1 }
 0x19a   :  { %v359_v3 = vmul.f32 %v2862_v2, %v2862_v2 }
 0x19c   :  { %v363_v4 = vsel %vm290_vm5, %v359_v3, 0.0 }
 0x19d   :  { %364 = vadd.xlane.f32.xlu0 %v363_v4  ;;  %v340_v5 = vpop.xlane.xlu2 %339  ;;  %v337_v6 = vpop.xlane.xlu1 %336 }
 0x19e   :  { %v353_v7 = vmul.f32 %v2858_v63, %v340_v5  ;;  %v352_v8 = vmul.f32 %v2858_v63, %v337_v6 }
 0x1a0   :  { %v2870_v9 = vsub.f32 %v2850_v53, %v353_v7  ;;  %v2873_v10 = vsub.f32 %v2846_v51, %v352_v8  ;;  %v432_v7 = vperm.slane %v2913_v56, 1 }
 0x1a2   :  { %v361_v11 = vmul.f32 %v2870_v9, %v2870_v9  ;;  %v360_v12 = vmul.f32 %v2873_v10, %v2873_v10 }
 0x1a4   :  { %v369_v13 = vsel %vm290_vm5, %v361_v11, 0.0  ;;  %v366_v14 = vsel %vm290_vm5, %v360_v12, 0.0 }
 0x1a5   :  { %370 = vadd.xlane.f32.xlu2 %v369_v13  ;;  %v343_v15 = vpop.xlane.xlu2 %342  ;;  %367 = vadd.xlane.f32.xlu1 %v366_v14 }
 0x1a6   :  { %v354_v16 = vmul.f32 %v2858_v63, %v343_v15 }
 0x1a8   :  { %v2883_v17 = vsub.f32 %v2854_v55, %v354_v16 }
 0x1aa   :  { %v362_v18 = vmul.f32 %v2883_v17, %v2883_v17 }
 0x1ac   :  { %v372_v19 = vsel %vm290_vm5, %v362_v18, 0.0 }
 0x1ad   :  { %373 = vadd.xlane.f32.xlu1 %v372_v19 }
 0x210   :  { %v365_v23 = vpop.xlane.xlu0 %364 }
 0x211   :  { %v375_v24 = vmul.f32 %v365_v23, %v2858_v63 }
 0x213   :  { %v379_v25 = vadd.f32 1e-05, %v375_v24 }
 0x215   :  { %2461 = vrsqrt.f32 %v379_v25  ;;  %vm389_vm12 = vweird.f32 %v379_v25 }
 0x218   :  { %v371_v29 = vpop.xlane.xlu2 %370  ;;  %v368_v30 = vpop.xlane.xlu1 %367 }
 0x219   :  { %v377_v31 = vmul.f32 %v371_v29, %v2858_v63  ;;  %v376_v32 = vmul.f32 %v368_v30, %v2858_v63 }
 0x21b   :  { %v2462_v33 = vpop.eup %2461  ;;  %v381_v34 = vadd.f32 1e-05, %v377_v31  ;;  %v380_v35 = vadd.f32 1e-05, %v376_v32  ;;  %v2446_v32 = vld [vmem:[%s3422_s14] ss:$0 sm:$0xff] }
 0x21c   :  { %v384_v36 = vmul.f32 %v2462_v33, %v379_v25  ;;  %vm390_vm11 = vweird.f32 %v2462_v33 }
 0x21d   :  { %2463 = vrsqrt.f32 %v381_v34  ;;  %vm391_vm13 = vmor %vm389_vm12, %vm390_vm11  ;;  %vm399_vm15 = vweird.f32 %v380_v35  ;;  %vm409_vm6 = vweird.f32 %v381_v34 }
 0x21e   :  { %v385_v37 = vmul.f32 %v2462_v33, %v384_v36  ;;  %2465 = vrsqrt.f32 %v380_v35 }
 0x220   :  { %v386_v38 = vmul.f32 0.5, %v385_v37  ;;  %v374_v39 = vpop.xlane.xlu1 %373 }
 0x221   :  { %v378_v40 = vmul.f32 %v374_v39, %v2858_v63 }
 0x222   :  { %v387_v41 = vsub.f32 1.5, %v386_v38 }
 0x223   :  { %v2464_v42 = vpop.eup %2463  ;;  %v382_v43 = vadd.f32 1e-05, %v378_v40 }
 0x224   :  { %v2466_v44 = vpop.eup %2465  ;;  %v388_v45 = vmul.f32 %v2462_v33, %v387_v41  ;;  %v404_v46 = vmul.f32 %v2464_v42, %v381_v34  ;;  %vm410_vm2 = vweird.f32 %v2464_v42 }
 0x225   :  { %v394_v47 = vmul.f32 %v2466_v44, %v380_v35  ;;  %2467 = vrsqrt.f32 %v382_v43  ;;  %vm400_vm14 = vweird.f32 %v2466_v44  ;;  %vm419_vm3 = vweird.f32 %v382_v43  ;;  %vm411_vm7 = vmor %vm409_vm6, %vm410_vm2 }
 0x226   :  { %v392_v50 = vsel %vm391_vm13, %v2462_v33, %v388_v45  ;;  %v405_v52 = vmul.f32 %v2464_v42, %v404_v46  ;;  %vm401_vm0 = vmor %vm399_vm15, %vm400_vm14  ;;  %v322_v33 = vld [vmem:[%s3434_s26] sm:$0x3] }
 0x227   :  { %v395_v48 = vmul.f32 %v2466_v44, %v394_v47  ;;  %v423_v59 = vmul.f32 %v392_v50, %v2862_v2  ;;  %v2936_v41 = vperm.slane %v322_v33, 0 }
 0x228   :  { %v406_v62 = vmul.f32 0.5, %v405_v52  ;;  %v2448_v52 = vld [vmem:[%s3421_s13] ss:$0 sm:$0xff] }
 0x229   :  { %v396_v54 = vmul.f32 0.5, %v395_v48  ;;  %v428_v6 = vmul.f32 %v427_v61, %v423_v59 }
 0x22a   :  { %v407_v8 = vsub.f32 1.5, %v406_v62 }
 0x22b   :  { %v2468_v57 = vpop.eup %2467  ;;  %v397_v58 = vsub.f32 1.5, %v396_v54  ;;  %v433_v13 = vadd.f32 %v432_v7, %v428_v6 }
 0x22c   :  { %v414_v60 = vmul.f32 %v2468_v57, %v382_v43  ;;  %vm420_vm1 = vweird.f32 %v2468_v57  ;;  %v408_v15 = vmul.f32 %v2464_v42, %v407_v8 }
 0x22d   :  { %v398_v0 = vmul.f32 %v2466_v44, %v397_v58  ;;  %vm421_vm4 = vmor %vm419_vm3, %vm420_vm1 }
 0x22e   :  { %v415_v1 = vmul.f32 %v2468_v57, %v414_v60 }
 0x22f   :  { %v402_v3 = vsel %vm401_vm0, %v2466_v44, %v398_v0 }
 0x230   :  { %v424_v4 = vmul.f32 %v402_v3, %v2873_v10  ;;  %v416_v5 = vmul.f32 0.5, %v415_v1  ;;  %v412_v10 = vsel %vm411_vm7, %v2464_v42, %v408_v15  ;;  %v2938_v42 = vperm.slane %v322_v33, 1  ;;  %v319_v33 = vld [vmem:[%s3433_s25 + $0x8] sm:$0xff] }
 0x231   :  { %v425_v20 = vmul.f32 %v412_v10, %v2870_v9  ;;  %v2447_v9 = vld [vmem:[%s3423_s15] ss:$0 sm:$0xff] }
 0x232   :  { %v417_v11 = vsub.f32 1.5, %v416_v5  ;;  %v429_v12 = vmul.f32 %v427_v61, %v424_v4 }
 0x233   :  { %v430_v22 = vmul.f32 %v427_v61, %v425_v20 }
 0x234   :  { %v418_v2 = vmul.f32 %v2468_v57, %v417_v11  ;;  %v434_v14 = vadd.f32 %v432_v7, %v429_v12 }
 0x235   :  { %v435_v24 = vadd.f32 %v432_v7, %v430_v22 }
 0x236   :  { %v437_v16 = vpack.c.bf16 %v434_v14, %v433_v13  ;;  %v422_v18 = vsel %vm421_vm4, %v2468_v57, %v418_v2 }
 0x237   :  { %v426_v19 = vmul.f32 %v422_v18, %v2883_v17 }
 0x238   :  { %2156 = vmatmul.msk.bf16.vlgmr.msra.gmra.mxu3 %vm290_vm5, %v437_v16  ;;  %2166 = vmatmul.msk.bf16.vlgmr.msrb.gmra.mxu0 %vm290_vm5, %v437_v16 }
 0x239   :  { %2176 = vmatmul.msk.bf16.vlgmr.msrb.gmra.mxu1 %vm290_vm5, %v437_v16  ;;  %v431_v21 = vmul.f32 %v427_v61, %v426_v19 }
 0x23b   :  { %v436_v23 = vadd.f32 %v432_v7, %v431_v21 }
 0x23d   :  { %v438_v25 = vpack.c.bf16 %v436_v23, %v435_v24 }
 0x248   :  { %2157 = vmatmul.msk.bf16.gmra.mxu3 %vm290_vm5, %v438_v25  ;;  %2167 = vmatmul.msk.bf16.gmra.mxu0 %vm290_vm5, %v438_v25 }
 0x249   :  { %2177 = vmatmul.msk.bf16.gmra.mxu1 %vm290_vm5, %v438_v25 }
 0x2b5   :  { %v513_v26 = vpop.f32.mrf.mxu0 }
 0x2b6   :  { %v552_v27 = vpop.f32.mrf.mxu1  ;;  %v514_v62 = vadd.f32 %v2446_v32, %v513_v26 }
 0x2b7   :  { %v553_v44 = vadd.f32 %v2447_v9, %v552_v27 }
 0x2b9   :  { %v650_v1 = vmul.f32 %v2936_v41, %v553_v44  ;;  %v734_v3 = vmul.f32 %v2938_v42, %v553_v44 }
 0x2bb   :  { %v474_v30 = vpop.f32.mrf.mxu3 }
 0x2bc   :  { %v475_v4 = vadd.f32 %v2448_v52, %v474_v30  ;;  %v318_v30 = vld [vmem:[%s3433_s25] sm:$0xff] }
 0x2bd   :  { %v515_v28 = vpop.f32.mrf.mxu0 }
 0x2be   :  { %v554_v29 = vpop.f32.mrf.mxu1  ;;  %v516_v54 = vadd.f32 %v2446_v32, %v515_v28  ;;  %v562_v12 = vmul.f32 0.25, %v475_v4 }
 0x2bf   :  { %v555_v37 = vadd.f32 %v2447_v9, %v554_v29 }
 0x2c0   :  { %v566_v5 = vpack.c.bf16 %v516_v54, %v514_v62  ;;  %v569_v15 = vmul.f32 %v2936_v41, %v562_v12  ;;  %v659_v16 = vmul.f32 %v2938_v42, %v562_v12 }
 0x2c1   :  { %v651_v57 = vmul.f32 %v2936_v41, %v555_v37  ;;  %v735_v59 = vmul.f32 %v2938_v42, %v555_v37 }
 0x2c2   :  { %v582_v2 = vsel %vm290_vm5, %v566_v5, 0 }
 0x2c3   :  { %v476_v34 = vpop.f32.mrf.mxu3  ;;  %v738_v7 = vpack.c.bf16 %v735_v59, %v734_v3  ;;  %v654_v8 = vpack.c.bf16 %v651_v57, %v650_v1 }
 0x2c4   :  { %v477_v0 = vadd.f32 %v2448_v52, %v476_v34 }
 0x2c5   :  { %v518_v31 = vpop.f32.mrf.mxu0 }
 0x2c6   :  { %v557_v17 = vpop.f32.mrf.mxu1  ;;  %v519_v38 = vadd.f32 %v2446_v32, %v518_v31  ;;  %v563_v11 = vmul.f32 0.25, %v477_v0 }
 0x2c7   :  { %v558_v35 = vadd.f32 %v2447_v9, %v557_v17 }
 0x2c8   :  { %v570_v13 = vmul.f32 %v2936_v41, %v563_v11  ;;  %v660_v14 = vmul.f32 %v2938_v42, %v563_v11 }
 0x2c9   :  { %v652_v46 = vmul.f32 %v2936_v41, %v558_v35  ;;  %v736_v47 = vmul.f32 %v2938_v42, %v558_v35 }
 0x2ca   :  { %v573_v18 = vpack.c.bf16 %v570_v13, %v569_v15  ;;  %v663_v10 = vpack.c.bf16 %v660_v14, %v659_v16 }
 0x2cb   :  { %v479_v6 = vpop.f32.mrf.mxu3 }
 0x2cc   :  { %v480_v21 = vadd.f32 %v2448_v52, %v479_v6 }
 0x2cd   :  { %v520_v36 = vpop.f32.mrf.mxu0 }
 0x2ce   :  { %v521_v39 = vadd.f32 %v2446_v32, %v520_v36  ;;  %v559_v40 = vpop.f32.mrf.mxu1  ;;  %v564_v23 = vmul.f32 0.25, %v480_v21 }
 0x2cf   :  { %v560_v43 = vadd.f32 %v2447_v9, %v559_v40  ;;  %v320_v40 = vld [vmem:[%s3433_s25 + $0x10] sm:$0xff] }
 0x2d0   :  { %v567_v45 = vpack.c.bf16 %v521_v39, %v519_v38  ;;  %v571_v26 = vmul.f32 %v2936_v41, %v564_v23  ;;  %v661_v27 = vmul.f32 %v2938_v42, %v564_v23 }
 0x2d1   :  { %v653_v48 = vmul.f32 %v2936_v41, %v560_v43  ;;  %v737_v50 = vmul.f32 %v2938_v42, %v560_v43 }
 0x2d2   :  { %v585_v58 = vsel %vm290_vm5, %v567_v45, 0 }
 0x2d3   :  { %v655_v60 = vpack.c.bf16 %v653_v48, %v652_v46  ;;  %v739_v61 = vpack.c.bf16 %v737_v50, %v736_v47  ;;  %593 = vmatpush.bf16.xpose.msrb.mxu3 %v585_v58  ;;  %677 = vmatpush.bf16.xpose.msrb.mxu2 %v585_v58  ;;  %v481_v19 = vpop.f32.mrf.mxu3  ;;  %v321_v50 = vld [vmem:[%s3433_s25 + $0x18] sm:$0xff] }
 0x2d4   :  { %v482_v20 = vadd.f32 %v2448_v52, %v481_v19 }
 0x2d5   :  { %754 = vmatpush.bf16.msra.mxu0 %v739_v61  ;;  %779 = vmatpush.bf16.msra.mxu1 %v655_v60 }
 0x2d6   :  { %v565_v22 = vmul.f32 0.25, %v482_v20 }
 0x2d8   :  { %v572_v24 = vmul.f32 %v2936_v41, %v565_v22  ;;  %v662_v25 = vmul.f32 %v2938_v42, %v565_v22 }
 0x2d9   :  { %755 = vmatpush.bf16.msra.mxu0 %v738_v7  ;;  %780 = vmatpush.bf16.msra.mxu1 %v654_v8 }
 0x2da   :  { %v574_v28 = vpack.c.bf16 %v572_v24, %v571_v26  ;;  %v664_v29 = vpack.c.bf16 %v662_v25, %v661_v27 }
 0x2db   :  { %594 = vmatpush.bf16.xpose.msrb.mxu3 %v582_v2  ;;  %678 = vmatpush.bf16.xpose.msrb.mxu2 %v582_v2 }
 0x2e2   :  { %2178 = vmatmul.msk.bf16.vlgmr.msrb.gmra.mxu3 %vm290_vm5, %v573_v18  ;;  %2180 = vmatmul.msk.bf16.vlgmr.msrb.gmra.mxu2 %vm290_vm5, %v663_v10 }
 0x2f2   :  { %2179 = vmatmul.msk.bf16.gmra.mxu3 %vm290_vm5, %v574_v28  ;;  %2181 = vmatmul.msk.bf16.gmra.mxu2 %vm290_vm5, %v664_v29 }
 0x365   :  { %v596_v31 = vpop.f32.mrf.mxu3  ;;  %v680_v17 = vpop.f32.mrf.mxu2 }
 0x366   :  { %v597_v9 = vadd.f32 %v596_v31, %v318_v30  ;;  %v681_v34 = vadd.f32 %v680_v17, %v318_v30 }
 0x368   :  { %v606_v32 = vsel %vm290_vm5, %v597_v9, -inf  ;;  %v690_v39 = vsel %vm290_vm5, %v681_v34, -inf }
 0x369   :  { %607 = vmax.xlane.f32.xlu2 %v606_v32 }
 0x36d   :  { %v598_v35 = vpop.f32.mrf.mxu3  ;;  %v682_v36 = vpop.f32.mrf.mxu2 }
 0x36e   :  { %v599_v37 = vadd.f32 %v598_v35, %v319_v33  ;;  %v683_v43 = vadd.f32 %v682_v36, %v319_v33 }
 0x370   :  { %v609_v38 = vsel %vm290_vm5, %v599_v37, -inf  ;;  %v693_v47 = vsel %vm290_vm5, %v683_v43, -inf }
 0x371   :  { %610 = vmax.xlane.f32.xlu1 %v609_v38  ;;  %691 = vmax.xlane.f32.xlu2 %v690_v39 }
 0x375   :  { %v601_v44 = vpop.f32.mrf.mxu3  ;;  %v685_v46 = vpop.f32.mrf.mxu2 }
 0x376   :  { %v602_v45 = vadd.f32 %v601_v44, %v320_v40  ;;  %v686_v52 = vadd.f32 %v685_v46, %v320_v40 }
 0x378   :  { %v612_v48 = vsel %vm290_vm5, %v602_v45, -inf  ;;  %v696_v59 = vsel %vm290_vm5, %v686_v52, -inf }
 0x379   :  { %694 = vmax.xlane.f32.xlu1 %v693_v47  ;;  %613 = vmax.xlane.f32.xlu2 %v612_v48 }
 0x37d   :  { %v603_v54 = vpop.f32.mrf.mxu3  ;;  %v687_v60 = vpop.f32.mrf.mxu2 }
 0x37e   :  { %v604_v57 = vadd.f32 %v603_v54, %v321_v50  ;;  %v688_v61 = vadd.f32 %v687_v60, %v321_v50 }
 0x380   :  { %v615_v58 = vsel %vm290_vm5, %v604_v57, -inf  ;;  %v699_v62 = vsel %vm290_vm5, %v688_v61, -inf }
 0x381   :  { %616 = vmax.xlane.f32.xlu1 %v615_v58  ;;  %697 = vmax.xlane.f32.xlu2 %v696_v59 }
 0x389   :  { %700 = vmax.xlane.f32.xlu1 %v699_v62 }
 0x3dc   :  { %v608_v0 = vpop.xlane.xlu2 %607 }
 0x3dd   :  { %v618_v1 = vsub.f32 %v597_v9, %v608_v0 }
 0x3df   :  { %v622_v3 = vmul.f32 1.442695, %v618_v1 }
 0x3e1   :  { %2469 = vpow2.f32 %v622_v3 }
 0x3e4   :  { %v611_v4 = vpop.xlane.xlu1 %610  ;;  %v692_v5 = vpop.xlane.xlu2 %691 }
 0x3e5   :  { %v619_v6 = vsub.f32 %v599_v37, %v611_v4  ;;  %v702_v7 = vsub.f32 %v681_v34, %v692_v5 }
 0x3e7   :  { %v2470_v8 = vpop.eup %2469  ;;  %v624_v11 = vmul.f32 1.442695, %v619_v6  ;;  %v706_v12 = vmul.f32 1.442695, %v702_v7 }
 0x3e8   :  { %v630_v2 = vsel %vm290_vm5, %v2470_v8, 0.0 }
 0x3e9   :  { %2471 = vpow2.f32 %v624_v11  ;;  %631 = vadd.xlane.f32.xlu2 %v630_v2 }
 0x3ea   :  { %2473 = vpow2.f32 %v706_v12 }
 0x3ec   :  { %v695_v13 = vpop.xlane.xlu1 %694  ;;  %v614_v14 = vpop.xlane.xlu2 %613 }
 0x3ed   :  { %v703_v15 = vsub.f32 %v683_v43, %v695_v13  ;;  %v620_v16 = vsub.f32 %v602_v45, %v614_v14  ;;  %v2403_v14 = vld [vmem:[%s3424_s16 + $0x8] sm:$0xff] }
 0x3ee   :  { %826 = vmatpush.bf16.msra.mxu3 %v2403_v14 }
 0x3ef   :  { %v2472_v18 = vpop.eup %2471  ;;  %v708_v10 = vmul.f32 1.442695, %v703_v15  ;;  %v626_v19 = vmul.f32 1.442695, %v620_v16  ;;  %v2402_v15 = vld [vmem:[%s3424_s16] sm:$0xff] }
 0x3f0   :  { %v2474_v20 = vpop.eup %2473  ;;  %v633_v21 = vsel %vm290_vm5, %v2472_v18, 0.0 }
 0x3f1   :  { %2475 = vpow2.f32 %v708_v10  ;;  %634 = vadd.xlane.f32.xlu0 %v633_v21  ;;  %v714_v22 = vsel %vm290_vm5, %v2474_v20, 0.0 }
 0x3f2   :  { %2477 = vpow2.f32 %v626_v19  ;;  %715 = vadd.xlane.f32.xlu1 %v714_v22  ;;  %827 = vmatpush.bf16.msra.mxu3 %v2402_v15 }
 0x3f4   :  { %v617_v23 = vpop.xlane.xlu1 %616  ;;  %v698_v24 = vpop.xlane.xlu2 %697 }
 0x3f5   :  { %v621_v25 = vsub.f32 %v604_v57, %v617_v23  ;;  %v704_v26 = vsub.f32 %v686_v52, %v698_v24 }
 0x3f7   :  { %v2476_v27 = vpop.eup %2475  ;;  %v628_v28 = vmul.f32 1.442695, %v621_v25  ;;  %v710_v29 = vmul.f32 1.442695, %v704_v26 }
 0x3f8   :  { %v2478_v30 = vpop.eup %2477  ;;  %v717_v31 = vsel %vm290_vm5, %v2476_v27, 0.0 }
 0x3f9   :  { %2479 = vpow2.f32 %v628_v28  ;;  %718 = vadd.xlane.f32.xlu2 %v717_v31  ;;  %v636_v17 = vsel %vm290_vm5, %v2478_v30, 0.0 }
 0x3fa   :  { %2481 = vpow2.f32 %v710_v29  ;;  %637 = vadd.xlane.f32.xlu0 %v636_v17 }
 0x3fc   :  { %v701_v9 = vpop.xlane.xlu1 %700 }
 0x3fd   :  { %v705_v32 = vsub.f32 %v688_v61, %v701_v9 }
 0x3ff   :  { %v2480_v33 = vpop.eup %2479  ;;  %v712_v34 = vmul.f32 1.442695, %v705_v32 }
 0x400   :  { %v2482_v35 = vpop.eup %2481  ;;  %v639_v36 = vsel %vm290_vm5, %v2480_v33, 0.0 }
 0x401   :  { %2483 = vpow2.f32 %v712_v34  ;;  %640 = vadd.xlane.f32.xlu1 %v639_v36  ;;  %v720_v37 = vsel %vm290_vm5, %v2482_v35, 0.0 }
 0x402   :  { %721 = vadd.xlane.f32.xlu2 %v720_v37 }
 0x407   :  { %v2484_v38 = vpop.eup %2483 }
 0x408   :  { %v723_v39 = vsel %vm290_vm5, %v2484_v38, 0.0 }
 0x409   :  { %724 = vadd.xlane.f32.xlu0 %v723_v39 }
 0x45c   :  { %v632_v40 = vpop.xlane.xlu2 %631 }
 0x45d   :  { %2485 = vrcp.f32 %v632_v40 }
 0x463   :  { %v2486_v45 = vpop.eup %2485 }
 0x464   :  { %v635_v43 = vpop.xlane.xlu0 %634  ;;  %v646_v47 = vmul.f32 %v2486_v45, %v2470_v8 }
 0x465   :  { %2487 = vrcp.f32 %v635_v43  ;;  %v716_v44 = vpop.xlane.xlu1 %715 }
 0x466   :  { %2489 = vrcp.f32 %v716_v44 }
 0x46b   :  { %v2488_v46 = vpop.eup %2487 }
 0x46c   :  { %v647_v48 = vmul.f32 %v2488_v46, %v2472_v18  ;;  %v719_v50 = vpop.xlane.xlu2 %718  ;;  %v2490_v57 = vpop.eup %2489 }
 0x46d   :  { %2491 = vrcp.f32 %v719_v50  ;;  %v638_v54 = vpop.xlane.xlu0 %637  ;;  %v730_v59 = vmul.f32 %v2490_v57, %v2474_v20 }
 0x46e   :  { %v656_v52 = vpack.c.bf16 %v647_v48, %v646_v47  ;;  %2493 = vrcp.f32 %v638_v54 }
 0x470   :  { %2184 = vmatmul.msk.bf16.vlgmr.msra.gmra.mxu1 %vm290_vm5, %v656_v52 }
 0x473   :  { %v2492_v58 = vpop.eup %2491 }
 0x474   :  { %v731_v60 = vmul.f32 %v2492_v58, %v2476_v27  ;;  %v641_v61 = vpop.xlane.xlu1 %640  ;;  %v2494_v1 = vpop.eup %2493 }
 0x475   :  { %2495 = vrcp.f32 %v641_v61  ;;  %v722_v0 = vpop.xlane.xlu2 %721  ;;  %v648_v5 = vmul.f32 %v2494_v1, %v2478_v30  ;;  %v2449_v30 = vld [vmem:[%s3425_s17] ss:$0 sm:$0xff] }
 0x476   :  { %v740_v62 = vpack.c.bf16 %v731_v60, %v730_v59  ;;  %2497 = vrcp.f32 %v722_v0 }
 0x478   :  { %2182 = vmatmul.msk.bf16.vlgmr.msra.gmra.mxu0 %vm290_vm5, %v740_v62 }
 0x47b   :  { %v2496_v3 = vpop.eup %2495 }
 0x47c   :  { %v725_v4 = vpop.xlane.xlu0 %724  ;;  %v649_v6 = vmul.f32 %v2496_v3, %v2480_v33  ;;  %v2498_v8 = vpop.eup %2497 }
 0x47d   :  { %2499 = vrcp.f32 %v725_v4  ;;  %v732_v12 = vmul.f32 %v2498_v8, %v2482_v35  ;;  %v2405_v8 = vld [vmem:[%s3426_s18 + $0x8] sm:$0xff] }
 0x47e   :  { %v657_v7 = vpack.c.bf16 %v649_v6, %v648_v5  ;;  %v323_v6 = vld [vmem:[%s3435_s27] sm:$0xff]  ;;  %975 = vmatpush.bf16.msra.mxu2 %v2405_v8 }
 0x480   :  { %2185 = vmatmul.msk.bf16.gmra.mxu1 %vm290_vm5, %v657_v7  ;;  %v326_v7 = vld [vmem:[%s3435_s27 + $0x18] sm:$0xff] }
 0x483   :  { %v2500_v11 = vpop.eup %2499 }
 0x484   :  { %v733_v2 = vmul.f32 %v2500_v11, %v2484_v38 }
 0x486   :  { %v741_v13 = vpack.c.bf16 %v733_v2, %v732_v12 }
 0x488   :  { %2183 = vmatmul.msk.bf16.gmra.mxu0 %vm290_vm5, %v741_v13  ;;  %v2404_v13 = vld [vmem:[%s3426_s18] sm:$0xff] }
 0x489   :  { %976 = vmatpush.bf16.msra.mxu2 %v2404_v13  ;;  %v2410_v13 = vld [vmem:[%s3428_s20 + $0x20] sm:$0xff] }
 0x4ed   :  { %v782_v16 = vpop.f32.mrf.mxu1 }
 0x4f5   :  { %v757_v18 = vpop.f32.mrf.mxu0  ;;  %v784_v10 = vpop.f32.mrf.mxu1 }
 0x4f6   :  { %v783_v20 = vadd.f32 %v782_v16, %v757_v18 }
 0x4fd   :  { %v759_v19 = vpop.f32.mrf.mxu0  ;;  %v787_v23 = vpop.f32.mrf.mxu1 }
 0x4fe   :  { %v785_v21 = vadd.f32 %v784_v10, %v759_v19 }
 0x500   :  { %v792_v22 = vpack.c.bf16 %v785_v21, %v783_v20 }
 0x502   :  { %2194 = vmatmul.msk.bf16.vlgmr.msra.gmra.mxu3 %vm290_vm5, %v792_v22 }
 0x505   :  { %v762_v24 = vpop.f32.mrf.mxu0  ;;  %v789_v25 = vpop.f32.mrf.mxu1 }
 0x506   :  { %v788_v27 = vadd.f32 %v787_v23, %v762_v24 }
 0x50d   :  { %v764_v26 = vpop.f32.mrf.mxu0 }
 0x50e   :  { %v790_v28 = vadd.f32 %v789_v25, %v764_v26 }
 0x510   :  { %v793_v29 = vpack.c.bf16 %v790_v28, %v788_v27 }
 0x512   :  { %2195 = vmatmul.msk.bf16.gmra.mxu3 %vm290_vm5, %v793_v29 }
 0x585   :  { %v829_v31 = vpop.f32.mrf.mxu3 }
 0x586   :  { %v3008_v17 = vadd.f32 %v2449_v30, %v829_v31 }
 0x588   :  { %v839_v9 = vadd.f32 %v3008_v17, %v2841_v49 }
 0x58a   :  { %v843_v32 = vsel %vm290_vm5, %v839_v9, 0.0 }
 0x58b   :  { %844 = vadd.xlane.f32.xlu1 %v843_v32 }
 0x58d   :  { %v831_v33 = vpop.f32.mrf.mxu3 }
 0x58e   :  { %v3013_v34 = vadd.f32 %v2449_v30, %v831_v33 }
 0x590   :  { %v840_v35 = vadd.f32 %v3013_v34, %v2846_v51 }
 0x592   :  { %v846_v36 = vsel %vm290_vm5, %v840_v35, 0.0 }
 0x593   :  { %847 = vadd.xlane.f32.xlu2 %v846_v36 }
 0x595   :  { %v834_v37 = vpop.f32.mrf.mxu3 }
 0x596   :  { %v3018_v38 = vadd.f32 %v2449_v30, %v834_v37 }
 0x598   :  { %v841_v39 = vadd.f32 %v3018_v38, %v2850_v53 }
 0x59a   :  { %v849_v49 = vsel %vm290_vm5, %v841_v39, 0.0 }
 0x59b   :  { %850 = vadd.xlane.f32.xlu0 %v849_v49 }
 0x59d   :  { %v836_v40 = vpop.f32.mrf.mxu3 }
 0x59e   :  { %v3023_v43 = vadd.f32 %v2449_v30, %v836_v40 }
 0x5a0   :  { %v842_v44 = vadd.f32 %v3023_v43, %v2854_v55 }
 0x5a2   :  { %v852_v51 = vsel %vm290_vm5, %v842_v44, 0.0 }
 0x5a3   :  { %853 = vadd.xlane.f32.xlu1 %v852_v51  ;;  %v936_v51 = vperm.slane %v2913_v56, 3 }
 0x5fe   :  { %v845_v45 = vpop.xlane.xlu1 %844 }
 0x5ff   :  { %v855_v46 = vmul.f32 %v845_v45, %v2858_v63 }
 0x601   :  { %v859_v47 = vsub.f32 %v839_v9, %v855_v46 }
 0x603   :  { %v863_v48 = vmul.f32 %v859_v47, %v859_v47 }
 0x605   :  { %v867_v50 = vsel %vm290_vm5, %v863_v48, 0.0 }
 0x606   :  { %868 = vadd.xlane.f32.xlu2 %v867_v50  ;;  %v848_v53 = vpop.xlane.xlu2 %847 }
 0x607   :  { %v856_v52 = vmul.f32 %v848_v53, %v2858_v63 }
 0x609   :  { %v3031_v54 = vsub.f32 %v840_v35, %v856_v52  ;;  %v931_v35 = vperm.slane %v2913_v56, 2 }
 0x60b   :  { %v864_v57 = vmul.f32 %v3031_v54, %v3031_v54 }
 0x60d   :  { %v870_v55 = vsel %vm290_vm5, %v864_v57, 0.0 }
 0x60e   :  { %v851_v58 = vpop.xlane.xlu0 %850  ;;  %871 = vadd.xlane.f32.xlu0 %v870_v55 }
 0x60f   :  { %v857_v59 = vmul.f32 %v851_v58, %v2858_v63 }
 0x611   :  { %v3037_v60 = vsub.f32 %v841_v39, %v857_v59 }
 0x613   :  { %v865_v61 = vmul.f32 %v3037_v60, %v3037_v60 }
 0x615   :  { %v873_v62 = vsel %vm290_vm5, %v865_v61, 0.0 }
 0x616   :  { %v854_v0 = vpop.xlane.xlu1 %853  ;;  %874 = vadd.xlane.f32.xlu1 %v873_v62 }
 0x617   :  { %v858_v1 = vmul.f32 %v854_v0, %v2858_v63 }
 0x619   :  { %v3043_v3 = vsub.f32 %v842_v44, %v858_v1 }
 0x61b   :  { %v866_v4 = vmul.f32 %v3043_v3, %v3043_v3 }
 0x61d   :  { %v876_v5 = vsel %vm290_vm5, %v866_v4, 0.0 }
 0x61e   :  { %877 = vadd.xlane.f32.xlu2 %v876_v5 }
 0x622   :  { %1119 = vperm.xlu0 %2441, %v323_v6  }
 0x62a   :  { %1134 = vperm.xlu0 %2441, %v326_v7  }
 0x679   :  { %v869_v11 = vpop.xlane.xlu2 %868 }
 0x67a   :  { %v879_v12 = vmul.f32 %v869_v11, %v2858_v63 }
 0x67c   :  { %v883_v2 = vadd.f32 1e-05, %v879_v12 }
 0x67e   :  { %2501 = vrsqrt.f32 %v883_v2  ;;  %vm893_vm9 = vweird.f32 %v883_v2 }
 0x681   :  { %v872_v14 = vpop.xlane.xlu0 %871 }
 0x682   :  { %v880_v15 = vmul.f32 %v872_v14, %v2858_v63  ;;  %v2409_v14 = vld [vmem:[%s3428_s20 + $0x18] sm:$0xff] }
 0x684   :  { %v2502_v16 = vpop.eup %2501  ;;  %v884_v18 = vadd.f32 1e-05, %v880_v15  ;;  %v2408_v15 = vld [vmem:[%s3428_s20 + $0x10] sm:$0xff] }
 0x685   :  { %v888_v10 = vmul.f32 %v2502_v16, %v883_v2  ;;  %vm894_vm8 = vweird.f32 %v2502_v16  ;;  %v2413_v2 = vld [vmem:[%s3428_s20 + $0x38] sm:$0xff] }
 0x686   :  { %2503 = vrsqrt.f32 %v884_v18  ;;  %vm895_vm10 = vmor %vm893_vm9, %vm894_vm8  ;;  %vm903_vm12 = vweird.f32 %v884_v18  ;;  %1094 = vmatpush.bf16.msrb.mxu0 %v2413_v2  ;;  %v2451_v2 = vld [vmem:[%s3429_s21] ss:$0 sm:$0xff] }
 0x687   :  { %v889_v19 = vmul.f32 %v2502_v16, %v888_v10  ;;  %v2406_v10 = vld [vmem:[%s3428_s20] sm:$0xff] }
 0x689   :  { %v890_v20 = vmul.f32 0.5, %v889_v19  ;;  %v875_v21 = vpop.xlane.xlu1 %874 }
 0x68a   :  { %v881_v22 = vmul.f32 %v875_v21, %v2858_v63 }
 0x68b   :  { %v891_v23 = vsub.f32 1.5, %v890_v20 }
 0x68c   :  { %v2504_v24 = vpop.eup %2503  ;;  %v885_v25 = vadd.f32 1e-05, %v881_v22 }
 0x68d   :  { %v892_v26 = vmul.f32 %v2502_v16, %v891_v23  ;;  %v898_v27 = vmul.f32 %v2504_v24, %v884_v18  ;;  %vm904_vm11 = vweird.f32 %v2504_v24  ;;  %v2450_v18 = vld [vmem:[%s3427_s19] ss:$0 sm:$0xff] }
 0x68e   :  { %2505 = vrsqrt.f32 %v885_v25  ;;  %vm905_vm13 = vmor %vm903_vm12, %vm904_vm11  ;;  %vm913_vm15 = vweird.f32 %v885_v25 }
 0x68f   :  { %v899_v28 = vmul.f32 %v2504_v24, %v898_v27  ;;  %v896_v29 = vsel %vm895_vm10, %v2502_v16, %v892_v26  ;;  %v2407_v16 = vld [vmem:[%s3428_s20 + $0x8] sm:$0xff] }
 0x690   :  { %v927_v36 = vmul.f32 %v896_v29, %v859_v47 }
 0x691   :  { %v900_v30 = vmul.f32 0.5, %v899_v28  ;;  %v878_v31 = vpop.xlane.xlu2 %877 }
 0x692   :  { %v882_v9 = vmul.f32 %v878_v31, %v2858_v63  ;;  %v932_v45 = vmul.f32 %v931_v35, %v927_v36 }
 0x693   :  { %v901_v32 = vsub.f32 1.5, %v900_v30 }
 0x694   :  { %v2506_v33 = vpop.eup %2505  ;;  %v886_v37 = vadd.f32 1e-05, %v882_v9  ;;  %v937_v57 = vadd.f32 %v936_v51, %v932_v45 }
 0x695   :  { %v902_v39 = vmul.f32 %v2504_v24, %v901_v32  ;;  %v908_v49 = vmul.f32 %v2506_v33, %v885_v25  ;;  %vm914_vm14 = vweird.f32 %v2506_v33 }
 0x696   :  { %2507 = vrsqrt.f32 %v886_v37  ;;  %vm915_vm0 = vmor %vm913_vm15, %vm914_vm14  ;;  %vm923_vm2 = vweird.f32 %v886_v37 }
 0x697   :  { %v906_v40 = vsel %vm905_vm13, %v2504_v24, %v902_v39  ;;  %v909_v44 = vmul.f32 %v2506_v33, %v908_v49 }
 0x698   :  { %v928_v46 = vmul.f32 %v906_v40, %v3031_v54 }
 0x699   :  { %v910_v48 = vmul.f32 0.5, %v909_v44 }
 0x69a   :  { %v933_v50 = vmul.f32 %v931_v35, %v928_v46 }
 0x69b   :  { %v911_v53 = vsub.f32 1.5, %v910_v48 }
 0x69c   :  { %v2508_v52 = vpop.eup %2507  ;;  %v938_v55 = vadd.f32 %v936_v51, %v933_v50 }
 0x69d   :  { %v912_v47 = vmul.f32 %v2506_v33, %v911_v53  ;;  %v918_v58 = vmul.f32 %v2508_v52, %v886_v37  ;;  %vm924_vm1 = vweird.f32 %v2508_v52 }
 0x69e   :  { %v941_v59 = vpack.c.bf16 %v938_v55, %v937_v57  ;;  %vm925_vm3 = vmor %vm923_vm2, %vm924_vm1 }
 0x69f   :  { %v919_v61 = vmul.f32 %v2508_v52, %v918_v58  ;;  %v916_v62 = vsel %vm915_vm0, %v2506_v33, %v912_v47  ;;  %v324_v33 = vld [vmem:[%s3435_s27 + $0x8] sm:$0xff] }
 0x6a0   :  { %2204 = vmatmul.msk.bf16.vlgmr.msra.gmra.mxu2 %vm290_vm5, %v941_v59  ;;  %v929_v54 = vmul.f32 %v916_v62, %v3037_v60  ;;  %v2412_v60 = vld [vmem:[%s3428_s20 + $0x30] sm:$0xff]  ;;  %1124 = vperm.xlu1 %2442, %v324_v33  }
 0x6a1   :  { %v920_v56 = vmul.f32 0.5, %v919_v61  ;;  %1095 = vmatpush.bf16.msrb.mxu0 %v2412_v60 }
 0x6a2   :  { %v934_v6 = vmul.f32 %v931_v35, %v929_v54 }
 0x6a3   :  { %v921_v0 = vsub.f32 1.5, %v920_v56 }
 0x6a4   :  { %v939_v8 = vadd.f32 %v936_v51, %v934_v6 }
 0x6a5   :  { %v922_v1 = vmul.f32 %v2508_v52, %v921_v0 }
 0x6a7   :  { %v926_v4 = vsel %vm925_vm3, %v2508_v52, %v922_v1 }
 0x6a8   :  { %v930_v5 = vmul.f32 %v926_v4, %v3043_v3  ;;  %v2411_v3 = vld [vmem:[%s3428_s20 + $0x28] sm:$0xff] }
 0x6a9   :  { %1096 = vmatpush.bf16.msrb.mxu0 %v2411_v3 }
 0x6aa   :  { %v935_v7 = vmul.f32 %v931_v35, %v930_v5  ;;  %v325_v35 = vld [vmem:[%s3435_s27 + $0x10] sm:$0xff] }
 0x6ab   :  { %1129 = vperm.xlu2 %2443, %v325_v35  }
 0x6ac   :  { %v940_v11 = vadd.f32 %v936_v51, %v935_v7 }
 0x6ad   :  { %1097 = vmatpush.bf16.msrb.mxu0 %v2410_v13 }
 0x6ae   :  { %v942_v12 = vpack.c.bf16 %v940_v11, %v939_v8 }
 0x6b0   :  { %2205 = vmatmul.msk.bf16.gmra.mxu2 %vm290_vm5, %v942_v12 }
 0x6b1   :  { %1098 = vmatpush.bf16.msrb.mxu0 %v2409_v14  ;;  %v3108_v14 = vpop.permute.xlu0 %1119 }
 0x6b5   :  { %1099 = vmatpush.bf16.msrb.mxu0 %v2408_v15 }
 0x6b9   :  { %1100 = vmatpush.bf16.msrb.mxu0 %v2407_v16  ;;  %v2577_v16 = vld [vmem:[#allocation2] sm:$0xff] }
 0x6bd   :  { %1101 = vmatpush.bf16.msrb.mxu0 %v2406_v10 }
 0x723   :  { %v978_v19 = vpop.f32.mrf.mxu2 }
 0x724   :  { %v979_v20 = vadd.f32 %v2450_v18, %v978_v19 }
 0x726   :  { %v992_v21 = vmul.f32 %v979_v20, %v979_v20  ;;  %v988_v53 = vmul.f32 0.5, %v979_v20 }
 0x728   :  { %v996_v22 = vmul.f32 %v992_v21, %v979_v20 }
 0x72a   :  { %v1000_v23 = vmul.f32 0.044715, %v996_v22 }
 0x72b   :  { %v980_v24 = vpop.f32.mrf.mxu2 }
 0x72c   :  { %v1004_v25 = vadd.f32 %v1000_v23, %v979_v20  ;;  %v981_v26 = vadd.f32 %v2450_v18, %v980_v24  ;;  %v3112_v20 = vpop.permute.xlu1 %1124  ;;  %v2578_v23 = vld [vmem:[#allocation2 + $0x8] sm:$0xff] }
 0x72e   :  { %v993_v27 = vmul.f32 %v981_v26, %v981_v26  ;;  %v1008_v28 = vmul.f32 0.7978846, %v1004_v25  ;;  %v989_v52 = vmul.f32 0.5, %v981_v26 }
 0x730   :  { %v997_v29 = vmul.f32 %v993_v27, %v981_v26  ;;  %2509 = vtanh.f32 %v1008_v28  ;;  %v3121_v28 = vpop.permute.xlu2 %1129 }
 0x732   :  { %v1001_v30 = vmul.f32 0.044715, %v997_v29 }
 0x733   :  { %v983_v31 = vpop.f32.mrf.mxu2 }
 0x734   :  { %v1005_v9 = vadd.f32 %v1001_v30, %v981_v26  ;;  %v984_v32 = vadd.f32 %v2450_v18, %v983_v31  ;;  %v2579_v30 = vld [vmem:[#allocation2 + $0x10] sm:$0xff] }
 0x736   :  { %v1009_v36 = vmul.f32 0.7978846, %v1005_v9  ;;  %v994_v37 = vmul.f32 %v984_v32, %v984_v32  ;;  %v2510_v49 = vpop.eup %2509  ;;  %v990_v5 = vmul.f32 0.5, %v984_v32 }
 0x737   :  { %v1016_v46 = vadd.f32 1.0, %v2510_v49 }
 0x738   :  { %2511 = vtanh.f32 %v1009_v36  ;;  %v998_v39 = vmul.f32 %v994_v37, %v984_v32  ;;  %v3131_v37 = vpop.permute.xlu0 %1134 }
 0x739   :  { %v1020_v58 = vmul.f32 %v1016_v46, %v988_v53 }
 0x73a   :  { %v1002_v40 = vmul.f32 0.044715, %v998_v39  ;;  %v2580_v39 = vld [vmem:[#allocation2 + $0x18] sm:$0xff] }
 0x73b   :  { %v985_v44 = vpop.f32.mrf.mxu2 }
 0x73c   :  { %v986_v51 = vadd.f32 %v2450_v18, %v985_v44  ;;  %v1006_v45 = vadd.f32 %v1002_v40, %v984_v32 }
 0x73e   :  { %v2512_v48 = vpop.eup %2511  ;;  %v995_v50 = vmul.f32 %v986_v51, %v986_v51  ;;  %v1010_v47 = vmul.f32 0.7978846, %v1006_v45  ;;  %v991_v6 = vmul.f32 0.5, %v986_v51 }
 0x73f   :  { %v1017_v57 = vadd.f32 1.0, %v2512_v48 }
 0x740   :  { %v999_v55 = vmul.f32 %v995_v50, %v986_v51  ;;  %2513 = vtanh.f32 %v1010_v47 }
 0x741   :  { %v1021_v59 = vmul.f32 %v1017_v57, %v989_v52 }
 0x742   :  { %v1003_v61 = vmul.f32 0.044715, %v999_v55 }
 0x743   :  { %v1024_v62 = vpack.c.bf16 %v1021_v59, %v1020_v58 }
 0x744   :  { %v1007_v56 = vadd.f32 %v1003_v61, %v986_v51 }
 0x745   :  { %1102 = vmatmul.bf16.vlgmr.msrb.gmra.mxu0 %v1024_v62 }
 0x746   :  { %v1011_v0 = vmul.f32 0.7978846, %v1007_v56  ;;  %v2514_v54 = vpop.eup %2513 }
 0x747   :  { %v1018_v1 = vadd.f32 1.0, %v2514_v54 }
 0x748   :  { %2515 = vtanh.f32 %v1011_v0 }
 0x749   :  { %v1022_v8 = vmul.f32 %v1018_v1, %v990_v5 }
 0x74e   :  { %v2516_v4 = vpop.eup %2515 }
 0x74f   :  { %v1019_v7 = vadd.f32 1.0, %v2516_v4 }
 0x751   :  { %v1023_v11 = vmul.f32 %v1019_v7, %v991_v6  ;;  %v2417_v7 = vld [vmem:[%s3470_s3 + $0x18] sm:$0xff] }
 0x752   :  { %1330 = vmatpush.bf16.msrb.mxu3 %v2417_v7 }
 0x753   :  { %v1025_v12 = vpack.c.bf16 %v1023_v11, %v1022_v8  ;;  %v2415_v8 = vld [vmem:[%s3469_s7 + $0x18] sm:$0xff] }
 0x754   :  { %v2419_v11 = vld [vmem:[%s3471_s8 + $0x18] sm:$0xff]  ;;  %1289 = vmatpush.bf16.msrb.mxu1 %v2415_v8 }
 0x755   :  { %1107 = vmatmul.bf16.gmra.mxu0 %v1025_v12  ;;  %1371 = vmatpush.bf16.msrb.mxu2 %v2419_v11 }
 0x7c2   :  { %v1103_v60 = vpop.f32.mrf.mxu0 }
 0x7c3   :  { %v1104_v3 = vadd.f32 %v2451_v2, %v1103_v60 }
 0x7c5   :  { %v1113_v13 = vadd.f32 %v1104_v3, %v3008_v17  ;;  %v2414_v3 = vld [vmem:[%s3469_s7 + $0x10] sm:$0xff]  ;;  %s3473_s7 = sld [smem:[#allocation19_spill]] }
 0x7c6   :  { %1290 = vmatpush.bf16.msrb.mxu1 %v2414_v3 }
 0x7c7   :  { %v1137_v15 = vmul.f32 %v3108_v14, %v1113_v13  ;;  %v2416_v13 = vld [vmem:[%s3470_s3 + $0x10] sm:$0xff] }
 0x7c8   :  { %1331 = vmatpush.bf16.msrb.mxu3 %v2416_v13 }
 0x7c9   :  { %v1141_v18 = vadd.f32 %v2577_v16, %v1137_v15  ;;  %v2418_v15 = vld [vmem:[%s3471_s8 + $0x10] sm:$0xff] }
 0x7ca   :  { %v1105_v10 = vpop.f32.mrf.mxu0  ;;  %1372 = vmatpush.bf16.msrb.mxu2 %v2418_v15 }
 0x7cb   :  { %1145 = vst.msk [vmem:[#allocation2] sm:$0xff] %vm290_vm5, %v1141_v18  ;;  %v1106_v19 = vadd.f32 %v2451_v2, %v1105_v10 }
 0x7cd   :  { %v1114_v21 = vadd.f32 %v1106_v19, %v3013_v34 }
 0x7cf   :  { %v1138_v22 = vmul.f32 %v3112_v20, %v1114_v21 }
 0x7d1   :  { %v1142_v24 = vadd.f32 %v2578_v23, %v1138_v22 }
 0x7d2   :  { %v1108_v25 = vpop.f32.mrf.mxu0  ;;  %v3116_v17 = vld [vmem:[#allocation2] sm:$0xff] }
 0x7d3   :  { %1146 = vst.msk [vmem:[#allocation2 + $0x8] sm:$0xff] %vm290_vm5, %v1142_v24  ;;  %v1109_v26 = vadd.f32 %v2451_v2, %v1108_v25  ;;  %v1155_v27 = vsel %vm290_vm5, %v3116_v17, 0.0 }
 0x7d4   :  { %1156 = vadd.xlane.f32.xlu0 %v1155_v27 }
 0x7d5   :  { %v1115_v29 = vadd.f32 %v1109_v26, %v3018_v38 }
 0x7d7   :  { %v1139_v34 = vmul.f32 %v3121_v28, %v1115_v29 }
 0x7d9   :  { %v1143_v31 = vadd.f32 %v2579_v30, %v1139_v34 }
 0x7da   :  { %v1110_v9 = vpop.f32.mrf.mxu0  ;;  %v3125_v32 = vld [vmem:[#allocation2 + $0x8] sm:$0xff] }
 0x7db   :  { %1147 = vst.msk [vmem:[#allocation2 + $0x10] sm:$0xff] %vm290_vm5, %v1143_v31  ;;  %v1111_v33 = vadd.f32 %v2451_v2, %v1110_v9  ;;  %v1158_v35 = vsel %vm290_vm5, %v3125_v32, 0.0  ;;  %v3195_v9 = vld [vmem:[%s3472_s2 + $0x4] sm:$0xf] }
 0x7dc   :  { %1159 = vadd.xlane.f32.xlu2 %v1158_v35 }
 0x7dd   :  { %v1116_v36 = vadd.f32 %v1111_v33, %v3023_v43 }
 0x7df   :  { %v1140_v38 = vmul.f32 %v3131_v37, %v1116_v36 }
 0x7e1   :  { %v1144_v49 = vadd.f32 %v2580_v39, %v1140_v38 }
 0x7e2   :  { %v3134_v40 = vld [vmem:[#allocation2 + $0x10] sm:$0xff] }
 0x7e3   :  { %1148 = vst.msk [vmem:[#allocation2 + $0x18] sm:$0xff] %vm290_vm5, %v1144_v49  ;;  %v1161_v44 = vsel %vm290_vm5, %v3134_v40, 0.0 }
 0x7e4   :  { %1162 = vadd.xlane.f32.xlu1 %v1161_v44  ;;  %v1243_v44 = vperm.slane %v3195_v9, 0 }
 0x7ea   :  { %v3139_v51 = vld [vmem:[#allocation2 + $0x18] sm:$0xff] }
 0x7eb   :  { %v1164_v45 = vsel %vm290_vm5, %v3139_v51, 0.0 }
 0x7ec   :  { %1165 = vadd.xlane.f32.xlu0 %v1164_v45 }
 0x847   :  { %v1157_v43 = vpop.xlane.xlu0 %1156 }
 0x848   :  { %v1167_v46 = vmul.f32 %v1157_v43, %v2858_v63 }
 0x84a   :  { %v3145_v48 = vsub.f32 %v3116_v17, %v1167_v46 }
 0x84c   :  { %v1175_v50 = vmul.f32 %v3145_v48, %v3145_v48 }
 0x84e   :  { %v1179_v53 = vsel %vm290_vm5, %v1175_v50, 0.0 }
 0x84f   :  { %1180 = vadd.xlane.f32.xlu2 %v1179_v53  ;;  %v1160_v52 = vpop.xlane.xlu2 %1159 }
 0x850   :  { %v1168_v57 = vmul.f32 %v1160_v52, %v2858_v63 }
 0x852   :  { %v3152_v55 = vsub.f32 %v3125_v32, %v1168_v57  ;;  %v1248_v57 = vperm.slane %v3195_v9, 1 }
 0x854   :  { %v1176_v47 = vmul.f32 %v3152_v55, %v3152_v55 }
 0x856   :  { %v1182_v58 = vsel %vm290_vm5, %v1176_v47, 0.0 }
 0x857   :  { %v1163_v59 = vpop.xlane.xlu1 %1162  ;;  %1183 = vadd.xlane.f32.xlu1 %v1182_v58 }
 0x858   :  { %v1169_v61 = vmul.f32 %v1163_v59, %v2858_v63 }
 0x85a   :  { %v3159_v62 = vsub.f32 %v3134_v40, %v1169_v61 }
 0x85c   :  { %v1177_v56 = vmul.f32 %v3159_v62, %v3159_v62 }
 0x85e   :  { %v1185_v0 = vsel %vm290_vm5, %v1177_v56, 0.0 }
 0x85f   :  { %v1166_v54 = vpop.xlane.xlu0 %1165  ;;  %1186 = vadd.xlane.f32.xlu0 %v1185_v0 }
 0x860   :  { %v1170_v1 = vmul.f32 %v1166_v54, %v2858_v63 }
 0x862   :  { %v3166_v4 = vsub.f32 %v3139_v51, %v1170_v1 }
 0x864   :  { %v1178_v5 = vmul.f32 %v3166_v4, %v3166_v4 }
 0x866   :  { %v1188_v6 = vsel %vm290_vm5, %v1178_v5, 0.0 }
 0x867   :  { %1189 = vadd.xlane.f32.xlu2 %v1188_v6 }
 0x8c2   :  { %v1181_v12 = vpop.xlane.xlu2 %1180 }
 0x8c3   :  { %v1191_v2 = vmul.f32 %v1181_v12, %v2858_v63 }
 0x8c5   :  { %v1195_v60 = vadd.f32 1e-05, %v1191_v2 }
 0x8c7   :  { %2517 = vrsqrt.f32 %v1195_v60  ;;  %vm1205_vm6 = vweird.f32 %v1195_v60 }
 0x8ca   :  { %v1184_v16 = vpop.xlane.xlu1 %1183 }
 0x8cb   :  { %v1192_v18 = vmul.f32 %v1184_v16, %v2858_v63 }
 0x8cd   :  { %v2518_v10 = vpop.eup %2517  ;;  %v1196_v19 = vadd.f32 1e-05, %v1192_v18 }
 0x8ce   :  { %v1200_v21 = vmul.f32 %v2518_v10, %v1195_v60  ;;  %vm1206_vm4 = vweird.f32 %v2518_v10 }
 0x8cf   :  { %2519 = vrsqrt.f32 %v1196_v19  ;;  %vm1207_vm7 = vmor %vm1205_vm6, %vm1206_vm4  ;;  %vm1215_vm9 = vweird.f32 %v1196_v19 }
 0x8d0   :  { %v1201_v22 = vmul.f32 %v2518_v10, %v1200_v21 }
 0x8d2   :  { %v1202_v23 = vmul.f32 0.5, %v1201_v22  ;;  %v1187_v24 = vpop.xlane.xlu0 %1186 }
 0x8d3   :  { %v1193_v25 = vmul.f32 %v1187_v24, %v2858_v63 }
 0x8d4   :  { %v1203_v26 = vsub.f32 1.5, %v1202_v23 }
 0x8d5   :  { %v2520_v27 = vpop.eup %2519  ;;  %v1197_v29 = vadd.f32 1e-05, %v1193_v25 }
 0x8d6   :  { %v1204_v34 = vmul.f32 %v2518_v10, %v1203_v26  ;;  %v1210_v30 = vmul.f32 %v2520_v27, %v1196_v19  ;;  %vm1216_vm8 = vweird.f32 %v2520_v27  ;;  %v2453_v26 = vld [vmem:[%s3422_s14 + $0x1] ss:$0 sm:$0xff]  ;;  %s2621_s14 = smov 8  }
 0x8d7   :  { %2521 = vrsqrt.f32 %v1197_v29  ;;  %vm1217_vm10 = vmor %vm1215_vm9, %vm1216_vm8  ;;  %vm1225_vm12 = vweird.f32 %v1197_v29 }
 0x8d8   :  { %v1211_v31 = vmul.f32 %v2520_v27, %v1210_v30  ;;  %v1208_v33 = vsel %vm1207_vm7, %v2518_v10, %v1204_v34 }
 0x8d9   :  { %v1239_v45 = vmul.f32 %v1208_v33, %v3145_v48 }
 0x8da   :  { %v1212_v35 = vmul.f32 0.5, %v1211_v31  ;;  %v1190_v36 = vpop.xlane.xlu2 %1189 }
 0x8db   :  { %v1194_v38 = vmul.f32 %v1190_v36, %v2858_v63  ;;  %v1244_v47 = vmul.f32 %v1243_v44, %v1239_v45 }
 0x8dc   :  { %v1213_v39 = vsub.f32 1.5, %v1212_v35 }
 0x8dd   :  { %v2522_v49 = vpop.eup %2521  ;;  %v1198_v43 = vadd.f32 1e-05, %v1194_v38  ;;  %v1249_v54 = vadd.f32 %v1248_v57, %v1244_v47 }
 0x8de   :  { %v1214_v46 = vmul.f32 %v2520_v27, %v1213_v39  ;;  %v1220_v50 = vmul.f32 %v2522_v49, %v1197_v29  ;;  %vm1226_vm11 = vweird.f32 %v2522_v49 }
 0x8df   :  { %2523 = vrsqrt.f32 %v1198_v43  ;;  %vm1227_vm13 = vmor %vm1225_vm12, %vm1226_vm11  ;;  %vm1235_vm15 = vweird.f32 %v1198_v43 }
 0x8e0   :  { %v1218_v53 = vsel %vm1217_vm10, %v2520_v27, %v1214_v46  ;;  %v1221_v52 = vmul.f32 %v2522_v49, %v1220_v50  ;;  %v2452_v46 = vld [vmem:[%s3421_s13 + $0x1] ss:$0 sm:$0xff] }
 0x8e1   :  { %v1240_v58 = vmul.f32 %v1218_v53, %v3152_v55 }
 0x8e2   :  { %v1222_v59 = vmul.f32 0.5, %v1221_v52 }
 0x8e3   :  { %v1245_v61 = vmul.f32 %v1243_v44, %v1240_v58 }
 0x8e4   :  { %v1223_v56 = vsub.f32 1.5, %v1222_v59 }
 0x8e5   :  { %v2524_v0 = vpop.eup %2523  ;;  %v1250_v1 = vadd.f32 %v1248_v57, %v1245_v61 }
 0x8e6   :  { %v1224_v48 = vmul.f32 %v2522_v49, %v1223_v56  ;;  %v1230_v5 = vmul.f32 %v2524_v0, %v1198_v43  ;;  %vm1236_vm14 = vweird.f32 %v2524_v0 }
 0x8e7   :  { %v1253_v6 = vpack.c.bf16 %v1250_v1, %v1249_v54  ;;  %vm1237_vm0 = vmor %vm1235_vm15, %vm1236_vm14 }
 0x8e8   :  { %v1231_v7 = vmul.f32 %v2524_v0, %v1230_v5  ;;  %v1228_v8 = vsel %vm1227_vm13, %v2522_v49, %v1224_v48 }
 0x8e9   :  { %2252 = vmatmul.msk.bf16.vlgmr.msrb.gmra.mxu1 %vm290_vm5, %v1253_v6  ;;  %2267 = vmatmul.msk.bf16.vlgmr.msrb.gmra.mxu3 %vm290_vm5, %v1253_v6  ;;  %v1241_v12 = vmul.f32 %v1228_v8, %v3159_v62 }
 0x8ea   :  { %v1232_v11 = vmul.f32 0.5, %v1231_v7  ;;  %2282 = vmatmul.msk.bf16.vlgmr.msrb.gmra.mxu2 %vm290_vm5, %v1253_v6 }
 0x8eb   :  { %v1246_v13 = vmul.f32 %v1243_v44, %v1241_v12 }
 0x8ec   :  { %v1233_v55 = vsub.f32 1.5, %v1232_v11 }
 0x8ed   :  { %v1251_v16 = vadd.f32 %v1248_v57, %v1246_v13 }
 0x8ee   :  { %v1234_v2 = vmul.f32 %v2524_v0, %v1233_v55 }
 0x8f0   :  { %v1238_v60 = vsel %vm1237_vm0, %v2524_v0, %v1234_v2 }
 0x8f1   :  { %v1242_v3 = vmul.f32 %v1238_v60, %v3166_v4  ;;  %v2454_v4 = vld [vmem:[%s3423_s15 + $0x1] ss:$0 sm:$0xff]  ;;  %s2620_s15 = smov 128  }
 0x8f3   :  { %v1247_v15 = vmul.f32 %v1243_v44, %v1242_v3 }
 0x8f5   :  { %v1252_v18 = vadd.f32 %v1248_v57, %v1247_v15 }
 0x8f7   :  { %v1254_v10 = vpack.c.bf16 %v1252_v18, %v1251_v16 }
 0x8f9   :  { %2253 = vmatmul.msk.bf16.gmra.mxu1 %vm290_vm5, %v1254_v10  ;;  %2268 = vmatmul.msk.bf16.gmra.mxu3 %vm290_vm5, %v1254_v10 }
 0x8fa   :  { %2283 = vmatmul.msk.bf16.gmra.mxu2 %vm290_vm5, %v1254_v10 }
 0x966   :  { %v1292_v23 = vpop.f32.mrf.mxu1 }
 0x967   :  { %v1293_v54 = vadd.f32 %v2452_v46, %v1292_v23 }
 0x969   :  { %v1384_v8 = vmul.f32 0.25, %v1293_v54 }
 0x96b   :  { %v1390_v2 = vmul.f32 %v1384_v8, %v2936_v41  ;;  %v1479_v60 = vmul.f32 %v1384_v8, %v2938_v42 }
 0x96c   :  { %v1333_v19 = vpop.f32.mrf.mxu3 }
 0x96d   :  { %v1374_v21 = vpop.f32.mrf.mxu2  ;;  %v1334_v59 = vadd.f32 %v2453_v26, %v1333_v19 }
 0x96e   :  { %v1294_v27 = vpop.f32.mrf.mxu1  ;;  %v1375_v38 = vadd.f32 %v2454_v4, %v1374_v21 }
 0x96f   :  { %v1295_v61 = vadd.f32 %v2452_v46, %v1294_v27  ;;  %v2581_v27 = vld [vmem:[%s3433_s25] sm:$0xff] }
 0x970   :  { %v1471_v56 = vmul.f32 %v1375_v38, %v2936_v41  ;;  %v1554_v0 = vmul.f32 %v1375_v38, %v2938_v42 }
 0x971   :  { %v1385_v7 = vmul.f32 0.25, %v1295_v61 }
 0x973   :  { %v1391_v55 = vmul.f32 %v1385_v7, %v2936_v41  ;;  %v1480_v12 = vmul.f32 %v1385_v7, %v2938_v42 }
 0x974   :  { %v1335_v62 = vpop.f32.mrf.mxu3 }
 0x975   :  { %v1376_v22 = vpop.f32.mrf.mxu2  ;;  %v1336_v50 = vadd.f32 %v2453_v26, %v1335_v62  ;;  %v1394_v3 = vpack.c.bf16 %v1391_v55, %v1390_v2  ;;  %v1483_v13 = vpack.c.bf16 %v1480_v12, %v1479_v60 }
 0x976   :  { %v1377_v30 = vadd.f32 %v2454_v4, %v1376_v22  ;;  %v1297_v48 = vpop.f32.mrf.mxu1 }
 0x977   :  { %v1388_v1 = vpack.c.bf16 %v1336_v50, %v1334_v59  ;;  %v1298_v18 = vadd.f32 %v2452_v46, %v1297_v48 }
 0x978   :  { %v1472_v53 = vmul.f32 %v1377_v30, %v2936_v41  ;;  %v1555_v57 = vmul.f32 %v1377_v30, %v2938_v42 }
 0x979   :  { %v1403_v11 = vsel %vm290_vm5, %v1388_v1, 0  ;;  %v1386_v19 = vmul.f32 0.25, %v1298_v18 }
 0x97a   :  { %v1558_v5 = vpack.c.bf16 %v1555_v57, %v1554_v0  ;;  %v1475_v6 = vpack.c.bf16 %v1472_v53, %v1471_v56 }
 0x97b   :  { %v1392_v22 = vmul.f32 %v1386_v19, %v2936_v41  ;;  %v1481_v23 = vmul.f32 %v1386_v19, %v2938_v42 }
 0x97c   :  { %v1338_v24 = vpop.f32.mrf.mxu3 }
 0x97d   :  { %v1379_v25 = vpop.f32.mrf.mxu2  ;;  %v1339_v31 = vadd.f32 %v2453_v26, %v1338_v24 }
 0x97e   :  { %v1380_v29 = vadd.f32 %v2454_v4, %v1379_v25  ;;  %v1299_v15 = vpop.f32.mrf.mxu1 }
 0x97f   :  { %v1300_v16 = vadd.f32 %v2452_v46, %v1299_v15 }
 0x980   :  { %v1473_v49 = vmul.f32 %v1380_v29, %v2936_v41  ;;  %v1556_v44 = vmul.f32 %v1380_v29, %v2938_v42 }
 0x981   :  { %v1387_v10 = vmul.f32 0.25, %v1300_v16 }
 0x983   :  { %v1393_v21 = vmul.f32 %v1387_v10, %v2936_v41  ;;  %v1482_v62 = vmul.f32 %v1387_v10, %v2938_v42 }
 0x984   :  { %v1340_v34 = vpop.f32.mrf.mxu3 }
 0x985   :  { %v1341_v33 = vadd.f32 %v2453_v26, %v1340_v34  ;;  %v1381_v35 = vpop.f32.mrf.mxu2  ;;  %v1395_v24 = vpack.c.bf16 %v1393_v21, %v1392_v22  ;;  %v1484_v25 = vpack.c.bf16 %v1482_v62, %v1481_v23 }
 0x986   :  { %v1382_v36 = vadd.f32 %v2454_v4, %v1381_v35 }
 0x987   :  { %v1389_v39 = vpack.c.bf16 %v1341_v33, %v1339_v31  ;;  %v2582_v33 = vld [vmem:[%s3433_s25 + $0x8] sm:$0xff] }
 0x988   :  { %v1474_v45 = vmul.f32 %v1382_v36, %v2936_v41  ;;  %v1557_v43 = vmul.f32 %v1382_v36, %v2938_v42 }
 0x989   :  { %v1406_v52 = vsel %vm290_vm5, %v1389_v39, 0 }
 0x98a   :  { %v1476_v47 = vpack.c.bf16 %v1474_v45, %v1473_v49  ;;  %v1559_v58 = vpack.c.bf16 %v1557_v43, %v1556_v44  ;;  %1414 = vmatpush.bf16.xpose.msra.mxu0 %v1406_v52  ;;  %1497 = vmatpush.bf16.xpose.msra.mxu1 %v1406_v52  ;;  %v2583_v45 = vld [vmem:[%s3433_s25 + $0x10] sm:$0xff] }
 0x98c   :  { %1574 = vmatpush.bf16.msra.mxu3 %v1559_v58  ;;  %1599 = vmatpush.bf16.msra.mxu2 %v1476_v47  ;;  %v2584_v47 = vld [vmem:[%s3433_s25 + $0x18] sm:$0xff] }
 0x990   :  { %1575 = vmatpush.bf16.msra.mxu3 %v1558_v5  ;;  %1600 = vmatpush.bf16.msra.mxu2 %v1475_v6 }
 0x992   :  { %1415 = vmatpush.bf16.xpose.msra.mxu0 %v1403_v11  ;;  %1498 = vmatpush.bf16.xpose.msra.mxu1 %v1403_v11 }
 0x999   :  { %2284 = vmatmul.msk.bf16.vlgmr.msra.gmra.mxu0 %vm290_vm5, %v1394_v3  ;;  %2286 = vmatmul.msk.bf16.vlgmr.msra.gmra.mxu1 %vm290_vm5, %v1483_v13 }
 0x9a9   :  { %2285 = vmatmul.msk.bf16.gmra.mxu0 %vm290_vm5, %v1395_v24  ;;  %2287 = vmatmul.msk.bf16.gmra.mxu1 %vm290_vm5, %v1484_v25 }
 0xa16   :  { %v1417_v4 = vpop.f32.mrf.mxu0  ;;  %v1500_v26 = vpop.f32.mrf.mxu1 }
 0xa17   :  { %v1418_v29 = vadd.f32 %v2581_v27, %v1417_v4  ;;  %v1501_v34 = vadd.f32 %v2581_v27, %v1500_v26 }
 0xa19   :  { %v1427_v30 = vsel %vm290_vm5, %v1418_v29, -inf  ;;  %v1510_v41 = vsel %vm290_vm5, %v1501_v34, -inf }
 0xa1a   :  { %1428 = vmax.xlane.f32.xlu1 %v1427_v30  ;;  %1511 = vmax.xlane.f32.xlu2 %v1510_v41 }
 0xa1e   :  { %v1419_v42 = vpop.f32.mrf.mxu0  ;;  %v1502_v31 = vpop.f32.mrf.mxu1 }
 0xa1f   :  { %v1420_v35 = vadd.f32 %v2582_v33, %v1419_v42  ;;  %v1503_v36 = vadd.f32 %v2582_v33, %v1502_v31 }
 0xa21   :  { %v1430_v38 = vsel %vm290_vm5, %v1420_v35, -inf  ;;  %v1513_v39 = vsel %vm290_vm5, %v1503_v36, -inf }
 0xa22   :  { %1431 = vmax.xlane.f32.xlu0 %v1430_v38  ;;  %1514 = vmax.xlane.f32.xlu1 %v1513_v39 }
 0xa26   :  { %v1422_v49 = vpop.f32.mrf.mxu0  ;;  %v1505_v44 = vpop.f32.mrf.mxu1 }
 0xa27   :  { %v1423_v43 = vadd.f32 %v2583_v45, %v1422_v49  ;;  %v1506_v46 = vadd.f32 %v2583_v45, %v1505_v44  ;;  %v2421_v45 = vld [vmem:[%s3424_s16 + $0x18] sm:$0xff] }
 0xa28   :  { %1648 = vmatpush.bf16.msrb.mxu0 %v2421_v45 }
 0xa29   :  { %v1516_v50 = vsel %vm290_vm5, %v1506_v46, -inf  ;;  %v1433_v53 = vsel %vm290_vm5, %v1423_v43, -inf }
 0xa2a   :  { %1517 = vmax.xlane.f32.xlu1 %v1516_v50  ;;  %1434 = vmax.xlane.f32.xlu0 %v1433_v53 }
 0xa2e   :  { %v1424_v52 = vpop.f32.mrf.mxu0  ;;  %v1507_v57 = vpop.f32.mrf.mxu1 }
 0xa2f   :  { %v1425_v58 = vadd.f32 %v2584_v47, %v1424_v52  ;;  %v1508_v59 = vadd.f32 %v2584_v47, %v1507_v57 }
 0xa31   :  { %v1436_v61 = vsel %vm290_vm5, %v1425_v58, -inf  ;;  %v1519_v56 = vsel %vm290_vm5, %v1508_v59, -inf }
 0xa32   :  { %1437 = vmax.xlane.f32.xlu2 %v1436_v61  ;;  %1520 = vmax.xlane.f32.xlu0 %v1519_v56 }
 0xa8d   :  { %v1429_v0 = vpop.xlane.xlu1 %1428  ;;  %v1512_v54 = vpop.xlane.xlu2 %1511 }
 0xa8e   :  { %v1439_v1 = vsub.f32 %v1418_v29, %v1429_v0  ;;  %v1522_v48 = vsub.f32 %v1501_v34, %v1512_v54 }
 0xa90   :  { %v1443_v5 = vmul.f32 1.442695, %v1439_v1  ;;  %v1526_v6 = vmul.f32 1.442695, %v1522_v48 }
 0xa92   :  { %2525 = vpow2.f32 %v1443_v5 }
 0xa93   :  { %2527 = vpow2.f32 %v1526_v6 }
 0xa95   :  { %v1432_v7 = vpop.xlane.xlu0 %1431  ;;  %v1515_v8 = vpop.xlane.xlu1 %1514 }
 0xa96   :  { %v1440_v11 = vsub.f32 %v1420_v35, %v1432_v7  ;;  %v1523_v55 = vsub.f32 %v1503_v36, %v1515_v8 }
 0xa98   :  { %v2526_v12 = vpop.eup %2525  ;;  %v1445_v2 = vmul.f32 1.442695, %v1440_v11  ;;  %v1528_v60 = vmul.f32 1.442695, %v1523_v55 }
 0xa99   :  { %v2528_v3 = vpop.eup %2527  ;;  %v1451_v13 = vsel %vm290_vm5, %v2526_v12, 0.0 }
 0xa9a   :  { %2529 = vpow2.f32 %v1445_v2  ;;  %1452 = vadd.xlane.f32.xlu2 %v1451_v13  ;;  %v1534_v15 = vsel %vm290_vm5, %v2528_v3, 0.0 }
 0xa9b   :  { %2531 = vpow2.f32 %v1528_v60  ;;  %1535 = vadd.xlane.f32.xlu0 %v1534_v15  ;;  %v2420_v15 = vld [vmem:[%s3424_s16 + $0x10] sm:$0xff] }
 0xa9c   :  { %1649 = vmatpush.bf16.msrb.mxu0 %v2420_v15 }
 0xa9d   :  { %v1518_v16 = vpop.xlane.xlu1 %1517  ;;  %v1435_v18 = vpop.xlane.xlu0 %1434 }
 0xa9e   :  { %v1524_v10 = vsub.f32 %v1506_v46, %v1518_v16  ;;  %v1441_v19 = vsub.f32 %v1423_v43, %v1435_v18 }
 0xaa0   :  { %v2530_v21 = vpop.eup %2529  ;;  %v1530_v62 = vmul.f32 1.442695, %v1524_v10  ;;  %v1447_v22 = vmul.f32 1.442695, %v1441_v19 }
 0xaa1   :  { %v2532_v23 = vpop.eup %2531  ;;  %v1454_v24 = vsel %vm290_vm5, %v2530_v21, 0.0 }
 0xaa2   :  { %2533 = vpow2.f32 %v1530_v62  ;;  %1455 = vadd.xlane.f32.xlu1 %v1454_v24  ;;  %v1537_v25 = vsel %vm290_vm5, %v2532_v23, 0.0 }
 0xaa3   :  { %2535 = vpow2.f32 %v1447_v22  ;;  %1538 = vadd.xlane.f32.xlu2 %v1537_v25 }
 0xaa5   :  { %v1438_v4 = vpop.xlane.xlu2 %1437  ;;  %v1521_v26 = vpop.xlane.xlu0 %1520 }
 0xaa6   :  { %v1442_v27 = vsub.f32 %v1425_v58, %v1438_v4  ;;  %v1525_v29 = vsub.f32 %v1508_v59, %v1521_v26 }
 0xaa8   :  { %v2534_v34 = vpop.eup %2533  ;;  %v1449_v30 = vmul.f32 1.442695, %v1442_v27  ;;  %v1532_v41 = vmul.f32 1.442695, %v1525_v29 }
 0xaa9   :  { %v2536_v42 = vpop.eup %2535  ;;  %v1540_v31 = vsel %vm290_vm5, %v2534_v34, 0.0 }
 0xaaa   :  { %2537 = vpow2.f32 %v1449_v30  ;;  %v1457_v33 = vsel %vm290_vm5, %v2536_v42, 0.0 }
 0xaab   :  { %2539 = vpow2.f32 %v1532_v41  ;;  %1541 = vadd.xlane.f32.xlu2 %v1540_v31  ;;  %1458 = vadd.xlane.f32.xlu1 %v1457_v33 }
 0xab0   :  { %v2538_v35 = vpop.eup %2537 }
 0xab1   :  { %v2540_v36 = vpop.eup %2539  ;;  %v1460_v38 = vsel %vm290_vm5, %v2538_v35, 0.0 }
 0xab2   :  { %1461 = vadd.xlane.f32.xlu0 %v1460_v38  ;;  %v1543_v39 = vsel %vm290_vm5, %v2540_v36, 0.0 }
 0xab3   :  { %1544 = vadd.xlane.f32.xlu1 %v1543_v39 }
 0xb0d   :  { %v1453_v49 = vpop.xlane.xlu2 %1452 }
 0xb0e   :  { %v1536_v44 = vpop.xlane.xlu0 %1535  ;;  %2541 = vrcp.f32 %v1453_v49 }
 0xb0f   :  { %2543 = vrcp.f32 %v1536_v44 }
 0xb14   :  { %v2542_v50 = vpop.eup %2541 }
 0xb15   :  { %v1456_v43 = vpop.xlane.xlu1 %1455  ;;  %v2544_v53 = vpop.eup %2543  ;;  %v1467_v47 = vmul.f32 %v2542_v50, %v2526_v12 }
 0xb16   :  { %2545 = vrcp.f32 %v1456_v43  ;;  %v1539_v46 = vpop.xlane.xlu2 %1538  ;;  %v1550_v59 = vmul.f32 %v2544_v53, %v2528_v3 }
 0xb17   :  { %2547 = vrcp.f32 %v1539_v46 }
 0xb1c   :  { %v2546_v52 = vpop.eup %2545 }
 0xb1d   :  { %v2548_v57 = vpop.eup %2547  ;;  %v1468_v58 = vmul.f32 %v2546_v52, %v2530_v21 }
 0xb1e   :  { %v1551_v61 = vmul.f32 %v2548_v57, %v2532_v23  ;;  %v1459_v56 = vpop.xlane.xlu1 %1458  ;;  %v1542_v1 = vpop.xlane.xlu2 %1541 }
 0xb1f   :  { %v1477_v0 = vpack.c.bf16 %v1468_v58, %v1467_v47  ;;  %2549 = vrcp.f32 %v1459_v56 }
 0xb20   :  { %v1560_v54 = vpack.c.bf16 %v1551_v61, %v1550_v59  ;;  %2551 = vrcp.f32 %v1542_v1 }
 0xb21   :  { %2290 = vmatmul.msk.bf16.vlgmr.msra.gmra.mxu2 %vm290_vm5, %v1477_v0 }
 0xb22   :  { %2288 = vmatmul.msk.bf16.vlgmr.msra.gmra.mxu3 %vm290_vm5, %v1560_v54 }
 0xb25   :  { %v1462_v48 = vpop.xlane.xlu0 %1461  ;;  %v2550_v6 = vpop.eup %2549 }
 0xb26   :  { %v1545_v5 = vpop.xlane.xlu1 %1544  ;;  %2553 = vrcp.f32 %v1462_v48  ;;  %v2552_v7 = vpop.eup %2551  ;;  %v1469_v55 = vmul.f32 %v2550_v6, %v2536_v42 }
 0xb27   :  { %2555 = vrcp.f32 %v1545_v5  ;;  %v1552_v2 = vmul.f32 %v2552_v7, %v2534_v34  ;;  %v2455_v34 = vld [vmem:[%s3425_s17 + $0x1] ss:$0 sm:$0xff] }
 0xb2c   :  { %v2554_v8 = vpop.eup %2553 }
 0xb2d   :  { %v2556_v11 = vpop.eup %2555  ;;  %v1470_v12 = vmul.f32 %v2554_v8, %v2538_v35 }
 0xb2e   :  { %v1553_v60 = vmul.f32 %v2556_v11, %v2540_v36 }
 0xb2f   :  { %v1478_v3 = vpack.c.bf16 %v1470_v12, %v1469_v55  ;;  %v2423_v55 = vld [vmem:[%s3426_s18 + $0x18] sm:$0xff] }
 0xb30   :  { %v1561_v13 = vpack.c.bf16 %v1553_v60, %v1552_v2  ;;  %1799 = vmatpush.bf16.msrb.mxu1 %v2423_v55 }
 0xb31   :  { %2291 = vmatmul.msk.bf16.gmra.mxu2 %vm290_vm5, %v1478_v3  ;;  %v2422_v3 = vld [vmem:[%s3426_s18 + $0x10] sm:$0xff]  ;;  %s2619_s18 = smov [#allocation3]  }
 0xb32   :  { %2289 = vmatmul.msk.bf16.gmra.mxu3 %vm290_vm5, %v1561_v13  ;;  %s2068_s8 = sshll.u32 %s2619_s18, 4  ;;  %s2069_s8 = int_to_ptr.vmem [resolvable:$true] %s2068_s8 }
 0xb34   :  { %1800 = vmatpush.bf16.msrb.mxu1 %v2422_v3 }
 0xba4   :  { %v1602_v16 = vpop.f32.mrf.mxu2 }
 0xba5   :  { %v1577_v18 = vpop.f32.mrf.mxu3 }
 0xba6   :  { %v1603_v21 = vadd.f32 %v1602_v16, %v1577_v18 }
 0xbac   :  { %v1604_v10 = vpop.f32.mrf.mxu2 }
 0xbad   :  { %v1579_v19 = vpop.f32.mrf.mxu3 }
 0xbae   :  { %v1605_v62 = vadd.f32 %v1604_v10, %v1579_v19 }
 0xbb0   :  { %v1612_v22 = vpack.c.bf16 %v1605_v62, %v1603_v21 }
 0xbb2   :  { %2305 = vmatmul.msk.bf16.vlgmr.msrb.gmra.mxu0 %vm290_vm5, %v1612_v22 }
 0xbb4   :  { %v1607_v23 = vpop.f32.mrf.mxu2 }
 0xbb5   :  { %v1582_v24 = vpop.f32.mrf.mxu3 }
 0xbb6   :  { %v1608_v26 = vadd.f32 %v1607_v23, %v1582_v24 }
 0xbbc   :  { %v1609_v25 = vpop.f32.mrf.mxu2 }
 0xbbd   :  { %v1584_v4 = vpop.f32.mrf.mxu3 }
 0xbbe   :  { %v1610_v27 = vadd.f32 %v1609_v25, %v1584_v4 }
 0xbc0   :  { %v1613_v29 = vpack.c.bf16 %v1610_v27, %v1608_v26 }
 0xbc2   :  { %2306 = vmatmul.msk.bf16.gmra.mxu0 %vm290_vm5, %v1613_v29 }
 0xc2f   :  { %v1651_v30 = vpop.f32.mrf.mxu0 }
 0xc30   :  { %v3284_v41 = vadd.f32 %v2455_v34, %v1651_v30 }
 0xc32   :  { %v1661_v42 = vadd.f32 %v3284_v41, %v3116_v17 }
 0xc34   :  { %v1665_v31 = vsel %vm290_vm5, %v1661_v42, 0.0 }
 0xc35   :  { %1666 = vadd.xlane.f32.xlu0 %v1665_v31 }
 0xc37   :  { %v1653_v33 = vpop.f32.mrf.mxu0 }
 0xc38   :  { %v3289_v35 = vadd.f32 %v2455_v34, %v1653_v33 }
 0xc3a   :  { %v1662_v36 = vadd.f32 %v3289_v35, %v3125_v32 }
 0xc3c   :  { %v1668_v38 = vsel %vm290_vm5, %v1662_v36, 0.0 }
 0xc3d   :  { %1669 = vadd.xlane.f32.xlu2 %v1668_v38 }
 0xc3f   :  { %v1656_v39 = vpop.f32.mrf.mxu0 }
 0xc40   :  { %v3294_v49 = vadd.f32 %v2455_v34, %v1656_v39 }
 0xc42   :  { %v1663_v44 = vadd.f32 %v3294_v49, %v3134_v40 }
 0xc44   :  { %v1671_v17 = vsel %vm290_vm5, %v1663_v44, 0.0 }
 0xc45   :  { %1672 = vadd.xlane.f32.xlu1 %v1671_v17 }
 0xc47   :  { %v1658_v45 = vpop.f32.mrf.mxu0 }
 0xc48   :  { %v3299_v43 = vadd.f32 %v2455_v34, %v1658_v45 }
 0xc4a   :  { %v1664_v46 = vadd.f32 %v3299_v43, %v3139_v51 }
 0xc4c   :  { %v1674_v32 = vsel %vm290_vm5, %v1664_v46, 0.0 }
 0xc4d   :  { %1675 = vadd.xlane.f32.xlu0 %v1674_v32  ;;  %v1758_v32 = vperm.slane %v3195_v9, 3 }
 0xca8   :  { %v1667_v50 = vpop.xlane.xlu0 %1666 }
 0xca9   :  { %v1677_v53 = vmul.f32 %v1667_v50, %v2858_v63 }
 0xcab   :  { %v1681_v52 = vsub.f32 %v1661_v42, %v1677_v53 }
 0xcad   :  { %v1685_v57 = vmul.f32 %v1681_v52, %v1681_v52 }
 0xcaf   :  { %v1689_v47 = vsel %vm290_vm5, %v1685_v57, 0.0 }
 0xcb0   :  { %v1670_v40 = vpop.xlane.xlu2 %1669  ;;  %1690 = vadd.xlane.f32.xlu2 %v1689_v47 }
 0xcb1   :  { %v1678_v58 = vmul.f32 %v1670_v40, %v2858_v63 }
 0xcb3   :  { %v3307_v59 = vsub.f32 %v1662_v36, %v1678_v58  ;;  %v1753_v36 = vperm.slane %v3195_v9, 2 }
 0xcb5   :  { %v1686_v61 = vmul.f32 %v3307_v59, %v3307_v59 }
 0xcb7   :  { %v1692_v51 = vsel %vm290_vm5, %v1686_v61, 0.0 }
 0xcb8   :  { %1693 = vadd.xlane.f32.xlu1 %v1692_v51  ;;  %v1673_v56 = vpop.xlane.xlu1 %1672 }
 0xcb9   :  { %v1679_v0 = vmul.f32 %v1673_v56, %v2858_v63 }
 0xcbb   :  { %v3313_v54 = vsub.f32 %v1663_v44, %v1679_v0 }
 0xcbd   :  { %v1687_v1 = vmul.f32 %v3313_v54, %v3313_v54 }
 0xcbf   :  { %v1695_v48 = vsel %vm290_vm5, %v1687_v1, 0.0 }
 0xcc0   :  { %1696 = vadd.xlane.f32.xlu0 %v1695_v48  ;;  %v1676_v5 = vpop.xlane.xlu0 %1675 }
 0xcc1   :  { %v1680_v6 = vmul.f32 %v1676_v5, %v2858_v63 }
 0xcc3   :  { %v3319_v7 = vsub.f32 %v1664_v46, %v1680_v6 }
 0xcc5   :  { %v1688_v8 = vmul.f32 %v3319_v7, %v3319_v7 }
 0xcc7   :  { %v1698_v11 = vsel %vm290_vm5, %v1688_v8, 0.0 }
 0xcc8   :  { %1699 = vadd.xlane.f32.xlu2 %v1698_v11 }
 0xd23   :  { %v1691_v12 = vpop.xlane.xlu2 %1690 }
 0xd24   :  { %v1701_v2 = vmul.f32 %v1691_v12, %v2858_v63 }
 0xd26   :  { %v1705_v60 = vadd.f32 1e-05, %v1701_v2 }
 0xd28   :  { %2557 = vrsqrt.f32 %v1705_v60  ;;  %vm1715_vm2 = vweird.f32 %v1705_v60 }
 0xd2b   :  { %v1694_v13 = vpop.xlane.xlu1 %1693 }
 0xd2c   :  { %v1702_v15 = vmul.f32 %v1694_v13, %v2858_v63  ;;  %v2431_v13 = vld [vmem:[%s3428_s20 + $0x78] sm:$0xff] }
 0xd2d   :  { %1920 = vmatpush.bf16.msrb.mxu3 %v2431_v13  ;;  %v2457_v13 = vld [vmem:[%s3429_s21 + $0x1] ss:$0 sm:$0xff] }
 0xd2e   :  { %v2558_v16 = vpop.eup %2557  ;;  %v1706_v18 = vadd.f32 1e-05, %v1702_v15  ;;  %v2428_v15 = vld [vmem:[%s3428_s20 + $0x60] sm:$0xff] }
 0xd2f   :  { %v1710_v10 = vmul.f32 %v2558_v16, %v1705_v60  ;;  %vm1716_vm1 = vweird.f32 %v2558_v16 }
 0xd30   :  { %2559 = vrsqrt.f32 %v1706_v18  ;;  %vm1717_vm3 = vmor %vm1715_vm2, %vm1716_vm1  ;;  %vm1725_vm6 = vweird.f32 %v1706_v18 }
 0xd31   :  { %v1711_v19 = vmul.f32 %v2558_v16, %v1710_v10  ;;  %v2425_v10 = vld [vmem:[%s3428_s20 + $0x48] sm:$0xff] }
 0xd33   :  { %v1712_v21 = vmul.f32 0.5, %v1711_v19  ;;  %v1697_v62 = vpop.xlane.xlu0 %1696  ;;  %v2456_v19 = vld [vmem:[%s3427_s19 + $0x1] ss:$0 sm:$0xff] }
 0xd34   :  { %v1703_v22 = vmul.f32 %v1697_v62, %v2858_v63 }
 0xd35   :  { %v1713_v23 = vsub.f32 1.5, %v1712_v21  ;;  %v2424_v21 = vld [vmem:[%s3428_s20 + $0x40] sm:$0xff] }
 0xd36   :  { %v2560_v24 = vpop.eup %2559  ;;  %v1707_v25 = vadd.f32 1e-05, %v1703_v22 }
 0xd37   :  { %v1714_v4 = vmul.f32 %v2558_v16, %v1713_v23  ;;  %v1720_v26 = vmul.f32 %v2560_v24, %v1706_v18  ;;  %vm1726_vm4 = vweird.f32 %v2560_v24  ;;  %v2426_v18 = vld [vmem:[%s3428_s20 + $0x50] sm:$0xff] }
 0xd38   :  { %2561 = vrsqrt.f32 %v1707_v25  ;;  %vm1727_vm7 = vmor %vm1725_vm6, %vm1726_vm4  ;;  %vm1735_vm9 = vweird.f32 %v1707_v25 }
 0xd39   :  { %v1721_v27 = vmul.f32 %v2560_v24, %v1720_v26  ;;  %v1718_v29 = vsel %vm1717_vm3, %v2558_v16, %v1714_v4  ;;  %v2427_v16 = vld [vmem:[%s3428_s20 + $0x58] sm:$0xff] }
 0xd3a   :  { %v1749_v38 = vmul.f32 %v1718_v29, %v1681_v52 }
 0xd3b   :  { %v1722_v34 = vmul.f32 0.5, %v1721_v27  ;;  %v1700_v30 = vpop.xlane.xlu2 %1699 }
 0xd3c   :  { %v1704_v42 = vmul.f32 %v1700_v30, %v2858_v63  ;;  %v1754_v50 = vmul.f32 %v1753_v36, %v1749_v38 }
 0xd3d   :  { %v1723_v31 = vsub.f32 1.5, %v1722_v34 }
 0xd3e   :  { %v2562_v33 = vpop.eup %2561  ;;  %v1708_v39 = vadd.f32 1e-05, %v1704_v42  ;;  %v1759_v61 = vadd.f32 %v1758_v32, %v1754_v50 }
 0xd3f   :  { %v1724_v44 = vmul.f32 %v2560_v24, %v1723_v31  ;;  %v1730_v17 = vmul.f32 %v2562_v33, %v1707_v25  ;;  %vm1736_vm8 = vweird.f32 %v2562_v33 }
 0xd40   :  { %2563 = vrsqrt.f32 %v1708_v39  ;;  %vm1737_vm10 = vmor %vm1735_vm9, %vm1736_vm8  ;;  %vm1745_vm12 = vweird.f32 %v1708_v39 }
 0xd41   :  { %v1728_v45 = vsel %vm1727_vm7, %v2560_v24, %v1724_v44  ;;  %v1731_v46 = vmul.f32 %v2562_v33, %v1730_v17 }
 0xd42   :  { %v1750_v53 = vmul.f32 %v1728_v45, %v3307_v59 }
 0xd43   :  { %v1732_v57 = vmul.f32 0.5, %v1731_v46 }
 0xd44   :  { %v1755_v47 = vmul.f32 %v1753_v36, %v1750_v53 }
 0xd45   :  { %v1733_v40 = vsub.f32 1.5, %v1732_v57 }
 0xd46   :  { %v2564_v58 = vpop.eup %2563  ;;  %v1760_v51 = vadd.f32 %v1758_v32, %v1755_v47 }
 0xd47   :  { %v1734_v52 = vmul.f32 %v2562_v33, %v1733_v40  ;;  %v1740_v56 = vmul.f32 %v2564_v58, %v1708_v39  ;;  %vm1746_vm11 = vweird.f32 %v2564_v58 }
 0xd48   :  { %v1763_v0 = vpack.c.bf16 %v1760_v51, %v1759_v61  ;;  %vm1747_vm13 = vmor %vm1745_vm12, %vm1746_vm11 }
 0xd49   :  { %v1741_v1 = vmul.f32 %v2564_v58, %v1740_v56  ;;  %v1738_v48 = vsel %vm1737_vm10, %v2562_v33, %v1734_v52 }
 0xd4a   :  { %2320 = vmatmul.msk.bf16.vlgmr.msrb.gmra.mxu1 %vm290_vm5, %v1763_v0  ;;  %v1751_v59 = vmul.f32 %v1738_v48, %v3313_v54  ;;  %v2430_v54 = vld [vmem:[%s3428_s20 + $0x70] sm:$0xff] }
 0xd4b   :  { %v1742_v9 = vmul.f32 0.5, %v1741_v1  ;;  %1921 = vmatpush.bf16.msrb.mxu3 %v2430_v54 }
 0xd4c   :  { %v1756_v55 = vmul.f32 %v1753_v36, %v1751_v59 }
 0xd4d   :  { %v1743_v5 = vsub.f32 1.5, %v1742_v9 }
 0xd4e   :  { %v1761_v2 = vadd.f32 %v1758_v32, %v1756_v55 }
 0xd4f   :  { %v1744_v6 = vmul.f32 %v2564_v58, %v1743_v5 }
 0xd51   :  { %v1748_v8 = vsel %vm1747_vm13, %v2564_v58, %v1744_v6 }
 0xd52   :  { %v1752_v11 = vmul.f32 %v1748_v8, %v3319_v7  ;;  %v2429_v7 = vld [vmem:[%s3428_s20 + $0x68] sm:$0xff] }
 0xd53   :  { %1922 = vmatpush.bf16.msrb.mxu3 %v2429_v7 }
 0xd54   :  { %v1757_v12 = vmul.f32 %v1753_v36, %v1752_v11 }
 0xd56   :  { %v1762_v60 = vadd.f32 %v1758_v32, %v1757_v12 }
 0xd57   :  { %1923 = vmatpush.bf16.msrb.mxu3 %v2428_v15 }
 0xd58   :  { %v1764_v3 = vpack.c.bf16 %v1762_v60, %v1761_v2 }
 0xd5a   :  { %2321 = vmatmul.msk.bf16.gmra.mxu1 %vm290_vm5, %v1764_v3 }
 0xd5b   :  { %1924 = vmatpush.bf16.msrb.mxu3 %v2427_v16 }
 0xd5f   :  { %1925 = vmatpush.bf16.msrb.mxu3 %v2426_v18  ;;  %v2585_v18 = vld [vmem:[#allocation2] sm:$0xff] }
 0xd63   :  { %1926 = vmatpush.bf16.msrb.mxu3 %v2425_v10 }
 0xd67   :  { %1927 = vmatpush.bf16.msrb.mxu3 %v2424_v21 }
 0xdc7   :  { %v1802_v62 = vpop.f32.mrf.mxu1 }
 0xdc8   :  { %v1803_v22 = vadd.f32 %v2456_v19, %v1802_v62 }
 0xdca   :  { %v1816_v23 = vmul.f32 %v1803_v22, %v1803_v22  ;;  %v1812_v40 = vmul.f32 0.5, %v1803_v22 }
 0xdcc   :  { %v1820_v24 = vmul.f32 %v1816_v23, %v1803_v22  ;;  %v2586_v23 = vld [vmem:[#allocation2 + $0x8] sm:$0xff] }
 0xdce   :  { %v1824_v25 = vmul.f32 0.044715, %v1820_v24 }
 0xdcf   :  { %v1804_v4 = vpop.f32.mrf.mxu1 }
 0xdd0   :  { %v1828_v26 = vadd.f32 %v1824_v25, %v1803_v22  ;;  %v1805_v27 = vadd.f32 %v2456_v19, %v1804_v4 }
 0xdd2   :  { %v1817_v29 = vmul.f32 %v1805_v27, %v1805_v27  ;;  %v1832_v34 = vmul.f32 0.7978846, %v1828_v26  ;;  %v1813_v58 = vmul.f32 0.5, %v1805_v27 }
 0xdd4   :  { %v1821_v30 = vmul.f32 %v1817_v29, %v1805_v27  ;;  %2565 = vtanh.f32 %v1832_v34  ;;  %v2587_v29 = vld [vmem:[#allocation2 + $0x10] sm:$0xff] }
 0xdd6   :  { %v1825_v42 = vmul.f32 0.044715, %v1821_v30 }
 0xdd7   :  { %v1807_v31 = vpop.f32.mrf.mxu1 }
 0xdd8   :  { %v1829_v33 = vadd.f32 %v1825_v42, %v1805_v27  ;;  %v1808_v36 = vadd.f32 %v2456_v19, %v1807_v31  ;;  %v2588_v31 = vld [vmem:[#allocation2 + $0x18] sm:$0xff] }
 0xdda   :  { %v1833_v38 = vmul.f32 0.7978846, %v1829_v33  ;;  %v1818_v39 = vmul.f32 %v1808_v36, %v1808_v36  ;;  %v2566_v17 = vpop.eup %2565  ;;  %v1814_v11 = vmul.f32 0.5, %v1808_v36 }
 0xddb   :  { %v1840_v53 = vadd.f32 1.0, %v2566_v17 }
 0xddc   :  { %2567 = vtanh.f32 %v1833_v38  ;;  %v1822_v44 = vmul.f32 %v1818_v39, %v1808_v36 }
 0xddd   :  { %v1844_v56 = vmul.f32 %v1840_v53, %v1812_v40  ;;  %v2432_v53 = vld [vmem:[%s3431_s23] sm:$0xff] }
 0xdde   :  { %v1826_v45 = vmul.f32 0.044715, %v1822_v44 }
 0xddf   :  { %v1809_v46 = vpop.f32.mrf.mxu1 }
 0xde0   :  { %v1810_v32 = vadd.f32 %v2456_v19, %v1809_v46  ;;  %v1830_v50 = vadd.f32 %v1826_v45, %v1808_v36 }
 0xde2   :  { %v2568_v57 = vpop.eup %2567  ;;  %v1819_v47 = vmul.f32 %v1810_v32, %v1810_v32  ;;  %v1834_v52 = vmul.f32 0.7978846, %v1830_v50  ;;  %v1815_v55 = vmul.f32 0.5, %v1810_v32  ;;  %v2433_v50 = vld [vmem:[%s3431_s23 + $0x8] sm:$0xff] }
 0xde3   :  { %v1841_v61 = vadd.f32 1.0, %v2568_v57  ;;  %2013 = vmatpush.bf16.msrb.mxu2 %v2433_v50  ;;  %2056 = vmatpush.bf16.msra.mxu0 %v2433_v50 }
 0xde4   :  { %v1823_v51 = vmul.f32 %v1819_v47, %v1810_v32  ;;  %2569 = vtanh.f32 %v1834_v52 }
 0xde5   :  { %v1845_v0 = vmul.f32 %v1841_v61, %v1813_v58 }
 0xde6   :  { %v1827_v1 = vmul.f32 0.044715, %v1823_v51 }
 0xde7   :  { %v1848_v48 = vpack.c.bf16 %v1845_v0, %v1844_v56  ;;  %2014 = vmatpush.bf16.msrb.mxu2 %v2432_v53  ;;  %2057 = vmatpush.bf16.msra.mxu0 %v2432_v53 }
 0xde8   :  { %v1831_v9 = vadd.f32 %v1827_v1, %v1810_v32  ;;  %v1955_v1 = vld [vmem:[%s3473_s7] sm:$0x3] }
 0xde9   :  { %1928 = vmatmul.bf16.vlgmr.msrb.gmra.mxu3 %v1848_v48 }
 0xdea   :  { %v1835_v5 = vmul.f32 0.7978846, %v1831_v9  ;;  %v2570_v59 = vpop.eup %2569 }
 0xdeb   :  { %v1842_v6 = vadd.f32 1.0, %v2570_v59  ;;  %v1984_v59 = vperm.slane %v1955_v1, 0 }
 0xdec   :  { %2571 = vtanh.f32 %v1835_v5 }
 0xded   :  { %v1846_v2 = vmul.f32 %v1842_v6, %v1814_v11  ;;  %v1986_v11 = vperm.slane %v1955_v1, 1 }
 0xdf2   :  { %v2572_v8 = vpop.eup %2571 }
 0xdf3   :  { %v1843_v12 = vadd.f32 1.0, %v2572_v8 }
 0xdf5   :  { %v1847_v60 = vmul.f32 %v1843_v12, %v1815_v55 }
 0xdf7   :  { %v1849_v3 = vpack.c.bf16 %v1847_v60, %v1846_v2 }
 0xdf9   :  { %1933 = vmatmul.bf16.gmra.mxu3 %v1849_v3 }
 0xe6c   :  { %v1929_v54 = vpop.f32.mrf.mxu3 }
 0xe6d   :  { %v1930_v7 = vadd.f32 %v2457_v13, %v1929_v54 }
 0xe6f   :  { %v1939_v15 = vadd.f32 %v1930_v7, %v3284_v41 }
 0xe71   :  { %v1943_v16 = vmul.f32 %v1939_v15, %v3108_v14 }
 0xe73   :  { %v1947_v10 = vadd.f32 %v2585_v18, %v1943_v16 }
 0xe74   :  { %v1931_v19 = vpop.f32.mrf.mxu3 }
 0xe75   :  { %1951 = vst.msk [vmem:[#allocation2] sm:$0xff] %vm290_vm5, %v1947_v10  ;;  %v1932_v21 = vadd.f32 %v2457_v13, %v1931_v19 }
 0xe77   :  { %v1940_v62 = vadd.f32 %v1932_v21, %v3289_v35  ;;  %v2458_v21 = vld [vmem:[%s3432_s24] ss:$0 sm:$0xff] }
 0xe79   :  { %v1944_v22 = vmul.f32 %v1940_v62, %v3112_v20 }
 0xe7b   :  { %v1948_v24 = vadd.f32 %v2586_v23, %v1944_v22 }
 0xe7c   :  { %v1934_v25 = vpop.f32.mrf.mxu3  ;;  %v1961_v4 = vld [vmem:[#allocation2] sm:$0xff] }
 0xe7d   :  { %1952 = vst.msk [vmem:[#allocation2 + $0x8] sm:$0xff] %vm290_vm5, %v1948_v24  ;;  %v1935_v26 = vadd.f32 %v2457_v13, %v1934_v25  ;;  %v1962_v41 = vsel %vm290_vm5, %v1961_v4, 0.0 }
 0xe7e   :  { %1963 = vadd.xlane.f32.xlu1 %v1962_v41 }
 0xe7f   :  { %v1941_v14 = vadd.f32 %v1935_v26, %v3294_v49 }
 0xe81   :  { %v1945_v27 = vmul.f32 %v1941_v14, %v3121_v28 }
 0xe83   :  { %v1949_v34 = vadd.f32 %v2587_v29, %v1945_v27 }
 0xe84   :  { %v1936_v30 = vpop.f32.mrf.mxu3 }
 0xe85   :  { %1953 = vst.msk [vmem:[#allocation2 + $0x10] sm:$0xff] %vm290_vm5, %v1949_v34  ;;  %v1937_v20 = vadd.f32 %v2457_v13, %v1936_v30 }
 0xe87   :  { %v1942_v35 = vadd.f32 %v1937_v20, %v3299_v43 }
 0xe89   :  { %v1946_v42 = vmul.f32 %v1942_v35, %v3131_v37 }
 0xe8b   :  { %v1950_v33 = vadd.f32 %v2588_v31, %v1946_v42 }
 0xe8c   :  { %v2021_v36 = vld [vmem:[#allocation2 + $0x10] sm:$0xff] }
 0xe8d   :  { %1954 = vst.msk [vmem:[#allocation2 + $0x18] sm:$0xff] %vm290_vm5, %v1950_v33  ;;  %v2022_v38 = vsel %vm290_vm5, %v2021_v36, 0.0 }
 0xe8e   :  { %2023 = vadd.xlane.f32.xlu0 %v2022_v38 }
 0xef1   :  { %v1964_v49 = vpop.xlane.xlu1 %1963 }
 0xef2   :  { %v1965_v28 = vmul.f32 %v1964_v49, %v2858_v63 }
 0xef4   :  { %v1966_v39 = vsub.f32 %v1961_v4, %v1965_v28 }
 0xef6   :  { %v1967_v44 = vmul.f32 %v1966_v39, %v1966_v39 }
 0xef8   :  { %v1968_v17 = vsel %vm290_vm5, %v1967_v44, 0.0 }
 0xef9   :  { %1969 = vadd.xlane.f32.xlu2 %v1968_v17 }
 0xf01   :  { %v2024_v45 = vpop.xlane.xlu0 %2023 }
 0xf02   :  { %v2025_v43 = vmul.f32 %v2024_v45, %v2858_v63 }
 0xf04   :  { %v2026_v37 = vsub.f32 %v2021_v36, %v2025_v43 }
 0xf06   :  { %v2027_v46 = vmul.f32 %v2026_v37, %v2026_v37 }
 0xf08   :  { %v2028_v32 = vsel %vm290_vm5, %v2027_v46, 0.0 }
 0xf09   :  { %2029 = vadd.xlane.f32.xlu1 %v2028_v32 }
 0xf6c   :  { %v1970_v57 = vpop.xlane.xlu2 %1969 }
 0xf6d   :  { %v1971_v47 = vmul.f32 %v1970_v57, %v2858_v63 }
 0xf6f   :  { %v1972_v40 = vadd.f32 1e-05, %v1971_v47 }
 0xf71   :  { %2573 = vrsqrt.f32 %v1972_v40  ;;  %vm1979_vm15 = vweird.f32 %v1972_v40 }
 0xf77   :  { %v2574_v58 = vpop.eup %2573 }
 0xf78   :  { %v1974_v61 = vmul.f32 %v2574_v58, %v1972_v40  ;;  %vm1980_vm14 = vweird.f32 %v2574_v58 }
 0xf79   :  { %vm1981_vm0 = vmor %vm1979_vm15, %vm1980_vm14 }
 0xf7a   :  { %v1975_v51 = vmul.f32 %v2574_v58, %v1974_v61 }
 0xf7c   :  { %v1976_v52 = vmul.f32 0.5, %v1975_v51  ;;  %v2030_v56 = vpop.xlane.xlu1 %2029 }
 0xf7d   :  { %v2031_v0 = vmul.f32 %v2030_v56, %v2858_v63 }
 0xf7e   :  { %v1977_v48 = vsub.f32 1.5, %v1976_v52 }
 0xf7f   :  { %v2032_v9 = vadd.f32 1e-05, %v2031_v0 }
 0xf80   :  { %v1978_v5 = vmul.f32 %v2574_v58, %v1977_v48 }
 0xf81   :  { %2575 = vrsqrt.f32 %v2032_v9  ;;  %vm2039_vm2 = vweird.f32 %v2032_v9 }
 0xf82   :  { %v1982_v6 = vsel %vm1981_vm0, %v2574_v58, %v1978_v5 }
 0xf83   :  { %v1983_v8 = vmul.f32 %v1982_v6, %v1966_v39 }
 0xf85   :  { %v1985_v55 = vmul.f32 %v1984_v59, %v1983_v8 }
 0xf87   :  { %v2576_v12 = vpop.eup %2575  ;;  %v1987_v2 = vadd.f32 %v1986_v11, %v1985_v55 }
 0xf88   :  { %v2034_v60 = vmul.f32 %v2576_v12, %v2032_v9  ;;  %vm2040_vm1 = vweird.f32 %v2576_v12 }
 0xf89   :  { %v1988_v63 = vpack.c.bf16 %v1987_v2, %v1987_v2  ;;  %vm2041_vm3 = vmor %vm2039_vm2, %vm2040_vm1 }
 0xf8a   :  { %v2035_v3 = vmul.f32 %v2576_v12, %v2034_v60 }
 0xf8b   :  { %2379 = vmatmul.msk.bf16.vlgmr.msrb.gmra.mxu2 %vm290_vm5, %v1988_v63 }
 0xf8c   :  { %v2036_v13 = vmul.f32 0.5, %v2035_v3 }
 0xf8e   :  { %v2037_v54 = vsub.f32 1.5, %v2036_v13 }
 0xf90   :  { %v2038_v7 = vmul.f32 %v2576_v12, %v2037_v54 }
 0xf92   :  { %v2042_v15 = vsel %vm2041_vm3, %v2576_v12, %v2038_v7 }
 0xf93   :  { %v2043_v16 = vmul.f32 %v2042_v15, %v2026_v37 }
 0xf95   :  { %v2044_v18 = vmul.f32 %v2043_v16, %v1984_v59 }
 0xf97   :  { %v2045_v10 = vadd.f32 %v2044_v18, %v1986_v11 }
 0xf99   :  { %v2046_v19 = vpack.c.bf16 %v2045_v10, %v2045_v10 }
 0xf9b   :  { %2380 = vmatmul.msk.bf16.vlgmr.msra.gmra.mxu0 %vm290_vm5, %v2046_v19 }
0x100e   :  { %v2016_v62 = vpop.f32.mrf.mxu2 }
0x100f   :  { %v2017_v22 = vadd.f32 %v2458_v21, %v2016_v62 }
0x1011   :  { %2020 = vst [vmem:[#allocation3] sm:$0xff] %v2017_v22 }
0x1016   :  { %v2018_v23 = vpop.f32.mrf.mxu2 }
0x1018   :  { %v2059_v24 = vpop.f32.mrf.mxu0 }
0x1019   :  { %v2060_v25 = vadd.f32 %v2458_v21, %v2059_v24 }
0x101b   :  { %2063 = vst [vmem:[#allocation3 + $0x8] sm:$0xff] %v2060_v25 }
0x101c   :  { %2076 = dma.vmem_to_hbm [thread:$0]  %s2069_s8, 256, %s2071_s12, [#allocation4], %s2620_s15, %s2620_s15, %s2621_s14  }
0x1020   :  { %v2061_v4 = vpop.f32.mrf.mxu0 }
0x1021   :  { %2613 = dma.done.wait [#allocation4], 256  }
0x1022   :  { %2614 = vsyncadd [#allocation4], 4294967040 }
0x1023   :  { %2081 = vsyncpa [#allocation4], 1 }

</bundles_post_ra>
